<compile_context>
chip_gen: v5e
topology: v5e:2x2
jax: 0.10.0
libtpu: 0.0.40
codegen_flags: <defaults>
</compile_context>

<pallas_src>
import functools
import math

import jax
import jax.numpy as jnp
from jax.experimental import pallas as pl
from jax.experimental.pallas import tpu as pltpu


# ----------------------------- helpers -----------------------------

def _round_up(x, m):
    return ((x + m - 1) // m) * m


def _pick_tile(dim, base, max_tile):
    """Largest multiple of `base` that divides `dim` and is <= max_tile; else full dim."""
    if dim < base or dim % base != 0:
        return dim
    t = (min(max_tile, dim) // base) * base
    while t >= base and dim % t != 0:
        t -= base
    return t if t >= base and dim % t == 0 else dim


# ----------------------------- tiled linear (MXU) -----------------------------

def _linear_kernel(*refs, activation, has_bias):
    if has_bias:
        x_ref, w_ref, b_ref, o_ref, acc_ref = refs
    else:
        x_ref, w_ref, o_ref, acc_ref = refs
        b_ref = None

    @pl.when(pl.program_id(2) == 0)
    def _():
        acc_ref[...] = jnp.zeros_like(acc_ref)

    acc_ref[...] += jnp.dot(x_ref[...], w_ref[...],
                            preferred_element_type=jnp.float32)

    @pl.when(pl.program_id(2) == pl.num_programs(2) - 1)
    def _():
        y = acc_ref[...]
        if has_bias:
            y = y + b_ref[...].astype(jnp.float32)
        if activation == "relu":
            y = jnp.maximum(y, 0.0)
        elif activation == "tanh":
            y = jnp.tanh(y)
        elif activation == "gelu":
            y = jax.nn.gelu(y, approximate=True)
        o_ref[...] = y.astype(o_ref.dtype)


def linear(x2d, w, b=None, activation="none", out_dtype=jnp.bfloat16):
    """y = act(x2d @ w + b).  x2d:(M,K), w:(K,N), b:(N,) or None.  bf16 MXU, f32 acc."""
    M, K = x2d.shape
    K2, N = w.shape
    assert K == K2
    has_bias = b is not None
    x2d = x2d.astype(jnp.bfloat16)
    w = w.astype(jnp.bfloat16)

    # Pad M to 16 (bf16 packs two rows/sublane -> unmasked vld/vst),
    # N/K to 128 so every block is lane-dense and tiles never fall back to full dims.
    Mp, Kp, Np = _round_up(M, 16), _round_up(K, 128), _round_up(N, 128)
    if Mp != M or Kp != K:
        x2d = jnp.pad(x2d, ((0, Mp - M), (0, Kp - K)))
    if Kp != K or Np != N:
        w = jnp.pad(w, ((0, Kp - K), (0, Np - N)))

    args = [x2d, w]
    in_specs = [pl.BlockSpec((0, 0), None)] * 0  # placeholder, filled below
    if has_bias:
        b2 = b.astype(jnp.float32).reshape(1, N)
        if Np != N:
            b2 = jnp.pad(b2, ((0, 0), (0, Np - N)))
        args.append(b2)

    tm = _pick_tile(Mp, 16, 512)
    tn = _pick_tile(Np, 128, 512)
    tk = _pick_tile(Kp, 128, 512)
    grid = (Mp // tm, Np // tn, Kp // tk)

    in_specs = [
        pl.BlockSpec((tm, tk), lambda i, j, k: (i, k)),
        pl.BlockSpec((tk, tn), lambda i, j, k: (k, j)),
    ]
    if has_bias:
        in_specs.append(pl.BlockSpec((1, tn), lambda i, j, k: (0, j)))

    out_bytes = jnp.dtype(out_dtype).itemsize
    # Double-buffered input/output blocks + f32 accumulator; explicit limit so the
    # budget is derived from the actual tiles (safe on v7x's 64 MiB physical VMEM).
    vmem_bytes = (2 * (tm * tk * 2 + tk * tn * 2 + tm * tn * out_bytes
                       + (tn * 4 if has_bias else 0)) + tm * tn * 4)
    vmem_limit = int(min(max(2 * vmem_bytes, 16 << 20), 48 << 20))

    cost = pl.CostEstimate(
        flops=2 * Mp * Np * Kp,
        transcendentals=Mp * Np if activation in ("tanh", "gelu") else 0,
        bytes_accessed=Mp * Kp * 2 + Kp * Np * 2 + Mp * Np * out_bytes
                       + (Np * 4 if has_bias else 0))

    y = pl.pallas_call(
        functools.partial(_linear_kernel, activation=activation, has_bias=has_bias),
        out_shape=jax.ShapeDtypeStruct((Mp, Np), out_dtype),
        grid=grid,
        in_specs=in_specs,
        out_specs=pl.BlockSpec((tm, tn), lambda i, j, k: (i, j)),
        scratch_shapes=[pltpu.VMEM((tm, tn), jnp.float32)],
        compiler_params=pltpu.CompilerParams(
            dimension_semantics=("parallel", "parallel", "arbitrary"),
            vmem_limit_bytes=vmem_limit),
        cost_estimate=cost,
    )(*args)
    if Mp != M or Np != N:
        y = y[:M, :N]
    return y


# -------------------- LayerNorm / fused residual-add + LayerNorm --------------------

def _ln_kernel(x_ref, g_ref, b_ref, n_ref):
    x = x_ref[...].astype(jnp.float32)
    mu = jnp.mean(x, axis=-1, keepdims=True)
    var = jnp.mean(jnp.square(x - mu), axis=-1, keepdims=True)
    n = (x - mu) * jax.lax.rsqrt(var + 1e-5)           # GPT-2 layer_norm eps
    n_ref[...] = (n * g_ref[...] + b_ref[...]).astype(n_ref.dtype)


def _add_ln_kernel(x_ref, y_ref, g_ref, b_ref, s_ref, n_ref):
    s = x_ref[...].astype(jnp.float32) + y_ref[...].astype(jnp.float32)
    s_ref[...] = s.astype(s_ref.dtype)
    mu = jnp.mean(s, axis=-1, keepdims=True)
    var = jnp.mean(jnp.square(s - mu), axis=-1, keepdims=True)
    n = (s - mu) * jax.lax.rsqrt(var + 1e-5)
    n_ref[...] = (n * g_ref[...] + b_ref[...]).astype(n_ref.dtype)


def _ln_common(x2_list, g, b, kernel, n_out):
    """Row-tiled LN launch shared by layer_norm / add_layer_norm."""
    Mp, D = x2_list[0].shape
    tr = _pick_tile(Mp, 16, 512)
    row_spec = pl.BlockSpec((tr, D), lambda i: (i, 0))
    vec_spec = pl.BlockSpec((1, D), lambda i: (0, 0))
    out_shape = tuple(jax.ShapeDtypeStruct((Mp, D), x2_list[0].dtype) for _ in range(n_out))
    out_specs = tuple(row_spec for _ in range(n_out))
    if n_out == 1:
        out_shape, out_specs = out_shape[0], out_specs[0]
    return pl.pallas_call(
        kernel,
        out_shape=out_shape,
        grid=(Mp // tr,),
        in_specs=[row_spec] * len(x2_list) + [vec_spec, vec_spec],
        out_specs=out_specs,
        compiler_params=pltpu.CompilerParams(dimension_semantics=("parallel",)),
    )(*x2_list, g.astype(jnp.float32).reshape(1, D), b.astype(jnp.float32).reshape(1, D))


def layer_norm(x, g, b):
    """LayerNorm(x) for (B, T, D) input (no residual add; used for layer 0)."""
    B, T, D = x.shape
    M = B * T
    Mp = _round_up(M, 16)
    x2 = x.reshape(M, D)
    if Mp != M:
        x2 = jnp.pad(x2, ((0, Mp - M), (0, 0)))
    n = _ln_common([x2], g, b, _ln_kernel, 1)
    return n[:M].reshape(B, T, D)


def add_layer_norm(x, y, g, b):
    """Returns (x + y, LayerNorm(x + y)) for (B, T, D) inputs."""
    B, T, D = x.shape
    M = B * T
    Mp = _round_up(M, 16)
    x2 = x.reshape(M, D)
    y2 = y.reshape(M, D)
    if Mp != M:
        x2 = jnp.pad(x2, ((0, Mp - M), (0, 0)))
        y2 = jnp.pad(y2, ((0, Mp - M), (0, 0)))
    s, n = _ln_common([x2, y2], g, b, _add_ln_kernel, 2)
    return s[:M].reshape(B, T, D), n[:M].reshape(B, T, D)


# -------------------- causal multi-head self-attention --------------------

def _attention_kernel(*refs, num_heads, head_dim, scale):
    o_ref = refs[-1]
    D = num_heads * head_dim
    if len(refs) == 2:                               # fused (T, 3D) qkv block
        qkv = refs[0][0]                             # bf16, static lane-aligned slices
        q, k, v = qkv[:, :D], qkv[:, D:2 * D], qkv[:, 2 * D:3 * D]
    else:                                            # split q/k/v fallback
        q, k, v = refs[0][0], refs[1][0], refs[2][0]

    T = q.shape[0]
    # Causal mask built in-kernel (no mask operand / DMA); large-finite negative
    # instead of -inf so reduced precision stays NaN-free.
    qi = jax.lax.broadcasted_iota(jnp.int32, (T, T), 0)
    ki = jax.lax.broadcasted_iota(jnp.int32, (T, T), 1)
    causal = ki <= qi

    dn = (((1,), (1,)), ((), ()))                    # contract head dims, no transpose
    outs = []
    for h in range(num_heads):                       # all heads of one batch per program
        lo = h * head_dim
        qh = q[:, lo:lo + head_dim]                  # bf16 straight into the MXU
        kh = k[:, lo:lo + head_dim]
        vh = v[:, lo:lo + head_dim]
        s = jax.lax.dot_general(qh, kh, dn, preferred_element_type=jnp.float32)
        s = jnp.where(causal, s * scale, -1e30)      # scale on f32 scores, not on q
        m = jnp.max(s, axis=-1, keepdims=True)
        p = jnp.exp(s - m)
        l = jnp.sum(p, axis=-1, keepdims=True)
        p = p * pl.reciprocal(l, approx=True)        # EUP slot (free under MXU/VPU)
        outs.append(jnp.dot(p.astype(vh.dtype), vh,  # bf16 PV matmul, f32 accumulate
                            preferred_element_type=jnp.float32))
    o_ref[0] = jnp.concatenate(outs, axis=-1).astype(o_ref.dtype)   # lane-dense (T, D)


def causal_self_attention(qkv, B, T, D, num_heads):
    """qkv: (B*T, 3D) fused projection [q|k|v].  Returns (B, T, D)."""
    dh = D // num_heads
    Tp = _round_up(T, 16)
    qkv3 = qkv.reshape(B, T, 3 * D)
    if Tp != T:
        # Padded key rows sit at indices >= T so the causal mask already excludes them
        # for all real query rows; padded query rows are sliced off below.
        qkv3 = jnp.pad(qkv3, ((0, 0), (0, Tp - T), (0, 0)))

    kernel = functools.partial(_attention_kernel, num_heads=num_heads, head_dim=dh,
                               scale=1.0 / math.sqrt(dh))
    if D % 128 == 0:
        # Single (1, T, 3D) block: one DMA stream / one input double-buffer pair,
        # q/k/v recovered with static lane-aligned slices in-kernel.
        in_specs = [pl.BlockSpec((1, Tp, 3 * D), lambda b: (b, 0, 0))]
        args = (qkv3,)
    else:
        q, k, v = jnp.split(qkv3, 3, axis=-1)
        in_specs = [pl.BlockSpec((1, Tp, D), lambda b: (b, 0, 0))] * 3
        args = (q, k, v)

    out = pl.pallas_call(
        kernel,
        out_shape=jax.ShapeDtypeStruct((B, Tp, D), qkv.dtype),
        grid=(B,),
        in_specs=in_specs,
        out_specs=pl.BlockSpec((1, Tp, D), lambda b: (b, 0, 0)),
        compiler_params=pltpu.CompilerParams(dimension_semantics=("parallel",)),
    )(*args)
    return out[:, :T, :]


# ----------------------------- GPT-2 stack -----------------------------

def gpt2_forward(params, inputs_embeds, num_heads):
    """Pre-LN GPT-2 blocks -> final LN -> tied LM head.  inputs_embeds: (B, T, D)."""
    B, T, D = inputs_embeds.shape
    h = inputs_embeds
    # Carry the pending MLP residual so every residual add is fused into the next LN.
    # Layer 0 has no pending residual -> plain LN (no (B,T,D) zeros round-trip).
    pending = None

    for lp in params["blocks"]:
        if pending is None:
            n1 = layer_norm(h, lp["ln1_g"], lp["ln1_b"])
        else:
            h, n1 = add_layer_norm(h, pending, lp["ln1_g"], lp["ln1_b"])  # h += pending
        qkv = linear(n1.reshape(B * T, D), lp["w_qkv"], lp["b_qkv"])      # fused Q|K|V
        attn = causal_self_attention(qkv, B, T, D, num_heads)             # (B, T, D)
        attn = linear(attn.reshape(B * T, D), lp["w_proj"], lp["b_proj"]).reshape(B, T, D)
        h, n2 = add_layer_norm(h, attn, lp["ln2_g"], lp["ln2_b"])         # h += attn
        ff = linear(n2.reshape(B * T, D), lp["w_fc"], lp["b_fc"], activation="gelu")
        pending = linear(ff, lp["w_out"], lp["b_out"]).reshape(B, T, D)

    h, nf = add_layer_norm(h, pending, params["lnf_g"], params["lnf_b"])  # final LN
    V = params["wte"].shape[0]
    # Tied LM head: weight pre-transposed + pre-cast to bf16 once at init; no bias.
    logits = linear(nf.reshape(B * T, D), params["wte_T"], None, out_dtype=jnp.float32)
    return logits.reshape(B, T, V)


def clip_caption_forward(params, tokens, prefix, *, num_heads, prefix_length):
    """ClipCaptionModel.forward (labels=None, mask=None)."""
    B = tokens.shape[0]
    D = params["wte"].shape[1]

    # clip_project MLP: Linear -> Tanh -> Linear (prefix_length <= 40 path)
    h1 = linear(prefix, params["mlp_w1"], params["mlp_b1"], activation="tanh")
    pp = linear(h1, params["mlp_w2"], params["mlp_b2"])
    prefix_emb = pp.reshape(B, prefix_length, D)

    # GPT-2 token embeddings + concat + learned position embeddings
    tok_emb = jnp.take(params["wte"], tokens, axis=0).astype(jnp.bfloat16)
    emb = jnp.concatenate([prefix_emb, tok_emb], axis=1)                  # (B, T, D)
    T = emb.shape[1]
    h = (emb.astype(jnp.float32) + params["wpe"][:T][None]).astype(jnp.bfloat16)

    return gpt2_forward(params, h, num_heads)


# ----------------------------- parameter init -----------------------------

def init_params(key, *, vocab, d_model, n_layers, n_pos, prefix_size, prefix_length):
    keys = iter(jax.random.split(key, 1024))

    def dense(shape, scale=0.02, dtype=jnp.bfloat16):
        return (jax.random.normal(next(keys), shape, jnp.float32) * scale).astype(dtype)

    def block_p():
        return dict(
            ln1_g=jnp.ones((d_model,), jnp.float32), ln1_b=jnp.zeros((d_model,), jnp.float32),
            w_qkv=dense((d_model, 3 * d_model)), b_qkv=jnp.zeros((3 * d_model,), jnp.float32),
            w_proj=dense((d_model, d_model)), b_proj=jnp.zeros((d_model,), jnp.float32),
            ln2_g=jnp.ones((d_model,), jnp.float32), ln2_b=jnp.zeros((d_model,), jnp.float32),
            w_fc=dense((d_model, 4 * d_model)), b_fc=jnp.zeros((4 * d_model,), jnp.float32),
            w_out=dense((4 * d_model, d_model)), b_out=jnp.zeros((d_model,), jnp.float32),
        )

    wte = dense((vocab, d_model), 0.02, jnp.float32)
    mid = d_model * prefix_length // 2
    return dict(
        wte=wte,
        wte_T=jnp.transpose(wte).astype(jnp.bfloat16),   # tied LM head, pre-transposed/cast
        wpe=dense((n_pos, d_model), 0.01, jnp.float32),
        blocks=[block_p() for _ in range(n_layers)],
        lnf_g=jnp.ones((d_model,), jnp.float32), lnf_b=jnp.zeros((d_model,), jnp.float32),
        mlp_w1=dense((prefix_size, mid)), mlp_b1=jnp.zeros((mid,), jnp.float32),
        mlp_w2=dense((mid, prefix_length * d_model)),
        mlp_b2=jnp.zeros((prefix_length * d_model,), jnp.float32),
    )


# ----------------------------- main -----------------------------

if __name__ == "__main__":
    # Scaled-down GPT-2 config (real GPT-2: D=768, V=50257, 12 layers/heads);
    # D and V kept multiples of 128 so every matmul/store block is lane-dense.
    vocab, d_model, n_heads, n_layers = 256, 128, 4, 2
    prefix_length, prefix_size = 8, 128
    B, seq_len = 2, 8

    key = jax.random.PRNGKey(0)
    pkey, tkey, fkey = jax.random.split(key, 3)
    params = init_params(pkey, vocab=vocab, d_model=d_model, n_layers=n_layers,
                         n_pos=64, prefix_size=prefix_size, prefix_length=prefix_length)

    tokens = jax.random.randint(tkey, (B, seq_len), 0, vocab, dtype=jnp.int32)   # GPT-2 tokens
    prefix = jax.random.normal(fkey, (B, prefix_size), jnp.float32)              # CLIP features

    fwd = jax.jit(functools.partial(clip_caption_forward,
                                    num_heads=n_heads, prefix_length=prefix_length))
    logits = fwd(params, tokens, prefix)
    jax.block_until_ready(logits)

    assert logits.shape == (B, prefix_length + seq_len, vocab), logits.shape
    assert bool(jnp.all(jnp.isfinite(logits)))
    print("KERNEL_OK")
</pallas_src>

<mosaic_0001>
module attributes {stable_mosaic.version = 11 : i64} {
  func.func @_linear_kernel(%arg0: i32, %arg1: i32, %arg2: i32, %arg3: memref<16x128xbf16, #tpu.memory_space<vmem>>, %arg4: memref<128x512xbf16, #tpu.memory_space<vmem>>, %arg5: memref<1x512xf32, #tpu.memory_space<vmem>>, %arg6: memref<16x512xbf16, #tpu.memory_space<vmem>>, %arg7: memref<16x512xf32, #tpu.memory_space<vmem>>) attributes {dimension_semantics = [#tpu.dimension_semantics<parallel>, #tpu.dimension_semantics<parallel>, #tpu.dimension_semantics<arbitrary>], iteration_bounds = array<i64: 1, 1, 1>, scalar_prefetch = 0 : i64, scratch_operands = 1 : i64, tpu.core_type = #tpu.core_type<tc>, window_params = [{transform_indices = @transform_0, window_bounds = array<i64: 16, 128>}, {transform_indices = @transform_1, window_bounds = array<i64: 128, 512>}, {transform_indices = @transform_2, window_bounds = array<i64: 1, 512>}, {transform_indices = @transform_3, window_bounds = array<i64: 16, 512>}]} {
    %c0_i32 = arith.constant 0 : i32
    %0 = arith.cmpi eq, %arg2, %c0_i32 : i32
    %1 = arith.extui %0 : i1 to i32
    %c0_i32_0 = arith.constant 0 : i32
    %2 = arith.cmpi ne, %1, %c0_i32_0 : i32
    scf.if %2 {
      %cst_10 = arith.constant 0.000000e+00 : f32
      %12 = vector.broadcast %cst_10 : f32 to vector<16x512xf32>
      %c0_11 = arith.constant 0 : index
      %c0_12 = arith.constant 0 : index
      %13 = vector.load %arg7[%c0_11, %c0_12] : memref<16x512xf32, #tpu.memory_space<vmem>>, vector<16x512xf32>
      tpu.vector_store %arg7[%c0_11, %c0_12], %12 {strides = array<i32>} : memref<16x512xf32, #tpu.memory_space<vmem>>, vector<16x512xf32>,
    } else {
    }
    %c0 = arith.constant 0 : index
    %c0_1 = arith.constant 0 : index
    %3 = vector.load %arg7[%c0, %c0_1] : memref<16x512xf32, #tpu.memory_space<vmem>>, vector<16x512xf32>
    %c0_2 = arith.constant 0 : index
    %c0_3 = arith.constant 0 : index
    %4 = vector.load %arg3[%c0_2, %c0_3] : memref<16x128xbf16, #tpu.memory_space<vmem>>, vector<16x128xbf16>
    %c0_4 = arith.constant 0 : index
    %c0_5 = arith.constant 0 : index
    %5 = vector.load %arg4[%c0_4, %c0_5] : memref<128x512xbf16, #tpu.memory_space<vmem>>, vector<128x512xbf16>
    %cst = arith.constant dense<0.000000e+00> : vector<16x512xf32>
    %6 = tpu.matmul %4, %5, %cst {dimension_numbers = #tpu.dot_dimension_numbers<[1], [0], [0], [1], [0, 0, 1, 1], [], []>} : vector<16x128xbf16>, vector<128x512xbf16>, vector<16x512xf32> -> vector<16x512xf32>
    %7 = arith.addf %3, %6 : vector<16x512xf32>
    %c0_6 = arith.constant 0 : index
    %c0_7 = arith.constant 0 : index
    %8 = vector.load %arg7[%c0_6, %c0_7] : memref<16x512xf32, #tpu.memory_space<vmem>>, vector<16x512xf32>
    tpu.vector_store %arg7[%c0_6, %c0_7], %7 {strides = array<i32>} : memref<16x512xf32, #tpu.memory_space<vmem>>, vector<16x512xf32>,
    %c0_i32_8 = arith.constant 0 : i32
    %9 = arith.cmpi eq, %arg2, %c0_i32_8 : i32
    %10 = arith.extui %9 : i1 to i32
    %c0_i32_9 = arith.constant 0 : i32
    %11 = arith.cmpi ne, %10, %c0_i32_9 : i32
    scf.if %11 {
      %c0_10 = arith.constant 0 : index
      %c0_11 = arith.constant 0 : index
      %12 = vector.load %arg7[%c0_10, %c0_11] : memref<16x512xf32, #tpu.memory_space<vmem>>, vector<16x512xf32>
      %c0_12 = arith.constant 0 : index
      %c0_13 = arith.constant 0 : index
      %13 = vector.load %arg5[%c0_12, %c0_13] : memref<1x512xf32, #tpu.memory_space<vmem>>, vector<1x512xf32>
      %14 = vector.broadcast %13 : vector<1x512xf32> to vector<16x512xf32>
      %15 = arith.addf %12, %14 : vector<16x512xf32>
      %16 = math.tanh %15 : vector<16x512xf32>
      %17 = arith.truncf %16 : vector<16x512xf32> to vector<16x512xbf16>
      %c0_14 = arith.constant 0 : index
      %c0_15 = arith.constant 0 : index
      %18 = vector.load %arg6[%c0_14, %c0_15] : memref<16x512xbf16, #tpu.memory_space<vmem>>, vector<16x512xbf16>
      tpu.vector_store %arg6[%c0_14, %c0_15], %17 {strides = array<i32>} : memref<16x512xbf16, #tpu.memory_space<vmem>>, vector<16x512xbf16>,
    } else {
    }
    return
  }
  func.func @transform_0(%arg0: i32, %arg1: i32, %arg2: i32) -> (i32, i32) {
    %c0_i32 = arith.constant 0 : i32
    return %arg0, %arg2 : i32, i32
  }
  func.func @transform_1(%arg0: i32, %arg1: i32, %arg2: i32) -> (i32, i32) {
    %c0_i32 = arith.constant 0 : i32
    return %arg2, %arg1 : i32, i32
  }
  func.func @transform_2(%arg0: i32, %arg1: i32, %arg2: i32) -> (i32, i32) {
    %c0_i32 = arith.constant 0 : i32
    %c0_i32_0 = arith.constant 0 : i32
    return %c0_i32, %arg1 : i32, i32
  }
  func.func @transform_3(%arg0: i32, %arg1: i32, %arg2: i32) -> (i32, i32) {
    %c0_i32 = arith.constant 0 : i32
    return %arg0, %arg1 : i32, i32
  }
}

module attributes {stable_mosaic.version = 11 : i64} {
  func.func @_linear_kernel(%arg0: i32, %arg1: i32, %arg2: i32, %arg3: memref<16x512xbf16, #tpu.memory_space<vmem>>, %arg4: memref<512x512xbf16, #tpu.memory_space<vmem>>, %arg5: memref<1x512xf32, #tpu.memory_space<vmem>>, %arg6: memref<16x512xbf16, #tpu.memory_space<vmem>>, %arg7: memref<16x512xf32, #tpu.memory_space<vmem>>) attributes {dimension_semantics = [#tpu.dimension_semantics<parallel>, #tpu.dimension_semantics<parallel>, #tpu.dimension_semantics<arbitrary>], iteration_bounds = array<i64: 1, 2, 1>, scalar_prefetch = 0 : i64, scratch_operands = 1 : i64, tpu.core_type = #tpu.core_type<tc>, window_params = [{transform_indices = @transform_0, window_bounds = array<i64: 16, 512>}, {transform_indices = @transform_1, window_bounds = array<i64: 512, 512>}, {transform_indices = @transform_2, window_bounds = array<i64: 1, 512>}, {transform_indices = @transform_3, window_bounds = array<i64: 16, 512>}]} {
    %c0_i32 = arith.constant 0 : i32
    %0 = arith.cmpi eq, %arg2, %c0_i32 : i32
    %1 = arith.extui %0 : i1 to i32
    %c0_i32_0 = arith.constant 0 : i32
    %2 = arith.cmpi ne, %1, %c0_i32_0 : i32
    scf.if %2 {
      %cst_10 = arith.constant 0.000000e+00 : f32
      %12 = vector.broadcast %cst_10 : f32 to vector<16x512xf32>
      %c0_11 = arith.constant 0 : index
      %c0_12 = arith.constant 0 : index
      %13 = vector.load %arg7[%c0_11, %c0_12] : memref<16x512xf32, #tpu.memory_space<vmem>>, vector<16x512xf32>
      tpu.vector_store %arg7[%c0_11, %c0_12], %12 {strides = array<i32>} : memref<16x512xf32, #tpu.memory_space<vmem>>, vector<16x512xf32>,
    } else {
    }
    %c0 = arith.constant 0 : index
    %c0_1 = arith.constant 0 : index
    %3 = vector.load %arg7[%c0, %c0_1] : memref<16x512xf32, #tpu.memory_space<vmem>>, vector<16x512xf32>
    %c0_2 = arith.constant 0 : index
    %c0_3 = arith.constant 0 : index
    %4 = vector.load %arg3[%c0_2, %c0_3] : memref<16x512xbf16, #tpu.memory_space<vmem>>, vector<16x512xbf16>
    %c0_4 = arith.constant 0 : index
    %c0_5 = arith.constant 0 : index
    %5 = vector.load %arg4[%c0_4, %c0_5] : memref<512x512xbf16, #tpu.memory_space<vmem>>, vector<512x512xbf16>
    %cst = arith.constant dense<0.000000e+00> : vector<16x512xf32>
    %6 = tpu.matmul %4, %5, %cst {dimension_numbers = #tpu.dot_dimension_numbers<[1], [0], [0], [1], [0, 0, 1, 1], [], []>} : vector<16x512xbf16>, vector<512x512xbf16>, vector<16x512xf32> -> vector<16x512xf32>
    %7 = arith.addf %3, %6 : vector<16x512xf32>
    %c0_6 = arith.constant 0 : index
    %c0_7 = arith.constant 0 : index
    %8 = vector.load %arg7[%c0_6, %c0_7] : memref<16x512xf32, #tpu.memory_space<vmem>>, vector<16x512xf32>
    tpu.vector_store %arg7[%c0_6, %c0_7], %7 {strides = array<i32>} : memref<16x512xf32, #tpu.memory_space<vmem>>, vector<16x512xf32>,
    %c0_i32_8 = arith.constant 0 : i32
    %9 = arith.cmpi eq, %arg2, %c0_i32_8 : i32
    %10 = arith.extui %9 : i1 to i32
    %c0_i32_9 = arith.constant 0 : i32
    %11 = arith.cmpi ne, %10, %c0_i32_9 : i32
    scf.if %11 {
      %c0_10 = arith.constant 0 : index
      %c0_11 = arith.constant 0 : index
      %12 = vector.load %arg7[%c0_10, %c0_11] : memref<16x512xf32, #tpu.memory_space<vmem>>, vector<16x512xf32>
      %c0_12 = arith.constant 0 : index
      %c0_13 = arith.constant 0 : index
      %13 = vector.load %arg5[%c0_12, %c0_13] : memref<1x512xf32, #tpu.memory_space<vmem>>, vector<1x512xf32>
      %14 = vector.broadcast %13 : vector<1x512xf32> to vector<16x512xf32>
      %15 = arith.addf %12, %14 : vector<16x512xf32>
      %16 = arith.truncf %15 : vector<16x512xf32> to vector<16x512xbf16>
      %c0_14 = arith.constant 0 : index
      %c0_15 = arith.constant 0 : index
      %17 = vector.load %arg6[%c0_14, %c0_15] : memref<16x512xbf16, #tpu.memory_space<vmem>>, vector<16x512xbf16>
      tpu.vector_store %arg6[%c0_14, %c0_15], %16 {strides = array<i32>} : memref<16x512xbf16, #tpu.memory_space<vmem>>, vector<16x512xbf16>,
    } else {
    }
    return
  }
  func.func @transform_0(%arg0: i32, %arg1: i32, %arg2: i32) -> (i32, i32) {
    %c0_i32 = arith.constant 0 : i32
    return %arg0, %arg2 : i32, i32
  }
  func.func @transform_1(%arg0: i32, %arg1: i32, %arg2: i32) -> (i32, i32) {
    %c0_i32 = arith.constant 0 : i32
    return %arg2, %arg1 : i32, i32
  }
  func.func @transform_2(%arg0: i32, %arg1: i32, %arg2: i32) -> (i32, i32) {
    %c0_i32 = arith.constant 0 : i32
    %c0_i32_0 = arith.constant 0 : i32
    return %c0_i32, %arg1 : i32, i32
  }
  func.func @transform_3(%arg0: i32, %arg1: i32, %arg2: i32) -> (i32, i32) {
    %c0_i32 = arith.constant 0 : i32
    return %arg0, %arg1 : i32, i32
  }
}

module attributes {stable_mosaic.version = 11 : i64} {
  func.func @_ln_kernel(%arg0: i32, %arg1: memref<32x128xbf16, #tpu.memory_space<vmem>>, %arg2: memref<1x128xf32, #tpu.memory_space<vmem>>, %arg3: memref<1x128xf32, #tpu.memory_space<vmem>>, %arg4: memref<32x128xbf16, #tpu.memory_space<vmem>>) attributes {dimension_semantics = [#tpu.dimension_semantics<parallel>], iteration_bounds = array<i64: 1>, scalar_prefetch = 0 : i64, scratch_operands = 0 : i64, tpu.core_type = #tpu.core_type<tc>, window_params = [{transform_indices = @transform_0, window_bounds = array<i64: 32, 128>}, {pipeline_mode = #tpu.pipeline_mode<synchronous>, transform_indices = @transform_1, window_bounds = array<i64: 1, 128>}, {pipeline_mode = #tpu.pipeline_mode<synchronous>, transform_indices = @transform_2, window_bounds = array<i64: 1, 128>}, {transform_indices = @transform_3, window_bounds = array<i64: 32, 128>}]} {
    %c0 = arith.constant 0 : index
    %c0_0 = arith.constant 0 : index
    %0 = vector.load %arg1[%c0, %c0_0] : memref<32x128xbf16, #tpu.memory_space<vmem>>, vector<32x128xbf16>
    %1 = arith.extf %0 : vector<32x128xbf16> to vector<32x128xf32>
    %cst = arith.constant dense<0.000000e+00> : vector<32xf32>
    %2 = vector.multi_reduction <add>, %1, %cst [1] : vector<32x128xf32> to vector<32xf32>
    %3 = vector.shape_cast %2 : vector<32xf32> to vector<32x1xf32>
    %cst_1 = arith.constant 1.280000e+02 : f32
    %4 = vector.broadcast %cst_1 : f32 to vector<32x1xf32>
    %5 = arith.divf %3, %4 : vector<32x1xf32>
    %6 = vector.broadcast %5 : vector<32x1xf32> to vector<32x128xf32>
    %7 = arith.subf %1, %6 : vector<32x128xf32>
    %8 = arith.mulf %7, %7 : vector<32x128xf32>
    %cst_2 = arith.constant dense<0.000000e+00> : vector<32xf32>
    %9 = vector.multi_reduction <add>, %8, %cst_2 [1] : vector<32x128xf32> to vector<32xf32>
    %10 = vector.shape_cast %9 : vector<32xf32> to vector<32x1xf32>
    %cst_3 = arith.constant 1.280000e+02 : f32
    %11 = vector.broadcast %cst_3 : f32 to vector<32x1xf32>
    %12 = arith.divf %10, %11 : vector<32x1xf32>
    %13 = vector.broadcast %5 : vector<32x1xf32> to vector<32x128xf32>
    %14 = arith.subf %1, %13 : vector<32x128xf32>
    %cst_4 = arith.constant 9.99999974E-6 : f32
    %15 = vector.broadcast %cst_4 : f32 to vector<32x1xf32>
    %16 = arith.addf %12, %15 : vector<32x1xf32>
    %17 = math.rsqrt %16 : vector<32x1xf32>
    %18 = vector.broadcast %17 : vector<32x1xf32> to vector<32x128xf32>
    %19 = arith.mulf %14, %18 : vector<32x128xf32>
    %c0_5 = arith.constant 0 : index
    %c0_6 = arith.constant 0 : index
    %20 = vector.load %arg2[%c0_5, %c0_6] : memref<1x128xf32, #tpu.memory_space<vmem>>, vector<1x128xf32>
    %21 = vector.broadcast %20 : vector<1x128xf32> to vector<32x128xf32>
    %22 = arith.mulf %19, %21 : vector<32x128xf32>
    %c0_7 = arith.constant 0 : index
    %c0_8 = arith.constant 0 : index
    %23 = vector.load %arg3[%c0_7, %c0_8] : memref<1x128xf32, #tpu.memory_space<vmem>>, vector<1x128xf32>
    %24 = vector.broadcast %23 : vector<1x128xf32> to vector<32x128xf32>
    %25 = arith.addf %22, %24 : vector<32x128xf32>
    %26 = arith.truncf %25 : vector<32x128xf32> to vector<32x128xbf16>
    %c0_9 = arith.constant 0 : index
    %c0_10 = arith.constant 0 : index
    %27 = vector.load %arg4[%c0_9, %c0_10] : memref<32x128xbf16, #tpu.memory_space<vmem>>, vector<32x128xbf16>
    tpu.vector_store %arg4[%c0_9, %c0_10], %26 {strides = array<i32>} : memref<32x128xbf16, #tpu.memory_space<vmem>>, vector<32x128xbf16>,
    return
  }
  func.func @transform_0(%arg0: i32) -> (i32, i32) {
    %c0_i32 = arith.constant 0 : i32
    %c0_i32_0 = arith.constant 0 : i32
    return %arg0, %c0_i32 : i32, i32
  }
  func.func @transform_1(%arg0: i32) -> (i32, i32) {
    %c0_i32 = arith.constant 0 : i32
    %c0_i32_0 = arith.constant 0 : i32
    %c0_i32_1 = arith.constant 0 : i32
    return %c0_i32, %c0_i32_0 : i32, i32
  }
  func.func @transform_2(%arg0: i32) -> (i32, i32) {
    %c0_i32 = arith.constant 0 : i32
    %c0_i32_0 = arith.constant 0 : i32
    %c0_i32_1 = arith.constant 0 : i32
    return %c0_i32, %c0_i32_0 : i32, i32
  }
  func.func @transform_3(%arg0: i32) -> (i32, i32) {
    %c0_i32 = arith.constant 0 : i32
    %c0_i32_0 = arith.constant 0 : i32
    return %arg0, %c0_i32 : i32, i32
  }
}

module attributes {stable_mosaic.version = 11 : i64} {
  func.func @_linear_kernel(%arg0: i32, %arg1: i32, %arg2: i32, %arg3: memref<32x128xbf16, #tpu.memory_space<vmem>>, %arg4: memref<128x384xbf16, #tpu.memory_space<vmem>>, %arg5: memref<1x384xf32, #tpu.memory_space<vmem>>, %arg6: memref<32x384xbf16, #tpu.memory_space<vmem>>, %arg7: memref<32x384xf32, #tpu.memory_space<vmem>>) attributes {dimension_semantics = [#tpu.dimension_semantics<parallel>, #tpu.dimension_semantics<parallel>, #tpu.dimension_semantics<arbitrary>], iteration_bounds = array<i64: 1, 1, 1>, scalar_prefetch = 0 : i64, scratch_operands = 1 : i64, tpu.core_type = #tpu.core_type<tc>, window_params = [{transform_indices = @transform_0, window_bounds = array<i64: 32, 128>}, {transform_indices = @transform_1, window_bounds = array<i64: 128, 384>}, {transform_indices = @transform_2, window_bounds = array<i64: 1, 384>}, {transform_indices = @transform_3, window_bounds = array<i64: 32, 384>}]} {
    %c0_i32 = arith.constant 0 : i32
    %0 = arith.cmpi eq, %arg2, %c0_i32 : i32
    %1 = arith.extui %0 : i1 to i32
    %c0_i32_0 = arith.constant 0 : i32
    %2 = arith.cmpi ne, %1, %c0_i32_0 : i32
    scf.if %2 {
      %cst_10 = arith.constant 0.000000e+00 : f32
      %12 = vector.broadcast %cst_10 : f32 to vector<32x384xf32>
      %c0_11 = arith.constant 0 : index
      %c0_12 = arith.constant 0 : index
      %13 = vector.load %arg7[%c0_11, %c0_12] : memref<32x384xf32, #tpu.memory_space<vmem>>, vector<32x384xf32>
      tpu.vector_store %arg7[%c0_11, %c0_12], %12 {strides = array<i32>} : memref<32x384xf32, #tpu.memory_space<vmem>>, vector<32x384xf32>,
    } else {
    }
    %c0 = arith.constant 0 : index
    %c0_1 = arith.constant 0 : index
    %3 = vector.load %arg7[%c0, %c0_1] : memref<32x384xf32, #tpu.memory_space<vmem>>, vector<32x384xf32>
    %c0_2 = arith.constant 0 : index
    %c0_3 = arith.constant 0 : index
    %4 = vector.load %arg3[%c0_2, %c0_3] : memref<32x128xbf16, #tpu.memory_space<vmem>>, vector<32x128xbf16>
    %c0_4 = arith.constant 0 : index
    %c0_5 = arith.constant 0 : index
    %5 = vector.load %arg4[%c0_4, %c0_5] : memref<128x384xbf16, #tpu.memory_space<vmem>>, vector<128x384xbf16>
    %cst = arith.constant dense<0.000000e+00> : vector<32x384xf32>
    %6 = tpu.matmul %4, %5, %cst {dimension_numbers = #tpu.dot_dimension_numbers<[1], [0], [0], [1], [0, 0, 1, 1], [], []>} : vector<32x128xbf16>, vector<128x384xbf16>, vector<32x384xf32> -> vector<32x384xf32>
    %7 = arith.addf %3, %6 : vector<32x384xf32>
    %c0_6 = arith.constant 0 : index
    %c0_7 = arith.constant 0 : index
    %8 = vector.load %arg7[%c0_6, %c0_7] : memref<32x384xf32, #tpu.memory_space<vmem>>, vector<32x384xf32>
    tpu.vector_store %arg7[%c0_6, %c0_7], %7 {strides = array<i32>} : memref<32x384xf32, #tpu.memory_space<vmem>>, vector<32x384xf32>,
    %c0_i32_8 = arith.constant 0 : i32
    %9 = arith.cmpi eq, %arg2, %c0_i32_8 : i32
    %10 = arith.extui %9 : i1 to i32
    %c0_i32_9 = arith.constant 0 : i32
    %11 = arith.cmpi ne, %10, %c0_i32_9 : i32
    scf.if %11 {
      %c0_10 = arith.constant 0 : index
      %c0_11 = arith.constant 0 : index
      %12 = vector.load %arg7[%c0_10, %c0_11] : memref<32x384xf32, #tpu.memory_space<vmem>>, vector<32x384xf32>
      %c0_12 = arith.constant 0 : index
      %c0_13 = arith.constant 0 : index
      %13 = vector.load %arg5[%c0_12, %c0_13] : memref<1x384xf32, #tpu.memory_space<vmem>>, vector<1x384xf32>
      %14 = vector.broadcast %13 : vector<1x384xf32> to vector<32x384xf32>
      %15 = arith.addf %12, %14 : vector<32x384xf32>
      %16 = arith.truncf %15 : vector<32x384xf32> to vector<32x384xbf16>
      %c0_14 = arith.constant 0 : index
      %c0_15 = arith.constant 0 : index
      %17 = vector.load %arg6[%c0_14, %c0_15] : memref<32x384xbf16, #tpu.memory_space<vmem>>, vector<32x384xbf16>
      tpu.vector_store %arg6[%c0_14, %c0_15], %16 {strides = array<i32>} : memref<32x384xbf16, #tpu.memory_space<vmem>>, vector<32x384xbf16>,
    } else {
    }
    return
  }
  func.func @transform_0(%arg0: i32, %arg1: i32, %arg2: i32) -> (i32, i32) {
    %c0_i32 = arith.constant 0 : i32
    return %arg0, %arg2 : i32, i32
  }
  func.func @transform_1(%arg0: i32, %arg1: i32, %arg2: i32) -> (i32, i32) {
    %c0_i32 = arith.constant 0 : i32
    return %arg2, %arg1 : i32, i32
  }
  func.func @transform_2(%arg0: i32, %arg1: i32, %arg2: i32) -> (i32, i32) {
    %c0_i32 = arith.constant 0 : i32
    %c0_i32_0 = arith.constant 0 : i32
    return %c0_i32, %arg1 : i32, i32
  }
  func.func @transform_3(%arg0: i32, %arg1: i32, %arg2: i32) -> (i32, i32) {
    %c0_i32 = arith.constant 0 : i32
    return %arg0, %arg1 : i32, i32
  }
}

module attributes {stable_mosaic.version = 11 : i64} {
  func.func @_attention_kernel(%arg0: i32, %arg1: memref<1x16x384xbf16, #tpu.memory_space<vmem>>, %arg2: memref<1x16x128xbf16, #tpu.memory_space<vmem>>) attributes {dimension_semantics = [#tpu.dimension_semantics<parallel>], iteration_bounds = array<i64: 2>, scalar_prefetch = 0 : i64, scratch_operands = 0 : i64, tpu.core_type = #tpu.core_type<tc>, window_params = [{transform_indices = @transform_0, window_bounds = array<i64: 1, 16, 384>}, {transform_indices = @transform_1, window_bounds = array<i64: 1, 16, 128>}]} {
    %c0 = arith.constant 0 : index
    %c0_0 = arith.constant 0 : index
    %c0_1 = arith.constant 0 : index
    %0 = vector.load %arg1[%c0, %c0_0, %c0_1] : memref<1x16x384xbf16, #tpu.memory_space<vmem>>, vector<1x16x384xbf16>
    %1 = vector.shape_cast %0 : vector<1x16x384xbf16> to vector<16x384xbf16>
    %2 = vector.extract_strided_slice %1 {offsets = [0, 0], sizes = [16, 128], strides = [1, 1]} : vector<16x384xbf16> to vector<16x128xbf16>
    %3 = vector.extract_strided_slice %1 {offsets = [0, 128], sizes = [16, 128], strides = [1, 1]} : vector<16x384xbf16> to vector<16x128xbf16>
    %4 = vector.extract_strided_slice %1 {offsets = [0, 256], sizes = [16, 128], strides = [1, 1]} : vector<16x384xbf16> to vector<16x128xbf16>
    %5 = tpu.iota {dimensions = array<i32: 0>} : vector<16x16xi32>
    %6 = tpu.iota {dimensions = array<i32: 1>} : vector<16x16xi32>
    %7 = arith.cmpi sle, %6, %5 : vector<16x16xi32>
    %8 = vector.extract_strided_slice %2 {offsets = [0, 0], sizes = [16, 32], strides = [1, 1]} : vector<16x128xbf16> to vector<16x32xbf16>
    %9 = vector.extract_strided_slice %3 {offsets = [0, 0], sizes = [16, 32], strides = [1, 1]} : vector<16x128xbf16> to vector<16x32xbf16>
    %10 = vector.extract_strided_slice %4 {offsets = [0, 0], sizes = [16, 32], strides = [1, 1]} : vector<16x128xbf16> to vector<16x32xbf16>
    %cst = arith.constant dense<0.000000e+00> : vector<16x16xf32>
    %11 = tpu.matmul %8, %9, %cst {dimension_numbers = #tpu.dot_dimension_numbers<[1], [1], [0], [0], [0, 0, 1, 0], [], []>} : vector<16x32xbf16>, vector<16x32xbf16>, vector<16x16xf32> -> vector<16x16xf32>
    %cst_2 = arith.constant 0.176776692 : f32
    %12 = vector.broadcast %cst_2 : f32 to vector<16x16xf32>
    %13 = arith.mulf %11, %12 : vector<16x16xf32>
    %cst_3 = arith.constant -1.000000e+30 : f32
    %14 = vector.broadcast %cst_3 : f32 to vector<16x16xf32>
    %15 = arith.select %7, %13, %14 : vector<16x16xi1>, vector<16x16xf32>
    %cst_4 = arith.constant dense<0xFF800000> : vector<16xf32>
    %16 = vector.multi_reduction <maximumf>, %15, %cst_4 [1] : vector<16x16xf32> to vector<16xf32>
    %17 = vector.shape_cast %16 : vector<16xf32> to vector<16x1xf32>
    %18 = vector.broadcast %17 : vector<16x1xf32> to vector<16x16xf32>
    %19 = arith.subf %15, %18 : vector<16x16xf32>
    %20 = math.exp %19 : vector<16x16xf32>
    %cst_5 = arith.constant dense<0.000000e+00> : vector<16xf32>
    %21 = vector.multi_reduction <add>, %20, %cst_5 [1] : vector<16x16xf32> to vector<16xf32>
    %22 = vector.shape_cast %21 : vector<16xf32> to vector<16x1xf32>
    %23 = tpu.reciprocal %22 {approx = true} : vector<16x1xf32> -> vector<16x1xf32>
    %24 = vector.broadcast %23 : vector<16x1xf32> to vector<16x16xf32>
    %25 = arith.mulf %20, %24 : vector<16x16xf32>
    %26 = arith.truncf %25 : vector<16x16xf32> to vector<16x16xbf16>
    %cst_6 = arith.constant dense<0.000000e+00> : vector<16x32xf32>
    %27 = tpu.matmul %26, %10, %cst_6 {dimension_numbers = #tpu.dot_dimension_numbers<[1], [0], [0], [1], [0, 0, 1, 1], [], []>} : vector<16x16xbf16>, vector<16x32xbf16>, vector<16x32xf32> -> vector<16x32xf32>
    %28 = vector.extract_strided_slice %2 {offsets = [0, 32], sizes = [16, 32], strides = [1, 1]} : vector<16x128xbf16> to vector<16x32xbf16>
    %29 = vector.extract_strided_slice %3 {offsets = [0, 32], sizes = [16, 32], strides = [1, 1]} : vector<16x128xbf16> to vector<16x32xbf16>
    %30 = vector.extract_strided_slice %4 {offsets = [0, 32], sizes = [16, 32], strides = [1, 1]} : vector<16x128xbf16> to vector<16x32xbf16>
    %cst_7 = arith.constant dense<0.000000e+00> : vector<16x16xf32>
    %31 = tpu.matmul %28, %29, %cst_7 {dimension_numbers = #tpu.dot_dimension_numbers<[1], [1], [0], [0], [0, 0, 1, 0], [], []>} : vector<16x32xbf16>, vector<16x32xbf16>, vector<16x16xf32> -> vector<16x16xf32>
    %cst_8 = arith.constant 0.176776692 : f32
    %32 = vector.broadcast %cst_8 : f32 to vector<16x16xf32>
    %33 = arith.mulf %31, %32 : vector<16x16xf32>
    %cst_9 = arith.constant -1.000000e+30 : f32
    %34 = vector.broadcast %cst_9 : f32 to vector<16x16xf32>
    %35 = arith.select %7, %33, %34 : vector<16x16xi1>, vector<16x16xf32>
    %cst_10 = arith.constant dense<0xFF800000> : vector<16xf32>
    %36 = vector.multi_reduction <maximumf>, %35, %cst_10 [1] : vector<16x16xf32> to vector<16xf32>
    %37 = vector.shape_cast %36 : vector<16xf32> to vector<16x1xf32>
    %38 = vector.broadcast %37 : vector<16x1xf32> to vector<16x16xf32>
    %39 = arith.subf %35, %38 : vector<16x16xf32>
    %40 = math.exp %39 : vector<16x16xf32>
    %cst_11 = arith.constant dense<0.000000e+00> : vector<16xf32>
    %41 = vector.multi_reduction <add>, %40, %cst_11 [1] : vector<16x16xf32> to vector<16xf32>
    %42 = vector.shape_cast %41 : vector<16xf32> to vector<16x1xf32>
    %43 = tpu.reciprocal %42 {approx = true} : vector<16x1xf32> -> vector<16x1xf32>
    %44 = vector.broadcast %43 : vector<16x1xf32> to vector<16x16xf32>
    %45 = arith.mulf %40, %44 : vector<16x16xf32>
    %46 = arith.truncf %45 : vector<16x16xf32> to vector<16x16xbf16>
    %cst_12 = arith.constant dense<0.000000e+00> : vector<16x32xf32>
    %47 = tpu.matmul %46, %30, %cst_12 {dimension_numbers = #tpu.dot_dimension_numbers<[1], [0], [0], [1], [0, 0, 1, 1], [], []>} : vector<16x16xbf16>, vector<16x32xbf16>, vector<16x32xf32> -> vector<16x32xf32>
    %48 = vector.extract_strided_slice %2 {offsets = [0, 64], sizes = [16, 32], strides = [1, 1]} : vector<16x128xbf16> to vector<16x32xbf16>
    %49 = vector.extract_strided_slice %3 {offsets = [0, 64], sizes = [16, 32], strides = [1, 1]} : vector<16x128xbf16> to vector<16x32xbf16>
    %50 = vector.extract_strided_slice %4 {offsets = [0, 64], sizes = [16, 32], strides = [1, 1]} : vector<16x128xbf16> to vector<16x32xbf16>
    %cst_13 = arith.constant dense<0.000000e+00> : vector<16x16xf32>
    %51 = tpu.matmul %48, %49, %cst_13 {dimension_numbers = #tpu.dot_dimension_numbers<[1], [1], [0], [0], [0, 0, 1, 0], [], []>} : vector<16x32xbf16>, vector<16x32xbf16>, vector<16x16xf32> -> vector<16x16xf32>
    %cst_14 = arith.constant 0.176776692 : f32
    %52 = vector.broadcast %cst_14 : f32 to vector<16x16xf32>
    %53 = arith.mulf %51, %52 : vector<16x16xf32>
    %cst_15 = arith.constant -1.000000e+30 : f32
    %54 = vector.broadcast %cst_15 : f32 to vector<16x16xf32>
    %55 = arith.select %7, %53, %54 : vector<16x16xi1>, vector<16x16xf32>
    %cst_16 = arith.constant dense<0xFF800000> : vector<16xf32>
    %56 = vector.multi_reduction <maximumf>, %55, %cst_16 [1] : vector<16x16xf32> to vector<16xf32>
    %57 = vector.shape_cast %56 : vector<16xf32> to vector<16x1xf32>
    %58 = vector.broadcast %57 : vector<16x1xf32> to vector<16x16xf32>
    %59 = arith.subf %55, %58 : vector<16x16xf32>
    %60 = math.exp %59 : vector<16x16xf32>
    %cst_17 = arith.constant dense<0.000000e+00> : vector<16xf32>
    %61 = vector.multi_reduction <add>, %60, %cst_17 [1] : vector<16x16xf32> to vector<16xf32>
    %62 = vector.shape_cast %61 : vector<16xf32> to vector<16x1xf32>
    %63 = tpu.reciprocal %62 {approx = true} : vector<16x1xf32> -> vector<16x1xf32>
    %64 = vector.broadcast %63 : vector<16x1xf32> to vector<16x16xf32>
    %65 = arith.mulf %60, %64 : vector<16x16xf32>
    %66 = arith.truncf %65 : vector<16x16xf32> to vector<16x16xbf16>
    %cst_18 = arith.constant dense<0.000000e+00> : vector<16x32xf32>
    %67 = tpu.matmul %66, %50, %cst_18 {dimension_numbers = #tpu.dot_dimension_numbers<[1], [0], [0], [1], [0, 0, 1, 1], [], []>} : vector<16x16xbf16>, vector<16x32xbf16>, vector<16x32xf32> -> vector<16x32xf32>
    %68 = vector.extract_strided_slice %2 {offsets = [0, 96], sizes = [16, 32], strides = [1, 1]} : vector<16x128xbf16> to vector<16x32xbf16>
    %69 = vector.extract_strided_slice %3 {offsets = [0, 96], sizes = [16, 32], strides = [1, 1]} : vector<16x128xbf16> to vector<16x32xbf16>
    %70 = vector.extract_strided_slice %4 {offsets = [0, 96], sizes = [16, 32], strides = [1, 1]} : vector<16x128xbf16> to vector<16x32xbf16>
    %cst_19 = arith.constant dense<0.000000e+00> : vector<16x16xf32>
    %71 = tpu.matmul %68, %69, %cst_19 {dimension_numbers = #tpu.dot_dimension_numbers<[1], [1], [0], [0], [0, 0, 1, 0], [], []>} : vector<16x32xbf16>, vector<16x32xbf16>, vector<16x16xf32> -> vector<16x16xf32>
    %cst_20 = arith.constant 0.176776692 : f32
    %72 = vector.broadcast %cst_20 : f32 to vector<16x16xf32>
    %73 = arith.mulf %71, %72 : vector<16x16xf32>
    %cst_21 = arith.constant -1.000000e+30 : f32
    %74 = vector.broadcast %cst_21 : f32 to vector<16x16xf32>
    %75 = arith.select %7, %73, %74 : vector<16x16xi1>, vector<16x16xf32>
    %cst_22 = arith.constant dense<0xFF800000> : vector<16xf32>
    %76 = vector.multi_reduction <maximumf>, %75, %cst_22 [1] : vector<16x16xf32> to vector<16xf32>
    %77 = vector.shape_cast %76 : vector<16xf32> to vector<16x1xf32>
    %78 = vector.broadcast %77 : vector<16x1xf32> to vector<16x16xf32>
    %79 = arith.subf %75, %78 : vector<16x16xf32>
    %80 = math.exp %79 : vector<16x16xf32>
    %cst_23 = arith.constant dense<0.000000e+00> : vector<16xf32>
    %81 = vector.multi_reduction <add>, %80, %cst_23 [1] : vector<16x16xf32> to vector<16xf32>
    %82 = vector.shape_cast %81 : vector<16xf32> to vector<16x1xf32>
    %83 = tpu.reciprocal %82 {approx = true} : vector<16x1xf32> -> vector<16x1xf32>
    %84 = vector.broadcast %83 : vector<16x1xf32> to vector<16x16xf32>
    %85 = arith.mulf %80, %84 : vector<16x16xf32>
    %86 = arith.truncf %85 : vector<16x16xf32> to vector<16x16xbf16>
    %cst_24 = arith.constant dense<0.000000e+00> : vector<16x32xf32>
    %87 = tpu.matmul %86, %70, %cst_24 {dimension_numbers = #tpu.dot_dimension_numbers<[1], [0], [0], [1], [0, 0, 1, 1], [], []>} : vector<16x16xbf16>, vector<16x32xbf16>, vector<16x32xf32> -> vector<16x32xf32>
    %88 = tpu.concatenate %27, %47, %67, %87 in 1 : vector<16x32xf32>, vector<16x32xf32>, vector<16x32xf32>, vector<16x32xf32> -> vector<16x128xf32>
    %89 = arith.truncf %88 : vector<16x128xf32> to vector<16x128xbf16>
    %c0_25 = arith.constant 0 : index
    %c0_26 = arith.constant 0 : index
    %c0_27 = arith.constant 0 : index
    %90 = vector.load %arg2[%c0_25, %c0_26, %c0_27] : memref<1x16x128xbf16, #tpu.memory_space<vmem>>, vector<1x16x128xbf16>
    %91 = vector.shape_cast %90 : vector<1x16x128xbf16> to vector<16x128xbf16>
    %92 = vector.shape_cast %89 : vector<16x128xbf16> to vector<1x16x128xbf16>
    tpu.vector_store %arg2[%c0_25, %c0_26, %c0_27], %92 {strides = array<i32>} : memref<1x16x128xbf16, #tpu.memory_space<vmem>>, vector<1x16x128xbf16>,
    return
  }
  func.func @transform_0(%arg0: i32) -> (i32, i32, i32) {
    %c0_i32 = arith.constant 0 : i32
    %c0_i32_0 = arith.constant 0 : i32
    %c0_i32_1 = arith.constant 0 : i32
    return %arg0, %c0_i32, %c0_i32_0 : i32, i32, i32
  }
  func.func @transform_1(%arg0: i32) -> (i32, i32, i32) {
    %c0_i32 = arith.constant 0 : i32
    %c0_i32_0 = arith.constant 0 : i32
    %c0_i32_1 = arith.constant 0 : i32
    return %arg0, %c0_i32, %c0_i32_0 : i32, i32, i32
  }
}

module attributes {stable_mosaic.version = 11 : i64} {
  func.func @_linear_kernel(%arg0: i32, %arg1: i32, %arg2: i32, %arg3: memref<32x128xbf16, #tpu.memory_space<vmem>>, %arg4: memref<128x128xbf16, #tpu.memory_space<vmem>>, %arg5: memref<1x128xf32, #tpu.memory_space<vmem>>, %arg6: memref<32x128xbf16, #tpu.memory_space<vmem>>, %arg7: memref<32x128xf32, #tpu.memory_space<vmem>>) attributes {dimension_semantics = [#tpu.dimension_semantics<parallel>, #tpu.dimension_semantics<parallel>, #tpu.dimension_semantics<arbitrary>], iteration_bounds = array<i64: 1, 1, 1>, scalar_prefetch = 0 : i64, scratch_operands = 1 : i64, tpu.core_type = #tpu.core_type<tc>, window_params = [{transform_indices = @transform_0, window_bounds = array<i64: 32, 128>}, {transform_indices = @transform_1, window_bounds = array<i64: 128, 128>}, {transform_indices = @transform_2, window_bounds = array<i64: 1, 128>}, {transform_indices = @transform_3, window_bounds = array<i64: 32, 128>}]} {
    %c0_i32 = arith.constant 0 : i32
    %0 = arith.cmpi eq, %arg2, %c0_i32 : i32
    %1 = arith.extui %0 : i1 to i32
    %c0_i32_0 = arith.constant 0 : i32
    %2 = arith.cmpi ne, %1, %c0_i32_0 : i32
    scf.if %2 {
      %cst_10 = arith.constant 0.000000e+00 : f32
      %12 = vector.broadcast %cst_10 : f32 to vector<32x128xf32>
      %c0_11 = arith.constant 0 : index
      %c0_12 = arith.constant 0 : index
      %13 = vector.load %arg7[%c0_11, %c0_12] : memref<32x128xf32, #tpu.memory_space<vmem>>, vector<32x128xf32>
      tpu.vector_store %arg7[%c0_11, %c0_12], %12 {strides = array<i32>} : memref<32x128xf32, #tpu.memory_space<vmem>>, vector<32x128xf32>,
    } else {
    }
    %c0 = arith.constant 0 : index
    %c0_1 = arith.constant 0 : index
    %3 = vector.load %arg7[%c0, %c0_1] : memref<32x128xf32, #tpu.memory_space<vmem>>, vector<32x128xf32>
    %c0_2 = arith.constant 0 : index
    %c0_3 = arith.constant 0 : index
    %4 = vector.load %arg3[%c0_2, %c0_3] : memref<32x128xbf16, #tpu.memory_space<vmem>>, vector<32x128xbf16>
    %c0_4 = arith.constant 0 : index
    %c0_5 = arith.constant 0 : index
    %5 = vector.load %arg4[%c0_4, %c0_5] : memref<128x128xbf16, #tpu.memory_space<vmem>>, vector<128x128xbf16>
    %cst = arith.constant dense<0.000000e+00> : vector<32x128xf32>
    %6 = tpu.matmul %4, %5, %cst {dimension_numbers = #tpu.dot_dimension_numbers<[1], [0], [0], [1], [0, 0, 1, 1], [], []>} : vector<32x128xbf16>, vector<128x128xbf16>, vector<32x128xf32> -> vector<32x128xf32>
    %7 = arith.addf %3, %6 : vector<32x128xf32>
    %c0_6 = arith.constant 0 : index
    %c0_7 = arith.constant 0 : index
    %8 = vector.load %arg7[%c0_6, %c0_7] : memref<32x128xf32, #tpu.memory_space<vmem>>, vector<32x128xf32>
    tpu.vector_store %arg7[%c0_6, %c0_7], %7 {strides = array<i32>} : memref<32x128xf32, #tpu.memory_space<vmem>>, vector<32x128xf32>,
    %c0_i32_8 = arith.constant 0 : i32
    %9 = arith.cmpi eq, %arg2, %c0_i32_8 : i32
    %10 = arith.extui %9 : i1 to i32
    %c0_i32_9 = arith.constant 0 : i32
    %11 = arith.cmpi ne, %10, %c0_i32_9 : i32
    scf.if %11 {
      %c0_10 = arith.constant 0 : index
      %c0_11 = arith.constant 0 : index
      %12 = vector.load %arg7[%c0_10, %c0_11] : memref<32x128xf32, #tpu.memory_space<vmem>>, vector<32x128xf32>
      %c0_12 = arith.constant 0 : index
      %c0_13 = arith.constant 0 : index
      %13 = vector.load %arg5[%c0_12, %c0_13] : memref<1x128xf32, #tpu.memory_space<vmem>>, vector<1x128xf32>
      %14 = vector.broadcast %13 : vector<1x128xf32> to vector<32x128xf32>
      %15 = arith.addf %12, %14 : vector<32x128xf32>
      %16 = arith.truncf %15 : vector<32x128xf32> to vector<32x128xbf16>
      %c0_14 = arith.constant 0 : index
      %c0_15 = arith.constant 0 : index
      %17 = vector.load %arg6[%c0_14, %c0_15] : memref<32x128xbf16, #tpu.memory_space<vmem>>, vector<32x128xbf16>
      tpu.vector_store %arg6[%c0_14, %c0_15], %16 {strides = array<i32>} : memref<32x128xbf16, #tpu.memory_space<vmem>>, vector<32x128xbf16>,
    } else {
    }
    return
  }
  func.func @transform_0(%arg0: i32, %arg1: i32, %arg2: i32) -> (i32, i32) {
    %c0_i32 = arith.constant 0 : i32
    return %arg0, %arg2 : i32, i32
  }
  func.func @transform_1(%arg0: i32, %arg1: i32, %arg2: i32) -> (i32, i32) {
    %c0_i32 = arith.constant 0 : i32
    return %arg2, %arg1 : i32, i32
  }
  func.func @transform_2(%arg0: i32, %arg1: i32, %arg2: i32) -> (i32, i32) {
    %c0_i32 = arith.constant 0 : i32
    %c0_i32_0 = arith.constant 0 : i32
    return %c0_i32, %arg1 : i32, i32
  }
  func.func @transform_3(%arg0: i32, %arg1: i32, %arg2: i32) -> (i32, i32) {
    %c0_i32 = arith.constant 0 : i32
    return %arg0, %arg1 : i32, i32
  }
}

module attributes {stable_mosaic.version = 11 : i64} {
  func.func @_add_ln_kernel(%arg0: i32, %arg1: memref<32x128xbf16, #tpu.memory_space<vmem>>, %arg2: memref<32x128xbf16, #tpu.memory_space<vmem>>, %arg3: memref<1x128xf32, #tpu.memory_space<vmem>>, %arg4: memref<1x128xf32, #tpu.memory_space<vmem>>, %arg5: memref<32x128xbf16, #tpu.memory_space<vmem>>, %arg6: memref<32x128xbf16, #tpu.memory_space<vmem>>) attributes {dimension_semantics = [#tpu.dimension_semantics<parallel>], iteration_bounds = array<i64: 1>, scalar_prefetch = 0 : i64, scratch_operands = 0 : i64, tpu.core_type = #tpu.core_type<tc>, window_params = [{transform_indices = @transform_0, window_bounds = array<i64: 32, 128>}, {transform_indices = @transform_1, window_bounds = array<i64: 32, 128>}, {pipeline_mode = #tpu.pipeline_mode<synchronous>, transform_indices = @transform_2, window_bounds = array<i64: 1, 128>}, {pipeline_mode = #tpu.pipeline_mode<synchronous>, transform_indices = @transform_3, window_bounds = array<i64: 1, 128>}, {transform_indices = @transform_4, window_bounds = array<i64: 32, 128>}, {transform_indices = @transform_5, window_bounds = array<i64: 32, 128>}]} {
    %c0 = arith.constant 0 : index
    %c0_0 = arith.constant 0 : index
    %0 = vector.load %arg1[%c0, %c0_0] : memref<32x128xbf16, #tpu.memory_space<vmem>>, vector<32x128xbf16>
    %1 = arith.extf %0 : vector<32x128xbf16> to vector<32x128xf32>
    %c0_1 = arith.constant 0 : index
    %c0_2 = arith.constant 0 : index
    %2 = vector.load %arg2[%c0_1, %c0_2] : memref<32x128xbf16, #tpu.memory_space<vmem>>, vector<32x128xbf16>
    %3 = arith.extf %2 : vector<32x128xbf16> to vector<32x128xf32>
    %4 = arith.addf %1, %3 : vector<32x128xf32>
    %5 = arith.truncf %4 : vector<32x128xf32> to vector<32x128xbf16>
    %c0_3 = arith.constant 0 : index
    %c0_4 = arith.constant 0 : index
    %6 = vector.load %arg5[%c0_3, %c0_4] : memref<32x128xbf16, #tpu.memory_space<vmem>>, vector<32x128xbf16>
    tpu.vector_store %arg5[%c0_3, %c0_4], %5 {strides = array<i32>} : memref<32x128xbf16, #tpu.memory_space<vmem>>, vector<32x128xbf16>,
    %cst = arith.constant dense<0.000000e+00> : vector<32xf32>
    %7 = vector.multi_reduction <add>, %4, %cst [1] : vector<32x128xf32> to vector<32xf32>
    %8 = vector.shape_cast %7 : vector<32xf32> to vector<32x1xf32>
    %cst_5 = arith.constant 1.280000e+02 : f32
    %9 = vector.broadcast %cst_5 : f32 to vector<32x1xf32>
    %10 = arith.divf %8, %9 : vector<32x1xf32>
    %11 = vector.broadcast %10 : vector<32x1xf32> to vector<32x128xf32>
    %12 = arith.subf %4, %11 : vector<32x128xf32>
    %13 = arith.mulf %12, %12 : vector<32x128xf32>
    %cst_6 = arith.constant dense<0.000000e+00> : vector<32xf32>
    %14 = vector.multi_reduction <add>, %13, %cst_6 [1] : vector<32x128xf32> to vector<32xf32>
    %15 = vector.shape_cast %14 : vector<32xf32> to vector<32x1xf32>
    %cst_7 = arith.constant 1.280000e+02 : f32
    %16 = vector.broadcast %cst_7 : f32 to vector<32x1xf32>
    %17 = arith.divf %15, %16 : vector<32x1xf32>
    %18 = vector.broadcast %10 : vector<32x1xf32> to vector<32x128xf32>
    %19 = arith.subf %4, %18 : vector<32x128xf32>
    %cst_8 = arith.constant 9.99999974E-6 : f32
    %20 = vector.broadcast %cst_8 : f32 to vector<32x1xf32>
    %21 = arith.addf %17, %20 : vector<32x1xf32>
    %22 = math.rsqrt %21 : vector<32x1xf32>
    %23 = vector.broadcast %22 : vector<32x1xf32> to vector<32x128xf32>
    %24 = arith.mulf %19, %23 : vector<32x128xf32>
    %c0_9 = arith.constant 0 : index
    %c0_10 = arith.constant 0 : index
    %25 = vector.load %arg3[%c0_9, %c0_10] : memref<1x128xf32, #tpu.memory_space<vmem>>, vector<1x128xf32>
    %26 = vector.broadcast %25 : vector<1x128xf32> to vector<32x128xf32>
    %27 = arith.mulf %24, %26 : vector<32x128xf32>
    %c0_11 = arith.constant 0 : index
    %c0_12 = arith.constant 0 : index
    %28 = vector.load %arg4[%c0_11, %c0_12] : memref<1x128xf32, #tpu.memory_space<vmem>>, vector<1x128xf32>
    %29 = vector.broadcast %28 : vector<1x128xf32> to vector<32x128xf32>
    %30 = arith.addf %27, %29 : vector<32x128xf32>
    %31 = arith.truncf %30 : vector<32x128xf32> to vector<32x128xbf16>
    %c0_13 = arith.constant 0 : index
    %c0_14 = arith.constant 0 : index
    %32 = vector.load %arg6[%c0_13, %c0_14] : memref<32x128xbf16, #tpu.memory_space<vmem>>, vector<32x128xbf16>
    tpu.vector_store %arg6[%c0_13, %c0_14], %31 {strides = array<i32>} : memref<32x128xbf16, #tpu.memory_space<vmem>>, vector<32x128xbf16>,
    return
  }
  func.func @transform_0(%arg0: i32) -> (i32, i32) {
    %c0_i32 = arith.constant 0 : i32
    %c0_i32_0 = arith.constant 0 : i32
    return %arg0, %c0_i32 : i32, i32
  }
  func.func @transform_1(%arg0: i32) -> (i32, i32) {
    %c0_i32 = arith.constant 0 : i32
    %c0_i32_0 = arith.constant 0 : i32
    return %arg0, %c0_i32 : i32, i32
  }
  func.func @transform_2(%arg0: i32) -> (i32, i32) {
    %c0_i32 = arith.constant 0 : i32
    %c0_i32_0 = arith.constant 0 : i32
    %c0_i32_1 = arith.constant 0 : i32
    return %c0_i32, %c0_i32_0 : i32, i32
  }
  func.func @transform_3(%arg0: i32) -> (i32, i32) {
    %c0_i32 = arith.constant 0 : i32
    %c0_i32_0 = arith.constant 0 : i32
    %c0_i32_1 = arith.constant 0 : i32
    return %c0_i32, %c0_i32_0 : i32, i32
  }
  func.func @transform_4(%arg0: i32) -> (i32, i32) {
    %c0_i32 = arith.constant 0 : i32
    %c0_i32_0 = arith.constant 0 : i32
    return %arg0, %c0_i32 : i32, i32
  }
  func.func @transform_5(%arg0: i32) -> (i32, i32) {
    %c0_i32 = arith.constant 0 : i32
    %c0_i32_0 = arith.constant 0 : i32
    return %arg0, %c0_i32 : i32, i32
  }
}

module attributes {stable_mosaic.version = 11 : i64} {
  func.func @_linear_kernel(%arg0: i32, %arg1: i32, %arg2: i32, %arg3: memref<32x128xbf16, #tpu.memory_space<vmem>>, %arg4: memref<128x512xbf16, #tpu.memory_space<vmem>>, %arg5: memref<1x512xf32, #tpu.memory_space<vmem>>, %arg6: memref<32x512xbf16, #tpu.memory_space<vmem>>, %arg7: memref<32x512xf32, #tpu.memory_space<vmem>>) attributes {dimension_semantics = [#tpu.dimension_semantics<parallel>, #tpu.dimension_semantics<parallel>, #tpu.dimension_semantics<arbitrary>], iteration_bounds = array<i64: 1, 1, 1>, scalar_prefetch = 0 : i64, scratch_operands = 1 : i64, tpu.core_type = #tpu.core_type<tc>, window_params = [{transform_indices = @transform_0, window_bounds = array<i64: 32, 128>}, {transform_indices = @transform_1, window_bounds = array<i64: 128, 512>}, {transform_indices = @transform_2, window_bounds = array<i64: 1, 512>}, {transform_indices = @transform_3, window_bounds = array<i64: 32, 512>}]} {
    %c0_i32 = arith.constant 0 : i32
    %0 = arith.cmpi eq, %arg2, %c0_i32 : i32
    %1 = arith.extui %0 : i1 to i32
    %c0_i32_0 = arith.constant 0 : i32
    %2 = arith.cmpi ne, %1, %c0_i32_0 : i32
    scf.if %2 {
      %cst_10 = arith.constant 0.000000e+00 : f32
      %12 = vector.broadcast %cst_10 : f32 to vector<32x512xf32>
      %c0_11 = arith.constant 0 : index
      %c0_12 = arith.constant 0 : index
      %13 = vector.load %arg7[%c0_11, %c0_12] : memref<32x512xf32, #tpu.memory_space<vmem>>, vector<32x512xf32>
      tpu.vector_store %arg7[%c0_11, %c0_12], %12 {strides = array<i32>} : memref<32x512xf32, #tpu.memory_space<vmem>>, vector<32x512xf32>,
    } else {
    }
    %c0 = arith.constant 0 : index
    %c0_1 = arith.constant 0 : index
    %3 = vector.load %arg7[%c0, %c0_1] : memref<32x512xf32, #tpu.memory_space<vmem>>, vector<32x512xf32>
    %c0_2 = arith.constant 0 : index
    %c0_3 = arith.constant 0 : index
    %4 = vector.load %arg3[%c0_2, %c0_3] : memref<32x128xbf16, #tpu.memory_space<vmem>>, vector<32x128xbf16>
    %c0_4 = arith.constant 0 : index
    %c0_5 = arith.constant 0 : index
    %5 = vector.load %arg4[%c0_4, %c0_5] : memref<128x512xbf16, #tpu.memory_space<vmem>>, vector<128x512xbf16>
    %cst = arith.constant dense<0.000000e+00> : vector<32x512xf32>
    %6 = tpu.matmul %4, %5, %cst {dimension_numbers = #tpu.dot_dimension_numbers<[1], [0], [0], [1], [0, 0, 1, 1], [], []>} : vector<32x128xbf16>, vector<128x512xbf16>, vector<32x512xf32> -> vector<32x512xf32>
    %7 = arith.addf %3, %6 : vector<32x512xf32>
    %c0_6 = arith.constant 0 : index
    %c0_7 = arith.constant 0 : index
    %8 = vector.load %arg7[%c0_6, %c0_7] : memref<32x512xf32, #tpu.memory_space<vmem>>, vector<32x512xf32>
    tpu.vector_store %arg7[%c0_6, %c0_7], %7 {strides = array<i32>} : memref<32x512xf32, #tpu.memory_space<vmem>>, vector<32x512xf32>,
    %c0_i32_8 = arith.constant 0 : i32
    %9 = arith.cmpi eq, %arg2, %c0_i32_8 : i32
    %10 = arith.extui %9 : i1 to i32
    %c0_i32_9 = arith.constant 0 : i32
    %11 = arith.cmpi ne, %10, %c0_i32_9 : i32
    scf.if %11 {
      %c0_10 = arith.constant 0 : index
      %c0_11 = arith.constant 0 : index
      %12 = vector.load %arg7[%c0_10, %c0_11] : memref<32x512xf32, #tpu.memory_space<vmem>>, vector<32x512xf32>
      %c0_12 = arith.constant 0 : index
      %c0_13 = arith.constant 0 : index
      %13 = vector.load %arg5[%c0_12, %c0_13] : memref<1x512xf32, #tpu.memory_space<vmem>>, vector<1x512xf32>
      %14 = vector.broadcast %13 : vector<1x512xf32> to vector<32x512xf32>
      %15 = arith.addf %12, %14 : vector<32x512xf32>
      %16 = arith.mulf %15, %15 : vector<32x512xf32>
      %17 = arith.mulf %15, %16 : vector<32x512xf32>
      %cst_14 = arith.constant 4.471500e-02 : f32
      %18 = vector.broadcast %cst_14 : f32 to vector<32x512xf32>
      %19 = arith.mulf %18, %17 : vector<32x512xf32>
      %20 = arith.addf %15, %19 : vector<32x512xf32>
      %cst_15 = arith.constant 0.797884583 : f32
      %21 = vector.broadcast %cst_15 : f32 to vector<32x512xf32>
      %22 = arith.mulf %21, %20 : vector<32x512xf32>
      %23 = math.tanh %22 : vector<32x512xf32>
      %cst_16 = arith.constant 1.000000e+00 : f32
      %24 = vector.broadcast %cst_16 : f32 to vector<32x512xf32>
      %25 = arith.addf %24, %23 : vector<32x512xf32>
      %cst_17 = arith.constant 5.000000e-01 : f32
      %26 = vector.broadcast %cst_17 : f32 to vector<32x512xf32>
      %27 = arith.mulf %26, %25 : vector<32x512xf32>
      %28 = arith.mulf %15, %27 : vector<32x512xf32>
      %29 = arith.truncf %28 : vector<32x512xf32> to vector<32x512xbf16>
      %c0_18 = arith.constant 0 : index
      %c0_19 = arith.constant 0 : index
      %30 = vector.load %arg6[%c0_18, %c0_19] : memref<32x512xbf16, #tpu.memory_space<vmem>>, vector<32x512xbf16>
      tpu.vector_store %arg6[%c0_18, %c0_19], %29 {strides = array<i32>} : memref<32x512xbf16, #tpu.memory_space<vmem>>, vector<32x512xbf16>,
    } else {
    }
    return
  }
  func.func @transform_0(%arg0: i32, %arg1: i32, %arg2: i32) -> (i32, i32) {
    %c0_i32 = arith.constant 0 : i32
    return %arg0, %arg2 : i32, i32
  }
  func.func @transform_1(%arg0: i32, %arg1: i32, %arg2: i32) -> (i32, i32) {
    %c0_i32 = arith.constant 0 : i32
    return %arg2, %arg1 : i32, i32
  }
  func.func @transform_2(%arg0: i32, %arg1: i32, %arg2: i32) -> (i32, i32) {
    %c0_i32 = arith.constant 0 : i32
    %c0_i32_0 = arith.constant 0 : i32
    return %c0_i32, %arg1 : i32, i32
  }
  func.func @transform_3(%arg0: i32, %arg1: i32, %arg2: i32) -> (i32, i32) {
    %c0_i32 = arith.constant 0 : i32
    return %arg0, %arg1 : i32, i32
  }
}

module attributes {stable_mosaic.version = 11 : i64} {
  func.func @_linear_kernel(%arg0: i32, %arg1: i32, %arg2: i32, %arg3: memref<32x512xbf16, #tpu.memory_space<vmem>>, %arg4: memref<512x128xbf16, #tpu.memory_space<vmem>>, %arg5: memref<1x128xf32, #tpu.memory_space<vmem>>, %arg6: memref<32x128xbf16, #tpu.memory_space<vmem>>, %arg7: memref<32x128xf32, #tpu.memory_space<vmem>>) attributes {dimension_semantics = [#tpu.dimension_semantics<parallel>, #tpu.dimension_semantics<parallel>, #tpu.dimension_semantics<arbitrary>], iteration_bounds = array<i64: 1, 1, 1>, scalar_prefetch = 0 : i64, scratch_operands = 1 : i64, tpu.core_type = #tpu.core_type<tc>, window_params = [{transform_indices = @transform_0, window_bounds = array<i64: 32, 512>}, {transform_indices = @transform_1, window_bounds = array<i64: 512, 128>}, {transform_indices = @transform_2, window_bounds = array<i64: 1, 128>}, {transform_indices = @transform_3, window_bounds = array<i64: 32, 128>}]} {
    %c0_i32 = arith.constant 0 : i32
    %0 = arith.cmpi eq, %arg2, %c0_i32 : i32
    %1 = arith.extui %0 : i1 to i32
    %c0_i32_0 = arith.constant 0 : i32
    %2 = arith.cmpi ne, %1, %c0_i32_0 : i32
    scf.if %2 {
      %cst_10 = arith.constant 0.000000e+00 : f32
      %12 = vector.broadcast %cst_10 : f32 to vector<32x128xf32>
      %c0_11 = arith.constant 0 : index
      %c0_12 = arith.constant 0 : index
      %13 = vector.load %arg7[%c0_11, %c0_12] : memref<32x128xf32, #tpu.memory_space<vmem>>, vector<32x128xf32>
      tpu.vector_store %arg7[%c0_11, %c0_12], %12 {strides = array<i32>} : memref<32x128xf32, #tpu.memory_space<vmem>>, vector<32x128xf32>,
    } else {
    }
    %c0 = arith.constant 0 : index
    %c0_1 = arith.constant 0 : index
    %3 = vector.load %arg7[%c0, %c0_1] : memref<32x128xf32, #tpu.memory_space<vmem>>, vector<32x128xf32>
    %c0_2 = arith.constant 0 : index
    %c0_3 = arith.constant 0 : index
    %4 = vector.load %arg3[%c0_2, %c0_3] : memref<32x512xbf16, #tpu.memory_space<vmem>>, vector<32x512xbf16>
    %c0_4 = arith.constant 0 : index
    %c0_5 = arith.constant 0 : index
    %5 = vector.load %arg4[%c0_4, %c0_5] : memref<512x128xbf16, #tpu.memory_space<vmem>>, vector<512x128xbf16>
    %cst = arith.constant dense<0.000000e+00> : vector<32x128xf32>
    %6 = tpu.matmul %4, %5, %cst {dimension_numbers = #tpu.dot_dimension_numbers<[1], [0], [0], [1], [0, 0, 1, 1], [], []>} : vector<32x512xbf16>, vector<512x128xbf16>, vector<32x128xf32> -> vector<32x128xf32>
    %7 = arith.addf %3, %6 : vector<32x128xf32>
    %c0_6 = arith.constant 0 : index
    %c0_7 = arith.constant 0 : index
    %8 = vector.load %arg7[%c0_6, %c0_7] : memref<32x128xf32, #tpu.memory_space<vmem>>, vector<32x128xf32>
    tpu.vector_store %arg7[%c0_6, %c0_7], %7 {strides = array<i32>} : memref<32x128xf32, #tpu.memory_space<vmem>>, vector<32x128xf32>,
    %c0_i32_8 = arith.constant 0 : i32
    %9 = arith.cmpi eq, %arg2, %c0_i32_8 : i32
    %10 = arith.extui %9 : i1 to i32
    %c0_i32_9 = arith.constant 0 : i32
    %11 = arith.cmpi ne, %10, %c0_i32_9 : i32
    scf.if %11 {
      %c0_10 = arith.constant 0 : index
      %c0_11 = arith.constant 0 : index
      %12 = vector.load %arg7[%c0_10, %c0_11] : memref<32x128xf32, #tpu.memory_space<vmem>>, vector<32x128xf32>
      %c0_12 = arith.constant 0 : index
      %c0_13 = arith.constant 0 : index
      %13 = vector.load %arg5[%c0_12, %c0_13] : memref<1x128xf32, #tpu.memory_space<vmem>>, vector<1x128xf32>
      %14 = vector.broadcast %13 : vector<1x128xf32> to vector<32x128xf32>
      %15 = arith.addf %12, %14 : vector<32x128xf32>
      %16 = arith.truncf %15 : vector<32x128xf32> to vector<32x128xbf16>
      %c0_14 = arith.constant 0 : index
      %c0_15 = arith.constant 0 : index
      %17 = vector.load %arg6[%c0_14, %c0_15] : memref<32x128xbf16, #tpu.memory_space<vmem>>, vector<32x128xbf16>
      tpu.vector_store %arg6[%c0_14, %c0_15], %16 {strides = array<i32>} : memref<32x128xbf16, #tpu.memory_space<vmem>>, vector<32x128xbf16>,
    } else {
    }
    return
  }
  func.func @transform_0(%arg0: i32, %arg1: i32, %arg2: i32) -> (i32, i32) {
    %c0_i32 = arith.constant 0 : i32
    return %arg0, %arg2 : i32, i32
  }
  func.func @transform_1(%arg0: i32, %arg1: i32, %arg2: i32) -> (i32, i32) {
    %c0_i32 = arith.constant 0 : i32
    return %arg2, %arg1 : i32, i32
  }
  func.func @transform_2(%arg0: i32, %arg1: i32, %arg2: i32) -> (i32, i32) {
    %c0_i32 = arith.constant 0 : i32
    %c0_i32_0 = arith.constant 0 : i32
    return %c0_i32, %arg1 : i32, i32
  }
  func.func @transform_3(%arg0: i32, %arg1: i32, %arg2: i32) -> (i32, i32) {
    %c0_i32 = arith.constant 0 : i32
    return %arg0, %arg1 : i32, i32
  }
}

module attributes {stable_mosaic.version = 11 : i64} {
  func.func @_add_ln_kernel(%arg0: i32, %arg1: memref<32x128xbf16, #tpu.memory_space<vmem>>, %arg2: memref<32x128xbf16, #tpu.memory_space<vmem>>, %arg3: memref<1x128xf32, #tpu.memory_space<vmem>>, %arg4: memref<1x128xf32, #tpu.memory_space<vmem>>, %arg5: memref<32x128xbf16, #tpu.memory_space<vmem>>, %arg6: memref<32x128xbf16, #tpu.memory_space<vmem>>) attributes {dimension_semantics = [#tpu.dimension_semantics<parallel>], iteration_bounds = array<i64: 1>, scalar_prefetch = 0 : i64, scratch_operands = 0 : i64, tpu.core_type = #tpu.core_type<tc>, window_params = [{transform_indices = @transform_0, window_bounds = array<i64: 32, 128>}, {transform_indices = @transform_1, window_bounds = array<i64: 32, 128>}, {pipeline_mode = #tpu.pipeline_mode<synchronous>, transform_indices = @transform_2, window_bounds = array<i64: 1, 128>}, {pipeline_mode = #tpu.pipeline_mode<synchronous>, transform_indices = @transform_3, window_bounds = array<i64: 1, 128>}, {transform_indices = @transform_4, window_bounds = array<i64: 32, 128>}, {transform_indices = @transform_5, window_bounds = array<i64: 32, 128>}]} {
    %c0 = arith.constant 0 : index
    %c0_0 = arith.constant 0 : index
    %0 = vector.load %arg1[%c0, %c0_0] : memref<32x128xbf16, #tpu.memory_space<vmem>>, vector<32x128xbf16>
    %1 = arith.extf %0 : vector<32x128xbf16> to vector<32x128xf32>
    %c0_1 = arith.constant 0 : index
    %c0_2 = arith.constant 0 : index
    %2 = vector.load %arg2[%c0_1, %c0_2] : memref<32x128xbf16, #tpu.memory_space<vmem>>, vector<32x128xbf16>
    %3 = arith.extf %2 : vector<32x128xbf16> to vector<32x128xf32>
    %4 = arith.addf %1, %3 : vector<32x128xf32>
    %5 = arith.truncf %4 : vector<32x128xf32> to vector<32x128xbf16>
    %c0_3 = arith.constant 0 : index
    %c0_4 = arith.constant 0 : index
    %6 = vector.load %arg5[%c0_3, %c0_4] : memref<32x128xbf16, #tpu.memory_space<vmem>>, vector<32x128xbf16>
    tpu.vector_store %arg5[%c0_3, %c0_4], %5 {strides = array<i32>} : memref<32x128xbf16, #tpu.memory_space<vmem>>, vector<32x128xbf16>,
    %cst = arith.constant dense<0.000000e+00> : vector<32xf32>
    %7 = vector.multi_reduction <add>, %4, %cst [1] : vector<32x128xf32> to vector<32xf32>
    %8 = vector.shape_cast %7 : vector<32xf32> to vector<32x1xf32>
    %cst_5 = arith.constant 1.280000e+02 : f32
    %9 = vector.broadcast %cst_5 : f32 to vector<32x1xf32>
    %10 = arith.divf %8, %9 : vector<32x1xf32>
    %11 = vector.broadcast %10 : vector<32x1xf32> to vector<32x128xf32>
    %12 = arith.subf %4, %11 : vector<32x128xf32>
    %13 = arith.mulf %12, %12 : vector<32x128xf32>
    %cst_6 = arith.constant dense<0.000000e+00> : vector<32xf32>
    %14 = vector.multi_reduction <add>, %13, %cst_6 [1] : vector<32x128xf32> to vector<32xf32>
    %15 = vector.shape_cast %14 : vector<32xf32> to vector<32x1xf32>
    %cst_7 = arith.constant 1.280000e+02 : f32
    %16 = vector.broadcast %cst_7 : f32 to vector<32x1xf32>
    %17 = arith.divf %15, %16 : vector<32x1xf32>
    %18 = vector.broadcast %10 : vector<32x1xf32> to vector<32x128xf32>
    %19 = arith.subf %4, %18 : vector<32x128xf32>
    %cst_8 = arith.constant 9.99999974E-6 : f32
    %20 = vector.broadcast %cst_8 : f32 to vector<32x1xf32>
    %21 = arith.addf %17, %20 : vector<32x1xf32>
    %22 = math.rsqrt %21 : vector<32x1xf32>
    %23 = vector.broadcast %22 : vector<32x1xf32> to vector<32x128xf32>
    %24 = arith.mulf %19, %23 : vector<32x128xf32>
    %c0_9 = arith.constant 0 : index
    %c0_10 = arith.constant 0 : index
    %25 = vector.load %arg3[%c0_9, %c0_10] : memref<1x128xf32, #tpu.memory_space<vmem>>, vector<1x128xf32>
    %26 = vector.broadcast %25 : vector<1x128xf32> to vector<32x128xf32>
    %27 = arith.mulf %24, %26 : vector<32x128xf32>
    %c0_11 = arith.constant 0 : index
    %c0_12 = arith.constant 0 : index
    %28 = vector.load %arg4[%c0_11, %c0_12] : memref<1x128xf32, #tpu.memory_space<vmem>>, vector<1x128xf32>
    %29 = vector.broadcast %28 : vector<1x128xf32> to vector<32x128xf32>
    %30 = arith.addf %27, %29 : vector<32x128xf32>
    %31 = arith.truncf %30 : vector<32x128xf32> to vector<32x128xbf16>
    %c0_13 = arith.constant 0 : index
    %c0_14 = arith.constant 0 : index
    %32 = vector.load %arg6[%c0_13, %c0_14] : memref<32x128xbf16, #tpu.memory_space<vmem>>, vector<32x128xbf16>
    tpu.vector_store %arg6[%c0_13, %c0_14], %31 {strides = array<i32>} : memref<32x128xbf16, #tpu.memory_space<vmem>>, vector<32x128xbf16>,
    return
  }
  func.func @transform_0(%arg0: i32) -> (i32, i32) {
    %c0_i32 = arith.constant 0 : i32
    %c0_i32_0 = arith.constant 0 : i32
    return %arg0, %c0_i32 : i32, i32
  }
  func.func @transform_1(%arg0: i32) -> (i32, i32) {
    %c0_i32 = arith.constant 0 : i32
    %c0_i32_0 = arith.constant 0 : i32
    return %arg0, %c0_i32 : i32, i32
  }
  func.func @transform_2(%arg0: i32) -> (i32, i32) {
    %c0_i32 = arith.constant 0 : i32
    %c0_i32_0 = arith.constant 0 : i32
    %c0_i32_1 = arith.constant 0 : i32
    return %c0_i32, %c0_i32_0 : i32, i32
  }
  func.func @transform_3(%arg0: i32) -> (i32, i32) {
    %c0_i32 = arith.constant 0 : i32
    %c0_i32_0 = arith.constant 0 : i32
    %c0_i32_1 = arith.constant 0 : i32
    return %c0_i32, %c0_i32_0 : i32, i32
  }
  func.func @transform_4(%arg0: i32) -> (i32, i32) {
    %c0_i32 = arith.constant 0 : i32
    %c0_i32_0 = arith.constant 0 : i32
    return %arg0, %c0_i32 : i32, i32
  }
  func.func @transform_5(%arg0: i32) -> (i32, i32) {
    %c0_i32 = arith.constant 0 : i32
    %c0_i32_0 = arith.constant 0 : i32
    return %arg0, %c0_i32 : i32, i32
  }
}

module attributes {stable_mosaic.version = 11 : i64} {
  func.func @_linear_kernel(%arg0: i32, %arg1: i32, %arg2: i32, %arg3: memref<32x128xbf16, #tpu.memory_space<vmem>>, %arg4: memref<128x256xbf16, #tpu.memory_space<vmem>>, %arg5: memref<32x256xf32, #tpu.memory_space<vmem>>, %arg6: memref<32x256xf32, #tpu.memory_space<vmem>>) attributes {dimension_semantics = [#tpu.dimension_semantics<parallel>, #tpu.dimension_semantics<parallel>, #tpu.dimension_semantics<arbitrary>], iteration_bounds = array<i64: 1, 1, 1>, scalar_prefetch = 0 : i64, scratch_operands = 1 : i64, tpu.core_type = #tpu.core_type<tc>, window_params = [{transform_indices = @transform_0, window_bounds = array<i64: 32, 128>}, {transform_indices = @transform_1, window_bounds = array<i64: 128, 256>}, {transform_indices = @transform_2, window_bounds = array<i64: 32, 256>}]} {
    %c0_i32 = arith.constant 0 : i32
    %0 = arith.cmpi eq, %arg2, %c0_i32 : i32
    %1 = arith.extui %0 : i1 to i32
    %c0_i32_0 = arith.constant 0 : i32
    %2 = arith.cmpi ne, %1, %c0_i32_0 : i32
    scf.if %2 {
      %cst_10 = arith.constant 0.000000e+00 : f32
      %12 = vector.broadcast %cst_10 : f32 to vector<32x256xf32>
      %c0_11 = arith.constant 0 : index
      %c0_12 = arith.constant 0 : index
      %13 = vector.load %arg6[%c0_11, %c0_12] : memref<32x256xf32, #tpu.memory_space<vmem>>, vector<32x256xf32>
      tpu.vector_store %arg6[%c0_11, %c0_12], %12 {strides = array<i32>} : memref<32x256xf32, #tpu.memory_space<vmem>>, vector<32x256xf32>,
    } else {
    }
    %c0 = arith.constant 0 : index
    %c0_1 = arith.constant 0 : index
    %3 = vector.load %arg6[%c0, %c0_1] : memref<32x256xf32, #tpu.memory_space<vmem>>, vector<32x256xf32>
    %c0_2 = arith.constant 0 : index
    %c0_3 = arith.constant 0 : index
    %4 = vector.load %arg3[%c0_2, %c0_3] : memref<32x128xbf16, #tpu.memory_space<vmem>>, vector<32x128xbf16>
    %c0_4 = arith.constant 0 : index
    %c0_5 = arith.constant 0 : index
    %5 = vector.load %arg4[%c0_4, %c0_5] : memref<128x256xbf16, #tpu.memory_space<vmem>>, vector<128x256xbf16>
    %cst = arith.constant dense<0.000000e+00> : vector<32x256xf32>
    %6 = tpu.matmul %4, %5, %cst {dimension_numbers = #tpu.dot_dimension_numbers<[1], [0], [0], [1], [0, 0, 1, 1], [], []>} : vector<32x128xbf16>, vector<128x256xbf16>, vector<32x256xf32> -> vector<32x256xf32>
    %7 = arith.addf %3, %6 : vector<32x256xf32>
    %c0_6 = arith.constant 0 : index
    %c0_7 = arith.constant 0 : index
    %8 = vector.load %arg6[%c0_6, %c0_7] : memref<32x256xf32, #tpu.memory_space<vmem>>, vector<32x256xf32>
    tpu.vector_store %arg6[%c0_6, %c0_7], %7 {strides = array<i32>} : memref<32x256xf32, #tpu.memory_space<vmem>>, vector<32x256xf32>,
    %c0_i32_8 = arith.constant 0 : i32
    %9 = arith.cmpi eq, %arg2, %c0_i32_8 : i32
    %10 = arith.extui %9 : i1 to i32
    %c0_i32_9 = arith.constant 0 : i32
    %11 = arith.cmpi ne, %10, %c0_i32_9 : i32
    scf.if %11 {
      %c0_10 = arith.constant 0 : index
      %c0_11 = arith.constant 0 : index
      %12 = vector.load %arg6[%c0_10, %c0_11] : memref<32x256xf32, #tpu.memory_space<vmem>>, vector<32x256xf32>
      %c0_12 = arith.constant 0 : index
      %c0_13 = arith.constant 0 : index
      %13 = vector.load %arg5[%c0_12, %c0_13] : memref<32x256xf32, #tpu.memory_space<vmem>>, vector<32x256xf32>
      tpu.vector_store %arg5[%c0_12, %c0_13], %12 {strides = array<i32>} : memref<32x256xf32, #tpu.memory_space<vmem>>, vector<32x256xf32>,
    } else {
    }
    return
  }
  func.func @transform_0(%arg0: i32, %arg1: i32, %arg2: i32) -> (i32, i32) {
    %c0_i32 = arith.constant 0 : i32
    return %arg0, %arg2 : i32, i32
  }
  func.func @transform_1(%arg0: i32, %arg1: i32, %arg2: i32) -> (i32, i32) {
    %c0_i32 = arith.constant 0 : i32
    return %arg2, %arg1 : i32, i32
  }
  func.func @transform_2(%arg0: i32, %arg1: i32, %arg2: i32) -> (i32, i32) {
    %c0_i32 = arith.constant 0 : i32
    return %arg0, %arg1 : i32, i32
  }
}

</mosaic_0001>

<bundles_post_ra>
// kernel: clip_caption_forward.18
= control target key start
LH: loop header
LB: loop body
LE: loop exit
PB: predicated region body
PF: predicated region fallthrough
CT: control target
= control target key end

     0   :  { %8 = vsyncpa [#allocation4], 0  ;;  %s582_s15 = smov [#allocation3]   ;;  %s583_s17 = smov 256   ;;  %s626_s0 = inlined_call_operand.vmem [shape: bf16[16,128], index: 0, kind: input, shape index: {}]   ;;  %s627_s1 = inlined_call_operand.hbm [shape: bf16[128,512], index: 1, kind: input, shape index: {}]   ;;  %s628_s2 = inlined_call_operand.vmem [shape: f32[1,512], index: 2, kind: input, shape index: {}]   ;;  %s629_s3 = inlined_call_operand.vmem [shape: bf16[16,512], index: 3, kind: output, shape index: {}]  }
   0x1   :  { %s15_s14 = sshll.u32 %s627_s1, 4  ;;  %s17_s16 = sshll.u32 %s582_s15, 4  ;;  %s16_s14 = int_to_ptr.hbm [resolvable:$true] %s15_s14  ;;  %s18_s16 = int_to_ptr.vmem [resolvable:$true] %s17_s16 }
   0x2   :  { %s584_s18 = smov 16  }
   0x3   :  { %23 = dma.hbm_to_vmem [thread:$0]  %s16_s14, 4096, %s18_s16, [#allocation4], %s583_s17, %s583_s17, %s584_s18  }
   0x4   :  { %580 = dma.done.wait [#allocation4], 4096  }
   0x5   :  { %581 = vsyncadd [#allocation4], 4294963200  ;;  %v490_v0 = vld [vmem:[#allocation3 + $0xe0] sm:$0xf]  ;;  %v535_v1 = vld [vmem:[#allocation3 + $0xec] sm:$0xf0] }
   0x6   :  { %v533_v2 = vld [vmem:[#allocation3 + $0xe4] sm:$0xf]  ;;  %v491_v3 = vor.u32 %v535_v1, %v490_v0  ;;  %v492_v4 = vld [vmem:[#allocation3 + $0xf0] sm:$0xf0]  ;;  %v498_v5 = vld [vmem:[#allocation3 + $0xe8] sm:$0xf] }
   0x7   :  { %v536_v6 = vld [vmem:[#allocation3 + $0xf4] sm:$0xf0]  ;;  %v495_v7 = vor.u32 %v533_v2, %v492_v4  ;;  %v534_v9 = vld [vmem:[#allocation3 + $0xec] sm:$0xf]  ;;  %v500_v10 = vld [vmem:[#allocation3 + $0xf8] sm:$0xf0] }
   0x8   :  { %v499_v8 = vor.u32 %v536_v6, %v498_v5  ;;  %v474_v11 = vld [vmem:[#allocation3 + $0xc0] sm:$0xf]  ;;  %250 = vmatpush.bf16.msra.mxu0 %v491_v3  ;;  %v503_v12 = vor.u32 %v534_v9, %v500_v10  ;;  %v531_v13 = vld [vmem:[#allocation3 + $0xcc] sm:$0xf0]  ;;  %v529_v14 = vld [vmem:[#allocation3 + $0xc4] sm:$0xf] }
   0x9   :  { %v476_v15 = vld [vmem:[#allocation3 + $0xd0] sm:$0xf0]  ;;  %264 = vmatpush.bf16.msra.mxu1 %v495_v7  ;;  %v475_v16 = vor.u32 %v531_v13, %v474_v11  ;;  %v482_v18 = vld [vmem:[#allocation3 + $0xc8] sm:$0xf]  ;;  %v532_v19 = vld [vmem:[#allocation3 + $0xd4] sm:$0xf0] }
   0xa   :  { %278 = vmatpush.bf16.msra.mxu2 %v499_v8  ;;  %v479_v17 = vor.u32 %v529_v14, %v476_v15  ;;  %v530_v20 = vld [vmem:[#allocation3 + $0xcc] sm:$0xf]  ;;  %292 = vmatpush.bf16.msra.mxu3 %v503_v12  ;;  %v483_v21 = vor.u32 %v532_v19, %v482_v18  ;;  %v484_v22 = vld [vmem:[#allocation3 + $0xd8] sm:$0xf0]  ;;  %v458_v23 = vld [vmem:[#allocation3 + $0xa0] sm:$0xf] }
   0xb   :  { %v527_v24 = vld [vmem:[#allocation3 + $0xac] sm:$0xf0]  ;;  %v487_v25 = vor.u32 %v530_v20, %v484_v22  ;;  %v525_v26 = vld [vmem:[#allocation3 + $0xa4] sm:$0xf]  ;;  %v460_v27 = vld [vmem:[#allocation3 + $0xb0] sm:$0xf0] }
   0xc   :  { %v466_v28 = vld [vmem:[#allocation3 + $0xa8] sm:$0xf]  ;;  %251 = vmatpush.bf16.msra.mxu0 %v475_v16  ;;  %v459_v29 = vor.u32 %v527_v24, %v458_v23  ;;  %v528_v30 = vld [vmem:[#allocation3 + $0xb4] sm:$0xf0]  ;;  %v526_v31 = vld [vmem:[#allocation3 + $0xac] sm:$0xf]  ;;  %v463_v33 = vor.u32 %v525_v26, %v460_v27 }
   0xd   :  { %v468_v32 = vld [vmem:[#allocation3 + $0xb8] sm:$0xf0]  ;;  %265 = vmatpush.bf16.msra.mxu1 %v479_v17  ;;  %v467_v34 = vor.u32 %v528_v30, %v466_v28  ;;  %v442_v35 = vld [vmem:[#allocation3 + $0x80] sm:$0xf]  ;;  %v523_v36 = vld [vmem:[#allocation3 + $0x8c] sm:$0xf0] }
   0xe   :  { %279 = vmatpush.bf16.msra.mxu2 %v483_v21  ;;  %v521_v37 = vld [vmem:[#allocation3 + $0x84] sm:$0xf]  ;;  %293 = vmatpush.bf16.msra.mxu3 %v487_v25  ;;  %v471_v38 = vor.u32 %v526_v31, %v468_v32  ;;  %v444_v39 = vld [vmem:[#allocation3 + $0x90] sm:$0xf0]  ;;  %v450_v40 = vld [vmem:[#allocation3 + $0x88] sm:$0xf]  ;;  %v443_v44 = vor.u32 %v523_v36, %v442_v35 }
   0xf   :  { %v524_v41 = vld [vmem:[#allocation3 + $0x94] sm:$0xf0]  ;;  %v522_v42 = vld [vmem:[#allocation3 + $0x8c] sm:$0xf]  ;;  %v452_v43 = vld [vmem:[#allocation3 + $0x98] sm:$0xf0]  ;;  %v447_v45 = vor.u32 %v521_v37, %v444_v39 }
  0x10   :  { %252 = vmatpush.bf16.msra.mxu0 %v459_v29  ;;  %v451_v46 = vor.u32 %v524_v41, %v450_v40  ;;  %v426_v47 = vld [vmem:[#allocation3 + $0x60] sm:$0xf]  ;;  %v519_v48 = vld [vmem:[#allocation3 + $0x6c] sm:$0xf0]  ;;  %v517_v49 = vld [vmem:[#allocation3 + $0x64] sm:$0xf]  ;;  %v455_v50 = vor.u32 %v522_v42, %v452_v43 }
  0x11   :  { %266 = vmatpush.bf16.msra.mxu1 %v463_v33  ;;  %v428_v51 = vld [vmem:[#allocation3 + $0x70] sm:$0xf0]  ;;  %v434_v52 = vld [vmem:[#allocation3 + $0x68] sm:$0xf]  ;;  %v520_v53 = vld [vmem:[#allocation3 + $0x74] sm:$0xf0]  ;;  %v427_v56 = vor.u32 %v519_v48, %v426_v47 }
  0x12   :  { %280 = vmatpush.bf16.msra.mxu2 %v467_v34  ;;  %294 = vmatpush.bf16.msra.mxu3 %v471_v38  ;;  %v518_v54 = vld [vmem:[#allocation3 + $0x6c] sm:$0xf]  ;;  %v436_v55 = vld [vmem:[#allocation3 + $0x78] sm:$0xf0]  ;;  %v431_v57 = vor.u32 %v517_v49, %v428_v51  ;;  %v435_v58 = vor.u32 %v520_v53, %v434_v52  ;;  %v410_v59 = vld [vmem:[#allocation3 + $0x40] sm:$0xf] }
  0x13   :  { %v515_v60 = vld [vmem:[#allocation3 + $0x4c] sm:$0xf0]  ;;  %v513_v61 = vld [vmem:[#allocation3 + $0x44] sm:$0xf]  ;;  %v439_v62 = vor.u32 %v518_v54, %v436_v55  ;;  %v412_v63 = vld [vmem:[#allocation3 + $0x50] sm:$0xf0] }
  0x14   :  { %253 = vmatpush.bf16.msra.mxu0 %v443_v44  ;;  %v418_v0 = vld [vmem:[#allocation3 + $0x48] sm:$0xf]  ;;  %v516_v1 = vld [vmem:[#allocation3 + $0x54] sm:$0xf0]  ;;  %v514_v2 = vld [vmem:[#allocation3 + $0x4c] sm:$0xf]  ;;  %v411_v4 = vor.u32 %v515_v60, %v410_v59  ;;  %v415_v5 = vor.u32 %v513_v61, %v412_v63 }
  0x15   :  { %267 = vmatpush.bf16.msra.mxu1 %v447_v45  ;;  %v420_v3 = vld [vmem:[#allocation3 + $0x58] sm:$0xf0]  ;;  %v419_v6 = vor.u32 %v516_v1, %v418_v0  ;;  %v394_v7 = vld [vmem:[#allocation3 + $0x20] sm:$0xf]  ;;  %v511_v8 = vld [vmem:[#allocation3 + $0x2c] sm:$0xf0] }
  0x16   :  { %281 = vmatpush.bf16.msra.mxu2 %v451_v46  ;;  %295 = vmatpush.bf16.msra.mxu3 %v455_v50  ;;  %v509_v9 = vld [vmem:[#allocation3 + $0x24] sm:$0xf]  ;;  %v423_v10 = vor.u32 %v514_v2, %v420_v3  ;;  %v396_v11 = vld [vmem:[#allocation3 + $0x30] sm:$0xf0]  ;;  %v402_v12 = vld [vmem:[#allocation3 + $0x28] sm:$0xf]  ;;  %v395_v16 = vor.u32 %v511_v8, %v394_v7 }
  0x17   :  { %v512_v13 = vld [vmem:[#allocation3 + $0x34] sm:$0xf0]  ;;  %v510_v14 = vld [vmem:[#allocation3 + $0x2c] sm:$0xf]  ;;  %v404_v15 = vld [vmem:[#allocation3 + $0x38] sm:$0xf0]  ;;  %v399_v17 = vor.u32 %v509_v9, %v396_v11 }
  0x18   :  { %254 = vmatpush.bf16.msra.mxu0 %v427_v56  ;;  %v403_v18 = vor.u32 %v512_v13, %v402_v12  ;;  %v378_v19 = vld [vmem:[#allocation3] sm:$0xf]  ;;  %v507_v20 = vld [vmem:[#allocation3 + $0xc] sm:$0xf0]  ;;  %v505_v21 = vld [vmem:[#allocation3 + $0x4] sm:$0xf]  ;;  %v407_v22 = vor.u32 %v510_v14, %v404_v15 }
  0x19   :  { %268 = vmatpush.bf16.msra.mxu1 %v431_v57  ;;  %v380_v23 = vld [vmem:[#allocation3 + $0x10] sm:$0xf0]  ;;  %v386_v24 = vld [vmem:[#allocation3 + $0x8] sm:$0xf]  ;;  %v508_v25 = vld [vmem:[#allocation3 + $0x14] sm:$0xf0]  ;;  %v379_v28 = vor.u32 %v507_v20, %v378_v19 }
  0x1a   :  { %282 = vmatpush.bf16.msra.mxu2 %v435_v58  ;;  %296 = vmatpush.bf16.msra.mxu3 %v439_v62  ;;  %v506_v26 = vld [vmem:[#allocation3 + $0xc] sm:$0xf]  ;;  %v388_v27 = vld [vmem:[#allocation3 + $0x18] sm:$0xf0]  ;;  %v383_v29 = vor.u32 %v505_v21, %v380_v23  ;;  %v387_v30 = vor.u32 %v508_v25, %v386_v24  ;;  %v504_v32 = vld [vmem:[%s626_s0] sm:$0xff] }
  0x1b   :  { %v391_v31 = vor.u32 %v506_v26, %v388_v27  ;;  %v333_v33 = vld [vmem:[%s628_s2] sm:$0xf] }
  0x1c   :  { %255 = vmatpush.bf16.msra.mxu0 %v411_v4  ;;  %v335_v34 = vperm.slane %v333_v33, 0  ;;  %v336_v35 = vperm.slane %v333_v33, 1  ;;  %v337_v40 = vperm.slane %v333_v33, 2  ;;  %v338_v41 = vperm.slane %v333_v33, 3 }
  0x1d   :  { %269 = vmatpush.bf16.msra.mxu1 %v415_v5 }
  0x1e   :  { %283 = vmatpush.bf16.msra.mxu2 %v419_v6  ;;  %297 = vmatpush.bf16.msra.mxu3 %v423_v10 }
  0x20   :  { %256 = vmatpush.bf16.msra.mxu0 %v395_v16 }
  0x21   :  { %270 = vmatpush.bf16.msra.mxu1 %v399_v17 }
  0x22   :  { %284 = vmatpush.bf16.msra.mxu2 %v403_v18  ;;  %298 = vmatpush.bf16.msra.mxu3 %v407_v22 }
  0x24   :  { %257 = vmatpush.bf16.msra.mxu0 %v379_v28 }
  0x25   :  { %271 = vmatpush.bf16.msra.mxu1 %v383_v29 }
  0x26   :  { %285 = vmatpush.bf16.msra.mxu2 %v387_v30  ;;  %299 = vmatpush.bf16.msra.mxu3 %v391_v31 }
  0x27   :  { %258 = vmatmul.bf16.vlgmr.msra.gmra.mxu0 %v504_v32 }
  0x28   :  { %272 = vmatmul.bf16.vlgmr.msra.gmra.mxu1 %v504_v32 }
  0x29   :  { %286 = vmatmul.bf16.vlgmr.msra.gmra.mxu2 %v504_v32  ;;  %300 = vmatmul.bf16.vlgmr.msra.gmra.mxu3 %v504_v32 }
  0xa4   :  { %v259_v36 = vpop.f32.mrf.mxu0 }
  0xa5   :  { %v343_v37 = vadd.f32 %v335_v34, %v259_v36  ;;  %v273_v38 = vpop.f32.mrf.mxu1 }
  0xa6   :  { %v344_v39 = vadd.f32 %v336_v35, %v273_v38 }
  0xa7   :  { %540 = vtanh.f32 %v343_v37 }
  0xa8   :  { %542 = vtanh.f32 %v344_v39 }
  0xac   :  { %v287_v42 = vpop.f32.mrf.mxu2  ;;  %v301_v44 = vpop.f32.mrf.mxu3 }
  0xad   :  { %v345_v43 = vadd.f32 %v337_v40, %v287_v42  ;;  %v261_v45 = vpop.f32.mrf.mxu0  ;;  %v541_v46 = vpop.eup %540  ;;  %v346_v47 = vadd.f32 %v338_v41, %v301_v44 }
  0xae   :  { %v347_v48 = vadd.f32 %v335_v34, %v261_v45  ;;  %v275_v49 = vpop.f32.mrf.mxu1  ;;  %v543_v50 = vpop.eup %542 }
  0xaf   :  { %544 = vtanh.f32 %v345_v43  ;;  %v348_v51 = vadd.f32 %v336_v35, %v275_v49  ;;  %v359_v52 = vpack.c.bf16 %v543_v50, %v541_v46 }
  0xb0   :  { %546 = vtanh.f32 %v346_v47 }
  0xb1   :  { %548 = vtanh.f32 %v347_v48  ;;  %363 = vst [vmem:[%s629_s3] sm:$0xff] %v359_v52 }
  0xb2   :  { %550 = vtanh.f32 %v348_v51 }
  0xb4   :  { %v289_v53 = vpop.f32.mrf.mxu2  ;;  %v303_v56 = vpop.f32.mrf.mxu3 }
  0xb5   :  { %v545_v54 = vpop.eup %544  ;;  %v349_v55 = vadd.f32 %v337_v40, %v289_v53  ;;  %v350_v58 = vadd.f32 %v338_v41, %v303_v56 }
  0xb6   :  { %v547_v57 = vpop.eup %546 }
  0xb7   :  { %v549_v59 = vpop.eup %548  ;;  %v360_v60 = vpack.c.bf16 %v547_v57, %v545_v54  ;;  %552 = vtanh.f32 %v349_v55 }
  0xb8   :  { %v551_v61 = vpop.eup %550  ;;  %554 = vtanh.f32 %v350_v58 }
  0xb9   :  { %364 = vst [vmem:[%s629_s3 + $0x8] sm:$0xff] %v360_v60  ;;  %v361_v62 = vpack.c.bf16 %v551_v61, %v549_v59 }
  0xbb   :  { %365 = vst [vmem:[%s629_s3 + $0x10] sm:$0xff] %v361_v62 }
  0xbd   :  { %v553_v63 = vpop.eup %552 }
  0xbe   :  { %v555_v0 = vpop.eup %554 }
  0xbf   :  { %v362_v1 = vpack.c.bf16 %v555_v0, %v553_v63 }
  0xc1   :  { %366 = vst [vmem:[%s629_s3 + $0x18] sm:$0xff] %v362_v1 }
  0xc2   :  { %371 = vsyncpa [#allocation4], 1 }

// kernel: clip_caption_forward.20
= control target key start
LH: loop header
LB: loop body
LE: loop exit
PB: predicated region body
PF: predicated region fallthrough
CT: control target
= control target key end

     0   :  { %v170_v6 = vmov 128.0   ;;  %s229_s0 = inlined_call_operand.vmem [shape: bf16[32,128], index: 0, kind: input, shape index: {}]   ;;  %s230_s1 = inlined_call_operand.vmem [shape: f32[1,128], index: 1, kind: input, shape index: {}]   ;;  %s231_s2 = inlined_call_operand.vmem [shape: f32[1,128], index: 2, kind: input, shape index: {}]   ;;  %s232_s3 = inlined_call_operand.vmem [shape: bf16[32,128], index: 3, kind: output, shape index: {}]  }
   0x1   :  { %v155_v0 = vld [vmem:[%s229_s0 + $0x8] sm:$0xff]   ;;  %v138_v1 = vld [vmem:[%s229_s0] sm:$0xff]   ;;  %160 = vrcp.f32 %v170_v6 }
   0x2   :  { %v143_v2 = vunpack.c.l.bf16 %v155_v0  ;;  %v139_v3 = vunpack.c.l.bf16 %v138_v1  ;;  %v144_v4 = vunpack.c.h.bf16 %v155_v0  ;;  %v140_v5 = vunpack.c.h.bf16 %v138_v1  ;;  %v158_v0 = vld [vmem:[%s230_s1] ss:$0 sm:$0xff] }
   0x4   :  { %26 = vadd.xlane.f32.xlu1 %v143_v2  ;;  %22 = vadd.xlane.f32.xlu0 %v139_v3 }
   0x7   :  { %v161_v7 = vpop.eup %160 }
   0x8   :  { %v31_v8 = vmul.f32 128.0, %v161_v7  ;;  %vm35_vm0 = vweird.f32 %v161_v7 }
   0xa   :  { %v32_v9 = vsub.f32 1.0, %v31_v8 }
   0xc   :  { %28 = vadd.xlane.f32.xlu1 %v144_v4  ;;  %24 = vadd.xlane.f32.xlu0 %v140_v5  ;;  %v33_v10 = vmul.f32 %v161_v7, %v32_v9 }
   0xe   :  { %v34_v11 = vadd.f32 %v161_v7, %v33_v10 }
  0x10   :  { %v36_v12 = vsel %vm35_vm0, %v161_v7, %v34_v11  ;;  %v159_v7 = vld [vmem:[%s231_s2] ss:$0 sm:$0xff] }
  0x77   :  { %v27_v13 = vpop.xlane.xlu1 %26  ;;  %v23_v14 = vpop.xlane.xlu0 %22 }
  0x78   :  { %v39_v15 = vmul.f32 %v36_v12, %v27_v13  ;;  %v37_v16 = vmul.f32 %v36_v12, %v23_v14 }
  0x7a   :  { %v197_v17 = vsub.f32 %v143_v2, %v39_v15  ;;  %v199_v18 = vsub.f32 %v139_v3, %v37_v16 }
  0x7c   :  { %v47_v19 = vmul.f32 %v197_v17, %v197_v17  ;;  %v45_v20 = vmul.f32 %v199_v18, %v199_v18 }
  0x7e   :  { %53 = vadd.xlane.f32.xlu0 %v47_v19  ;;  %49 = vadd.xlane.f32.xlu2 %v45_v20 }
  0x7f   :  { %v29_v21 = vpop.xlane.xlu1 %28  ;;  %v25_v22 = vpop.xlane.xlu0 %24 }
  0x80   :  { %v40_v23 = vmul.f32 %v36_v12, %v29_v21  ;;  %v38_v24 = vmul.f32 %v36_v12, %v25_v22 }
  0x82   :  { %v205_v25 = vsub.f32 %v144_v4, %v40_v23  ;;  %v207_v26 = vsub.f32 %v140_v5, %v38_v24 }
  0x84   :  { %v48_v27 = vmul.f32 %v205_v25, %v205_v25  ;;  %v46_v28 = vmul.f32 %v207_v26, %v207_v26 }
  0x86   :  { %55 = vadd.xlane.f32.xlu1 %v48_v27  ;;  %51 = vadd.xlane.f32.xlu2 %v46_v28 }
  0xf1   :  { %v50_v29 = vpop.xlane.xlu2 %49  ;;  %v54_v30 = vpop.xlane.xlu0 %53 }
  0xf2   :  { %v57_v31 = vmul.f32 %v50_v29, %v36_v12  ;;  %v59_v32 = vmul.f32 %v54_v30, %v36_v12 }
  0xf4   :  { %v61_v33 = vadd.f32 1e-05, %v57_v31  ;;  %v63_v34 = vadd.f32 1e-05, %v59_v32 }
  0xf6   :  { %162 = vrsqrt.f32 %v61_v33  ;;  %vm91_vm3 = vweird.f32 %v63_v34  ;;  %vm71_vm4 = vweird.f32 %v61_v33 }
  0xf7   :  { %164 = vrsqrt.f32 %v63_v34 }
  0xf9   :  { %v56_v35 = vpop.xlane.xlu1 %55  ;;  %v52_v36 = vpop.xlane.xlu2 %51 }
  0xfa   :  { %v60_v37 = vmul.f32 %v56_v35, %v36_v12  ;;  %v58_v38 = vmul.f32 %v52_v36, %v36_v12 }
  0xfc   :  { %v163_v39 = vpop.eup %162  ;;  %v64_v40 = vadd.f32 1e-05, %v60_v37  ;;  %v62_v41 = vadd.f32 1e-05, %v58_v38 }
  0xfd   :  { %v165_v42 = vpop.eup %164  ;;  %v66_v43 = vmul.f32 %v163_v39, %v61_v33  ;;  %vm72_vm2 = vweird.f32 %v163_v39 }
  0xfe   :  { %v86_v44 = vmul.f32 %v165_v42, %v63_v34  ;;  %166 = vrsqrt.f32 %v64_v40  ;;  %vm92_vm1 = vweird.f32 %v165_v42  ;;  %vm73_vm6 = vmor %vm71_vm4, %vm72_vm2  ;;  %vm101_vm9 = vweird.f32 %v64_v40 }
  0xff   :  { %v67_v45 = vmul.f32 %v163_v39, %v66_v43  ;;  %168 = vrsqrt.f32 %v62_v41  ;;  %vm93_vm5 = vmor %vm91_vm3, %vm92_vm1  ;;  %vm81_vm11 = vweird.f32 %v62_v41 }
 0x100   :  { %v87_v46 = vmul.f32 %v165_v42, %v86_v44 }
 0x101   :  { %v68_v47 = vmul.f32 0.5, %v67_v45 }
 0x102   :  { %v88_v48 = vmul.f32 0.5, %v87_v46 }
 0x103   :  { %v69_v49 = vsub.f32 1.5, %v68_v47 }
 0x104   :  { %v167_v50 = vpop.eup %166  ;;  %v89_v51 = vsub.f32 1.5, %v88_v48 }
 0x105   :  { %v169_v52 = vpop.eup %168  ;;  %v96_v53 = vmul.f32 %v167_v50, %v64_v40  ;;  %v70_v54 = vmul.f32 %v163_v39, %v69_v49  ;;  %vm102_vm7 = vweird.f32 %v167_v50 }
 0x106   :  { %v90_v55 = vmul.f32 %v165_v42, %v89_v51  ;;  %v76_v56 = vmul.f32 %v169_v52, %v62_v41  ;;  %vm82_vm8 = vweird.f32 %v169_v52  ;;  %vm103_vm10 = vmor %vm101_vm9, %vm102_vm7 }
 0x107   :  { %v97_v57 = vmul.f32 %v167_v50, %v96_v53  ;;  %v74_v61 = vsel %vm73_vm6, %v163_v39, %v70_v54  ;;  %vm83_vm12 = vmor %vm81_vm11, %vm82_vm8 }
 0x108   :  { %v77_v58 = vmul.f32 %v169_v52, %v76_v56  ;;  %v94_v59 = vsel %vm93_vm5, %v165_v42, %v90_v55  ;;  %v105_v3 = vmul.f32 %v74_v61, %v199_v18 }
 0x109   :  { %v98_v60 = vmul.f32 0.5, %v97_v57  ;;  %v107_v1 = vmul.f32 %v94_v59, %v197_v17 }
 0x10a   :  { %v78_v62 = vmul.f32 0.5, %v77_v58  ;;  %v113_v11 = vmul.f32 %v158_v0, %v105_v3 }
 0x10b   :  { %v99_v63 = vsub.f32 1.5, %v98_v60  ;;  %v115_v8 = vmul.f32 %v158_v0, %v107_v1 }
 0x10c   :  { %v79_v2 = vsub.f32 1.5, %v78_v62  ;;  %v121_v17 = vadd.f32 %v159_v7, %v113_v11 }
 0x10d   :  { %v100_v4 = vmul.f32 %v167_v50, %v99_v63  ;;  %v123_v15 = vadd.f32 %v159_v7, %v115_v8 }
 0x10e   :  { %v80_v5 = vmul.f32 %v169_v52, %v79_v2 }
 0x10f   :  { %v104_v6 = vsel %vm103_vm10, %v167_v50, %v100_v4 }
 0x110   :  { %v108_v9 = vmul.f32 %v104_v6, %v205_v25  ;;  %v84_v10 = vsel %vm83_vm12, %v169_v52, %v80_v5 }
 0x111   :  { %v106_v12 = vmul.f32 %v84_v10, %v207_v26 }
 0x112   :  { %v116_v13 = vmul.f32 %v158_v0, %v108_v9 }
 0x113   :  { %v114_v14 = vmul.f32 %v158_v0, %v106_v12 }
 0x114   :  { %v124_v16 = vadd.f32 %v159_v7, %v116_v13 }
 0x115   :  { %v122_v18 = vadd.f32 %v159_v7, %v114_v14 }
 0x116   :  { %v153_v19 = vpack.c.bf16 %v124_v16, %v123_v15 }
 0x117   :  { %v148_v20 = vpack.c.bf16 %v122_v18, %v121_v17 }
 0x118   :  { %156 = vst [vmem:[%s232_s3 + $0x8] sm:$0xff] %v153_v19  }
 0x119   :  { %149 = vst [vmem:[%s232_s3] sm:$0xff] %v148_v20  }

// kernel: clip_caption_forward.21
= control target key start
LH: loop header
LB: loop body
LE: loop exit
PB: predicated region body
PF: predicated region fallthrough
CT: control target
= control target key end

     0   :  { %s689_s1 = inlined_call_operand.vmem [shape: bf16[128,384], index: 1, kind: input, shape index: {}]   ;;  %s690_s0 = inlined_call_operand.vmem [shape: bf16[32,128], index: 0, kind: input, shape index: {}]   ;;  %s691_s2 = inlined_call_operand.vmem [shape: f32[1,384], index: 2, kind: input, shape index: {}]   ;;  %s692_s3 = inlined_call_operand.vmem [shape: bf16[32,384], index: 3, kind: output, shape index: {}]  }
   0x1   :  { %v448_v0 = vld [vmem:[%s689_s1 + $0xa8] sm:$0xf]  ;;  %v482_v1 = vld [vmem:[%s689_s1 + $0xb0] sm:$0xf0]  ;;  %v481_v2 = vld [vmem:[%s689_s1 + $0xac] sm:$0xf] }
   0x2   :  { %v449_v3 = vor.u32 %v482_v1, %v448_v0  ;;  %v450_v4 = vld [vmem:[%s689_s1 + $0xb4] sm:$0xf0]  ;;  %v456_v5 = vld [vmem:[%s689_s1 + $0xb0] sm:$0xf]  ;;  %v483_v6 = vld [vmem:[%s689_s1 + $0xb8] sm:$0xf0] }
   0x3   :  { %v453_v7 = vor.u32 %v481_v2, %v450_v4  ;;  %v457_v8 = vor.u32 %v483_v6, %v456_v5  ;;  %v436_v9 = vld [vmem:[%s689_s1 + $0x90] sm:$0xf]  ;;  %v479_v10 = vld [vmem:[%s689_s1 + $0x98] sm:$0xf0]  ;;  %v478_v11 = vld [vmem:[%s689_s1 + $0x94] sm:$0xf] }
   0x4   :  { %218 = vmatpush.bf16.msra.mxu0 %v449_v3  ;;  %v437_v12 = vor.u32 %v479_v10, %v436_v9  ;;  %v438_v13 = vld [vmem:[%s689_s1 + $0x9c] sm:$0xf0]  ;;  %v444_v14 = vld [vmem:[%s689_s1 + $0x98] sm:$0xf]  ;;  %v480_v15 = vld [vmem:[%s689_s1 + $0xa0] sm:$0xf0]  ;;  %484 = vmatpush.bf16.msra.mxu3 %v449_v3 }
   0x5   :  { %237 = vmatpush.bf16.msra.mxu1 %v453_v7  ;;  %256 = vmatpush.bf16.msra.mxu2 %v457_v8  ;;  %v441_v16 = vor.u32 %v478_v11, %v438_v13  ;;  %v445_v17 = vor.u32 %v480_v15, %v444_v14  ;;  %v424_v18 = vld [vmem:[%s689_s1 + $0x78] sm:$0xf]  ;;  %v476_v19 = vld [vmem:[%s689_s1 + $0x80] sm:$0xf0]  ;;  %v475_v20 = vld [vmem:[%s689_s1 + $0x7c] sm:$0xf] }
   0x6   :  { %v426_v21 = vld [vmem:[%s689_s1 + $0x84] sm:$0xf0]  ;;  %v432_v22 = vld [vmem:[%s689_s1 + $0x80] sm:$0xf]  ;;  %v477_v23 = vld [vmem:[%s689_s1 + $0x88] sm:$0xf0]  ;;  %v425_v24 = vor.u32 %v476_v19, %v424_v18 }
   0x7   :  { %v429_v25 = vor.u32 %v475_v20, %v426_v21  ;;  %v433_v26 = vor.u32 %v477_v23, %v432_v22  ;;  %v412_v27 = vld [vmem:[%s689_s1 + $0x60] sm:$0xf]  ;;  %v473_v28 = vld [vmem:[%s689_s1 + $0x68] sm:$0xf0]  ;;  %v472_v29 = vld [vmem:[%s689_s1 + $0x64] sm:$0xf] }
   0x8   :  { %219 = vmatpush.bf16.msra.mxu0 %v437_v12  ;;  %485 = vmatpush.bf16.msra.mxu3 %v437_v12  ;;  %v414_v30 = vld [vmem:[%s689_s1 + $0x6c] sm:$0xf0]  ;;  %v420_v31 = vld [vmem:[%s689_s1 + $0x68] sm:$0xf]  ;;  %v474_v32 = vld [vmem:[%s689_s1 + $0x70] sm:$0xf0]  ;;  %v413_v33 = vor.u32 %v473_v28, %v412_v27 }
   0x9   :  { %238 = vmatpush.bf16.msra.mxu1 %v441_v16  ;;  %257 = vmatpush.bf16.msra.mxu2 %v445_v17  ;;  %v417_v34 = vor.u32 %v472_v29, %v414_v30  ;;  %v421_v35 = vor.u32 %v474_v32, %v420_v31  ;;  %v400_v36 = vld [vmem:[%s689_s1 + $0x48] sm:$0xf]  ;;  %v470_v37 = vld [vmem:[%s689_s1 + $0x50] sm:$0xf0]  ;;  %v469_v38 = vld [vmem:[%s689_s1 + $0x4c] sm:$0xf] }
   0xa   :  { %v402_v39 = vld [vmem:[%s689_s1 + $0x54] sm:$0xf0]  ;;  %v408_v40 = vld [vmem:[%s689_s1 + $0x50] sm:$0xf]  ;;  %v471_v41 = vld [vmem:[%s689_s1 + $0x58] sm:$0xf0]  ;;  %v401_v42 = vor.u32 %v470_v37, %v400_v36 }
   0xb   :  { %v405_v43 = vor.u32 %v469_v38, %v402_v39  ;;  %v409_v44 = vor.u32 %v471_v41, %v408_v40  ;;  %v388_v45 = vld [vmem:[%s689_s1 + $0x30] sm:$0xf]  ;;  %v467_v46 = vld [vmem:[%s689_s1 + $0x38] sm:$0xf0]  ;;  %v466_v47 = vld [vmem:[%s689_s1 + $0x34] sm:$0xf] }
   0xc   :  { %220 = vmatpush.bf16.msra.mxu0 %v425_v24  ;;  %486 = vmatpush.bf16.msra.mxu3 %v425_v24  ;;  %v390_v48 = vld [vmem:[%s689_s1 + $0x3c] sm:$0xf0]  ;;  %v396_v49 = vld [vmem:[%s689_s1 + $0x38] sm:$0xf]  ;;  %v468_v50 = vld [vmem:[%s689_s1 + $0x40] sm:$0xf0]  ;;  %v389_v51 = vor.u32 %v467_v46, %v388_v45 }
   0xd   :  { %239 = vmatpush.bf16.msra.mxu1 %v429_v25  ;;  %258 = vmatpush.bf16.msra.mxu2 %v433_v26  ;;  %v393_v52 = vor.u32 %v466_v47, %v390_v48  ;;  %v397_v53 = vor.u32 %v468_v50, %v396_v49  ;;  %v376_v54 = vld [vmem:[%s689_s1 + $0x18] sm:$0xf]  ;;  %v464_v55 = vld [vmem:[%s689_s1 + $0x20] sm:$0xf0]  ;;  %v463_v56 = vld [vmem:[%s689_s1 + $0x1c] sm:$0xf] }
   0xe   :  { %v378_v57 = vld [vmem:[%s689_s1 + $0x24] sm:$0xf0]  ;;  %v384_v58 = vld [vmem:[%s689_s1 + $0x20] sm:$0xf]  ;;  %v465_v59 = vld [vmem:[%s689_s1 + $0x28] sm:$0xf0]  ;;  %v377_v60 = vor.u32 %v464_v55, %v376_v54 }
   0xf   :  { %v381_v61 = vor.u32 %v463_v56, %v378_v57  ;;  %v385_v62 = vor.u32 %v465_v59, %v384_v58  ;;  %v364_v63 = vld [vmem:[%s689_s1] sm:$0xf]  ;;  %v461_v0 = vld [vmem:[%s689_s1 + $0x8] sm:$0xf0]  ;;  %v460_v1 = vld [vmem:[%s689_s1 + $0x4] sm:$0xf] }
  0x10   :  { %221 = vmatpush.bf16.msra.mxu0 %v413_v33  ;;  %487 = vmatpush.bf16.msra.mxu3 %v413_v33  ;;  %v366_v2 = vld [vmem:[%s689_s1 + $0xc] sm:$0xf0]  ;;  %v372_v3 = vld [vmem:[%s689_s1 + $0x8] sm:$0xf]  ;;  %v462_v4 = vld [vmem:[%s689_s1 + $0x10] sm:$0xf0]  ;;  %v365_v5 = vor.u32 %v461_v0, %v364_v63 }
  0x11   :  { %240 = vmatpush.bf16.msra.mxu1 %v417_v34  ;;  %259 = vmatpush.bf16.msra.mxu2 %v421_v35  ;;  %v369_v6 = vor.u32 %v460_v1, %v366_v2  ;;  %v373_v7 = vor.u32 %v462_v4, %v372_v3  ;;  %v458_v8 = vld [vmem:[%s690_s0] sm:$0xff]  ;;  %v459_v9 = vld [vmem:[%s690_s0 + $0x8] sm:$0xff] }
  0x12   :  { %v314_v10 = vld [vmem:[%s691_s2] sm:$0x7] }
  0x13   :  { %v316_v11 = vperm.slane %v314_v10, 0  ;;  %v317_v12 = vperm.slane %v314_v10, 1  ;;  %v318_v18 = vperm.slane %v314_v10, 2 }
  0x14   :  { %222 = vmatpush.bf16.msra.mxu0 %v401_v42  ;;  %488 = vmatpush.bf16.msra.mxu3 %v401_v42 }
  0x15   :  { %241 = vmatpush.bf16.msra.mxu1 %v405_v43  ;;  %260 = vmatpush.bf16.msra.mxu2 %v409_v44 }
  0x18   :  { %223 = vmatpush.bf16.msra.mxu0 %v389_v51  ;;  %489 = vmatpush.bf16.msra.mxu3 %v389_v51 }
  0x19   :  { %242 = vmatpush.bf16.msra.mxu1 %v393_v52  ;;  %261 = vmatpush.bf16.msra.mxu2 %v397_v53 }
  0x1c   :  { %224 = vmatpush.bf16.msra.mxu0 %v377_v60  ;;  %490 = vmatpush.bf16.msra.mxu3 %v377_v60 }
  0x1d   :  { %243 = vmatpush.bf16.msra.mxu1 %v381_v61  ;;  %262 = vmatpush.bf16.msra.mxu2 %v385_v62 }
  0x20   :  { %225 = vmatpush.bf16.msra.mxu0 %v365_v5  ;;  %491 = vmatpush.bf16.msra.mxu3 %v365_v5 }
  0x21   :  { %244 = vmatpush.bf16.msra.mxu1 %v369_v6  ;;  %263 = vmatpush.bf16.msra.mxu2 %v373_v7 }
  0x23   :  { %226 = vmatmul.bf16.vlgmr.msra.gmra.mxu0 %v458_v8  ;;  %231 = vmatmul.bf16.vlgmr.msra.gmra.mxu3 %v459_v9 }
  0x24   :  { %245 = vmatmul.bf16.vlgmr.msra.gmra.mxu1 %v458_v8  ;;  %264 = vmatmul.bf16.vlgmr.msra.gmra.mxu2 %v458_v8 }
  0x34   :  { %250 = vmatmul.bf16.gmra.mxu1 %v459_v9  ;;  %269 = vmatmul.bf16.gmra.mxu2 %v459_v9 }
  0xa0   :  { %v227_v13 = vpop.f32.mrf.mxu0 }
  0xa1   :  { %v322_v14 = vadd.f32 %v316_v11, %v227_v13  ;;  %v246_v15 = vpop.f32.mrf.mxu1 }
  0xa2   :  { %v323_v16 = vadd.f32 %v317_v12, %v246_v15 }
  0xa4   :  { %v334_v17 = vpack.c.bf16 %v323_v16, %v322_v14 }
  0xa6   :  { %342 = vst [vmem:[%s692_s3] sm:$0xff] %v334_v17  ;;  %v232_v27 = vpop.f32.mrf.mxu3 }
  0xa7   :  { %v265_v19 = vpop.f32.mrf.mxu2  ;;  %v328_v29 = vadd.f32 %v316_v11, %v232_v27 }
  0xa8   :  { %v324_v20 = vadd.f32 %v318_v18, %v265_v19  ;;  %v229_v21 = vpop.f32.mrf.mxu0 }
  0xa9   :  { %v325_v22 = vadd.f32 %v316_v11, %v229_v21  ;;  %v248_v23 = vpop.f32.mrf.mxu1 }
  0xaa   :  { %v335_v24 = vpack.c.bf16 %v324_v20, %v324_v20  ;;  %v326_v25 = vadd.f32 %v317_v12, %v248_v23 }
  0xac   :  { %343 = vst [vmem:[%s692_s3 + $0x8] sm:$0xf] %v335_v24  ;;  %v336_v26 = vpack.c.bf16 %v326_v25, %v325_v22 }
  0xae   :  { %344 = vst [vmem:[%s692_s3 + $0xc] sm:$0xff] %v336_v26  ;;  %v234_v35 = vpop.f32.mrf.mxu3 }
  0xaf   :  { %v267_v28 = vpop.f32.mrf.mxu2  ;;  %v331_v39 = vadd.f32 %v316_v11, %v234_v35 }
  0xb0   :  { %v327_v30 = vadd.f32 %v318_v18, %v267_v28 }
  0xb1   :  { %v251_v31 = vpop.f32.mrf.mxu1 }
  0xb2   :  { %v337_v32 = vpack.c.bf16 %v327_v30, %v327_v30  ;;  %v329_v33 = vadd.f32 %v317_v12, %v251_v31 }
  0xb4   :  { %345 = vst [vmem:[%s692_s3 + $0x14] sm:$0xf] %v337_v32  ;;  %v338_v34 = vpack.c.bf16 %v329_v33, %v328_v29 }
  0xb6   :  { %346 = vst [vmem:[%s692_s3 + $0x18] sm:$0xff] %v338_v34 }
  0xb7   :  { %v270_v36 = vpop.f32.mrf.mxu2 }
  0xb8   :  { %v330_v37 = vadd.f32 %v318_v18, %v270_v36 }
  0xb9   :  { %v253_v38 = vpop.f32.mrf.mxu1 }
  0xba   :  { %v339_v40 = vpack.c.bf16 %v330_v37, %v330_v37  ;;  %v332_v41 = vadd.f32 %v317_v12, %v253_v38 }
  0xbc   :  { %347 = vst [vmem:[%s692_s3 + $0x20] sm:$0xf] %v339_v40  ;;  %v340_v42 = vpack.c.bf16 %v332_v41, %v331_v39 }
  0xbe   :  { %348 = vst [vmem:[%s692_s3 + $0x24] sm:$0xff] %v340_v42 }
  0xbf   :  { %v272_v43 = vpop.f32.mrf.mxu2 }
  0xc0   :  { %v333_v44 = vadd.f32 %v318_v18, %v272_v43 }
  0xc2   :  { %v341_v45 = vpack.c.bf16 %v333_v44, %v333_v44 }
  0xc4   :  { %349 = vst [vmem:[%s692_s3 + $0x2c] sm:$0xf] %v341_v45 }

// kernel: clip_caption_forward.19
= control target key start
LH: loop header
LB: loop body
LE: loop exit
PB: predicated region body
PF: predicated region fallthrough
CT: control target
= control target key end

     0   :  { %8 = vsyncpa [#allocation4], 0  ;;  %s2777_s0 = inlined_call_operand.vmem [shape: bf16[16,512], index: 0, kind: input, shape index: {}]   ;;  %s2778_s1 = inlined_call_operand.hbm [shape: bf16[512,1024], index: 1, kind: input, shape index: {}]   ;;  %s2779_s2 = inlined_call_operand.vmem [shape: f32[1,1024], index: 2, kind: input, shape index: {}]   ;;  %s2780_s3 = inlined_call_operand.vmem [shape: bf16[16,1024], index: 3, kind: output, shape index: {}]  }
   0x1   :  { %10 = vsyncpa [#allocation4 + $0x1], 0  ;;  %s2353_s12 = smov 0   ;;  %s2355_s13 = smov 0  }
   0x2   :  { %s2357_s14 = smov 0   ;;  %s2359_s15 = smov 0  }
   0x3   :  { %s2361_s16 = smov 0   ;;  %s2363_s17 = smov 0  }
   0x4 LB: > { %s1511_s18 = sadd.s32 4294967295, %s2328_s17   ;;  %s31_s19 = sadd.s32 1, %s2324_s16  ;;  %s2328_s17 = sphi %s2363_s17, %s16_s17   ;;  %s2324_s16 = sphi %s2361_s16, %s2788_s16   ;;  %s2320_s15 = sphi %s2359_s15, %s2787_s15   ;;  %s2316_s14 = sphi %s2357_s14, %s2786_s14   ;;  %s2312_s13 = sphi %s2355_s13, %s2785_s13   ;;  %s2308_s12 = sphi %s2353_s12, %s2784_s12  }
   0x5   : > { %p33_p0 = scmp.ge.s32.totalorder %s31_s19, 2  ;;  %s72_s20 = sadd.s32 1, %s2316_s14 }
   0x6   : > { %p79_p1 = scmp.ne.s32.totalorder %s2316_s14, %s2312_s13  ;;  %p80_p2 = scmp.eq.s32.totalorder %s2328_s17, 0 }
   0x7   : > { %s2790_s19 = smov (%p33_p0, %s31_s19), 0  ;;  %p85_p4 = scmp.ne.s32.totalorder %s2312_s13, %s2308_s12 }
   0x8   : > { %p2389_p3 = por %p80_p2, %p79_p1  ;;  %s68_s22 = ssub.s32 %s2324_s16, %s2790_s19 }
   0x9   : > { %p86_p5 = scmp.eq.s32.totalorder %s1511_s18, 0  ;;  %p70_p6 = scmp.eq.s32.totalorder %s68_s22, 0 }
   0xa   : > { %p137_p7 = scmp.eq.s32.totalorder %s1511_s18, 1  ;;  %p2196_p10 = scmp.lt.s32.totalorder %s2328_s17, 2 }
   0xb   : > { %p2396_p8 = por %p86_p5, %p85_p4  ;;  %s178_s26 = sand.u32 1, %s2316_s14  }
   0xc   : > { %s2401_s24 = scalar_select %p70_p6, %s2316_s14, %s72_s20  }
   0xd   : > { %p2403_p9 = por %p137_p7, %p79_p1  ;;  %s2056_s27 = sshll.u32 %s2324_s16, 4 }
   0xe   : > { %s1516_s28 = sshll.u32 %s178_s26, 10  ;;  %s190_s4 = scalar_lea.hbm %s2778_s1, %s2056_s27 }
   0xf   : > { %s191_s5 = sshll.u32 %s190_s4, 4  ;;  %s182_s6 = scalar_lea.vmem [#allocation3], %s1516_s28  ;;  %s192_s5 = int_to_ptr.hbm [resolvable:$true] %s191_s5 }
  0x10   : > { %s193_s7 = sshll.u32 %s182_s6, 4  ;;  %p2193_p11 = pnand %p2196_p10, %p2389_p3  ;;  %s194_s7 = int_to_ptr.vmem [resolvable:$true] %s193_s7 }
  0x11   : > { %p1519_p12 = scmp.ge.s32.totalorder %s2328_s17, 1  ;;  %s179_s8 = scalar_lea.sflag [#allocation4], %s178_s26 }
  0x12   : > { %s2330_s9 = smov 512   ;;  %s2331_s10 = smov 256  }
  0x13   : > { %s2332_s11 = smov 16   ;;  %p209_p13 = scmp.lt.s32.totalorder %s2328_s17, 3 }
  0x14   : > { %2195 = dma.hbm_to_vmem [thread:$0]  (!%p2193_p11), %s192_s5, 16384, %s194_s7, %s179_s8, %s2330_s9, %s2331_s10, %s2332_s11  }
  0x15   : > { %p210_p0 = pnand %p1519_p12, %p209_p13 }
  0x16   : > { %s2418_s12 = sand.u32 (!%p210_p0), 1, %s2312_s13  }
  0x17   : > { %213 = sbr.rel (%p210_p0) target bundleno = 318 (0x13e), region = 32  ;;  %s1520_s18 = sshll.u32 (!%p210_p0), %s2418_s12, 10 }
  0x18   : > { %s216_s20 = scalar_lea.sflag (!%p210_p0), [#allocation4], %s2418_s12  ;;  %s2422_s22 = scalar_lea.vmem (!%p210_p0), [#allocation3], %s1520_s18 }
  0x1c   : > { %2303 = dma.done.wait (%p2396_p8), %s216_s20, 16384  }
  0x1d   : > { %2305 = vsyncadd (%p2396_p8), %s216_s20, 4294950912  ;;  %v1653_v0 = vld [vmem:[%s2422_s22 + $0xe0] sm:$0xf]  ;;  %v2091_v1 = vld [vmem:[%s2422_s22 + $0xec] sm:$0xf0]  ;;  %s1522_s20 = sshll.u32 %s2320_s15, 2 }
  0x1e   : > { %v1781_v2 = vld [vmem:[%s2422_s22 + $0x1e0] sm:$0xf]  ;;  %v1654_v3 = vor.u32 %v2091_v1, %v1653_v0  ;;  %v2123_v4 = vld [vmem:[%s2422_s22 + $0x1ec] sm:$0xf0]  ;;  %p271_p1 = scmp.lt.s32.totalorder %s1522_s20, 7  ;;  %s1521_s26 = sshll.u32 %s2418_s12, 5 }
  0x1f   : > { %v1909_v5 = vld [vmem:[%s2422_s22 + $0x2e0] sm:$0xf]  ;;  %v2155_v6 = vld [vmem:[%s2422_s22 + $0x2ec] sm:$0xf0]  ;;  %v1782_v7 = vor.u32 %v2123_v4, %v1781_v2  ;;  %s2741_s27 = scalar_lea.vmem [#allocation5], %s1521_s26  ;;  %s2189_s12 = sshll.u32 (%p2403_p9), %s2320_s15, 4 }
  0x20   : > { %v1910_v8 = vor.u32 %v2155_v6, %v1909_v5  ;;  %v2037_v9 = vld [vmem:[%s2422_s22 + $0x3e0] sm:$0xf]  ;;  %v2187_v10 = vld [vmem:[%s2422_s22 + $0x3ec] sm:$0xf0]  ;;  %1089 = vmatpush.bf16.msra.mxu0 %v1654_v3  ;;  %s2792_s20 = smov (!%p271_p1, %s1522_s20), 7  ;;  %s1378_s30 = scalar_lea.vmem (%p2403_p9), %s2780_s3, %s2189_s12 }
  0x21   : > { %v1637_v11 = vld [vmem:[%s2422_s22 + $0xc0] sm:$0xf]  ;;  %v2038_v12 = vor.u32 %v2187_v10, %v2037_v9  ;;  %v2087_v13 = vld [vmem:[%s2422_s22 + $0xcc] sm:$0xf0]  ;;  %1103 = vmatpush.bf16.msra.mxu1 %v1782_v7  ;;  %s273_s23 = scalar_lea.vmem %s2779_s2, %s2792_s20 }
  0x22   : > { %v1765_v14 = vld [vmem:[%s2422_s22 + $0x1c0] sm:$0xf]  ;;  %v2119_v15 = vld [vmem:[%s2422_s22 + $0x1cc] sm:$0xf0]  ;;  %1117 = vmatpush.bf16.msra.mxu2 %v1910_v8  ;;  %v1638_v16 = vor.u32 %v2087_v13, %v1637_v11 }
  0x23   : > { %v1766_v17 = vor.u32 %v2119_v15, %v1765_v14  ;;  %v1893_v18 = vld [vmem:[%s2422_s22 + $0x2c0] sm:$0xf]  ;;  %v2151_v19 = vld [vmem:[%s2422_s22 + $0x2cc] sm:$0xf0]  ;;  %1131 = vmatpush.bf16.msra.mxu3 %v2038_v12 }
  0x24   : > { %v2021_v20 = vld [vmem:[%s2422_s22 + $0x3c0] sm:$0xf]  ;;  %v1894_v21 = vor.u32 %v2151_v19, %v1893_v18  ;;  %v2183_v22 = vld [vmem:[%s2422_s22 + $0x3cc] sm:$0xf0]  ;;  %1090 = vmatpush.bf16.msra.mxu0 %v1638_v16 }
  0x25   : > { %v1621_v23 = vld [vmem:[%s2422_s22 + $0xa0] sm:$0xf]  ;;  %v2083_v24 = vld [vmem:[%s2422_s22 + $0xac] sm:$0xf0]  ;;  %v2022_v25 = vor.u32 %v2183_v22, %v2021_v20  ;;  %1104 = vmatpush.bf16.msra.mxu1 %v1766_v17 }
  0x26   : > { %v1749_v26 = vld [vmem:[%s2422_s22 + $0x1a0] sm:$0xf]  ;;  %v2115_v27 = vld [vmem:[%s2422_s22 + $0x1ac] sm:$0xf0]  ;;  %v1622_v29 = vor.u32 %v2083_v24, %v1621_v23  ;;  %1118 = vmatpush.bf16.msra.mxu2 %v1894_v21 }
  0x27   : > { %v1877_v28 = vld [vmem:[%s2422_s22 + $0x2a0] sm:$0xf]  ;;  %v2147_v30 = vld [vmem:[%s2422_s22 + $0x2ac] sm:$0xf0]  ;;  %v1750_v33 = vor.u32 %v2115_v27, %v1749_v26  ;;  %1132 = vmatpush.bf16.msra.mxu3 %v2022_v25 }
  0x28   : > { %v2005_v31 = vld [vmem:[%s2422_s22 + $0x3a0] sm:$0xf]  ;;  %v2179_v32 = vld [vmem:[%s2422_s22 + $0x3ac] sm:$0xf0]  ;;  %v1878_v34 = vor.u32 %v2147_v30, %v1877_v28  ;;  %1091 = vmatpush.bf16.msra.mxu0 %v1622_v29  ;;  %v2089_v28 = vld [vmem:[%s2422_s22 + $0xe4] sm:$0xf] }
  0x29   : > { %v1605_v35 = vld [vmem:[%s2422_s22 + $0x80] sm:$0xf]  ;;  %v2079_v36 = vld [vmem:[%s2422_s22 + $0x8c] sm:$0xf0]  ;;  %v2006_v38 = vor.u32 %v2179_v32, %v2005_v31  ;;  %1105 = vmatpush.bf16.msra.mxu1 %v1750_v33  ;;  %v1655_v29 = vld [vmem:[%s2422_s22 + $0xf0] sm:$0xf0] }
  0x2a   : > { %v1733_v37 = vld [vmem:[%s2422_s22 + $0x180] sm:$0xf]  ;;  %v2111_v39 = vld [vmem:[%s2422_s22 + $0x18c] sm:$0xf0]  ;;  %v1606_v44 = vor.u32 %v2079_v36, %v1605_v35  ;;  %1119 = vmatpush.bf16.msra.mxu2 %v1878_v34  ;;  %v2121_v30 = vld [vmem:[%s2422_s22 + $0x1e4] sm:$0xf] }
  0x2b   : > { %v1861_v40 = vld [vmem:[%s2422_s22 + $0x280] sm:$0xf]  ;;  %v2143_v41 = vld [vmem:[%s2422_s22 + $0x28c] sm:$0xf0]  ;;  %v1734_v45 = vor.u32 %v2111_v39, %v1733_v37  ;;  %1133 = vmatpush.bf16.msra.mxu3 %v2006_v38  ;;  %v1783_v32 = vld [vmem:[%s2422_s22 + $0x1f0] sm:$0xf0] }
  0x2c   : > { %v1989_v42 = vld [vmem:[%s2422_s22 + $0x380] sm:$0xf]  ;;  %v2175_v43 = vld [vmem:[%s2422_s22 + $0x38c] sm:$0xf0]  ;;  %v1862_v46 = vor.u32 %v2143_v41, %v1861_v40  ;;  %1092 = vmatpush.bf16.msra.mxu0 %v1606_v44  ;;  %v2153_v33 = vld [vmem:[%s2422_s22 + $0x2e4] sm:$0xf]  ;;  %v1658_v40 = vor.u32 %v2089_v28, %v1655_v29 }
  0x2d   : > { %v1589_v47 = vld [vmem:[%s2422_s22 + $0x60] sm:$0xf]  ;;  %v2075_v48 = vld [vmem:[%s2422_s22 + $0x6c] sm:$0xf0]  ;;  %v1990_v50 = vor.u32 %v2175_v43, %v1989_v42  ;;  %1106 = vmatpush.bf16.msra.mxu1 %v1734_v45  ;;  %v1911_v34 = vld [vmem:[%s2422_s22 + $0x2f0] sm:$0xf0]  ;;  %v1786_v43 = vor.u32 %v2121_v30, %v1783_v32 }
  0x2e   : > { %v1717_v49 = vld [vmem:[%s2422_s22 + $0x160] sm:$0xf]  ;;  %v2107_v51 = vld [vmem:[%s2422_s22 + $0x16c] sm:$0xf0]  ;;  %v1590_v56 = vor.u32 %v2075_v48, %v1589_v47  ;;  %1120 = vmatpush.bf16.msra.mxu2 %v1862_v46  ;;  %v2185_v37 = vld [vmem:[%s2422_s22 + $0x3e4] sm:$0xf]  ;;  %v1914_v44 = vor.u32 %v2153_v33, %v1911_v34 }
  0x2f   : > { %v1845_v52 = vld [vmem:[%s2422_s22 + $0x260] sm:$0xf]  ;;  %v2139_v53 = vld [vmem:[%s2422_s22 + $0x26c] sm:$0xf0]  ;;  %v1718_v57 = vor.u32 %v2107_v51, %v1717_v49  ;;  %1134 = vmatpush.bf16.msra.mxu3 %v1990_v50  ;;  %v2039_v38 = vld [vmem:[%s2422_s22 + $0x3f0] sm:$0xf0] }
  0x30   : > { %v1973_v54 = vld [vmem:[%s2422_s22 + $0x360] sm:$0xf]  ;;  %v2171_v55 = vld [vmem:[%s2422_s22 + $0x36c] sm:$0xf0]  ;;  %v1846_v58 = vor.u32 %v2139_v53, %v1845_v52  ;;  %1093 = vmatpush.bf16.msra.mxu0 %v1590_v56  ;;  %v2085_v41 = vld [vmem:[%s2422_s22 + $0xc4] sm:$0xf]  ;;  %v2042_v48 = vor.u32 %v2185_v37, %v2039_v38 }
  0x31   : > { %v1573_v59 = vld [vmem:[%s2422_s22 + $0x40] sm:$0xf]  ;;  %v2071_v60 = vld [vmem:[%s2422_s22 + $0x4c] sm:$0xf0]  ;;  %v1974_v62 = vor.u32 %v2171_v55, %v1973_v54  ;;  %1107 = vmatpush.bf16.msra.mxu1 %v1718_v57  ;;  %v1639_v42 = vld [vmem:[%s2422_s22 + $0xd0] sm:$0xf0] }
  0x32   : > { %v1701_v61 = vld [vmem:[%s2422_s22 + $0x140] sm:$0xf]  ;;  %v2103_v63 = vld [vmem:[%s2422_s22 + $0x14c] sm:$0xf0]  ;;  %v1574_v4 = vor.u32 %v2071_v60, %v1573_v59  ;;  %1121 = vmatpush.bf16.msra.mxu2 %v1846_v58  ;;  %v2117_v45 = vld [vmem:[%s2422_s22 + $0x1c4] sm:$0xf]  ;;  %v1642_v55 = vor.u32 %v2085_v41, %v1639_v42 }
  0x33   : > { %v1829_v0 = vld [vmem:[%s2422_s22 + $0x240] sm:$0xf]  ;;  %v2135_v1 = vld [vmem:[%s2422_s22 + $0x24c] sm:$0xf0]  ;;  %v1702_v5 = vor.u32 %v2103_v63, %v1701_v61  ;;  %1135 = vmatpush.bf16.msra.mxu3 %v1974_v62  ;;  %v1767_v46 = vld [vmem:[%s2422_s22 + $0x1d0] sm:$0xf0] }
  0x34   : > { %v1957_v2 = vld [vmem:[%s2422_s22 + $0x340] sm:$0xf]  ;;  %v2167_v3 = vld [vmem:[%s2422_s22 + $0x34c] sm:$0xf0]  ;;  %v1830_v6 = vor.u32 %v2135_v1, %v1829_v0  ;;  %1094 = vmatpush.bf16.msra.mxu0 %v1574_v4  ;;  %v2149_v47 = vld [vmem:[%s2422_s22 + $0x2c4] sm:$0xf]  ;;  %v1770_v60 = vor.u32 %v2117_v45, %v1767_v46 }
  0x35   : > { %v1557_v7 = vld [vmem:[%s2422_s22 + $0x20] sm:$0xf]  ;;  %v2067_v8 = vld [vmem:[%s2422_s22 + $0x2c] sm:$0xf0]  ;;  %v1958_v10 = vor.u32 %v2167_v3, %v1957_v2  ;;  %1108 = vmatpush.bf16.msra.mxu1 %v1702_v5  ;;  %v1895_v49 = vld [vmem:[%s2422_s22 + $0x2d0] sm:$0xf0] }
  0x36   : > { %v1685_v9 = vld [vmem:[%s2422_s22 + $0x120] sm:$0xf]  ;;  %v2099_v11 = vld [vmem:[%s2422_s22 + $0x12c] sm:$0xf0]  ;;  %v1558_v16 = vor.u32 %v2067_v8, %v1557_v7  ;;  %1122 = vmatpush.bf16.msra.mxu2 %v1830_v6  ;;  %v2181_v50 = vld [vmem:[%s2422_s22 + $0x3c4] sm:$0xf]  ;;  %v1898_v61 = vor.u32 %v2149_v47, %v1895_v49 }
  0x37   : > { %v1813_v12 = vld [vmem:[%s2422_s22 + $0x220] sm:$0xf]  ;;  %v2131_v13 = vld [vmem:[%s2422_s22 + $0x22c] sm:$0xf0]  ;;  %v1686_v19 = vor.u32 %v2099_v11, %v1685_v9  ;;  %1136 = vmatpush.bf16.msra.mxu3 %v1958_v10  ;;  %v2023_v51 = vld [vmem:[%s2422_s22 + $0x3d0] sm:$0xf0] }
  0x38   : > { %v1941_v14 = vld [vmem:[%s2422_s22 + $0x320] sm:$0xf]  ;;  %v2163_v15 = vld [vmem:[%s2422_s22 + $0x32c] sm:$0xf0]  ;;  %v1814_v20 = vor.u32 %v2131_v13, %v1813_v12  ;;  %1095 = vmatpush.bf16.msra.mxu0 %v1558_v16  ;;  %v2081_v52 = vld [vmem:[%s2422_s22 + $0xa4] sm:$0xf]  ;;  %v2026_v1 = vor.u32 %v2181_v50, %v2023_v51 }
  0x39   : > { %v1541_v17 = vld [vmem:[%s2422_s22] sm:$0xf]  ;;  %v2063_v18 = vld [vmem:[%s2422_s22 + $0xc] sm:$0xf0]  ;;  %v1942_v24 = vor.u32 %v2163_v15, %v1941_v14  ;;  %1109 = vmatpush.bf16.msra.mxu1 %v1686_v19  ;;  %v1533_v53 = vld [vmem:[%s2777_s0 + $0x8] sm:$0xf] }
  0x3a   : > { %v1669_v21 = vld [vmem:[%s2422_s22 + $0x100] sm:$0xf]  ;;  %v2095_v22 = vld [vmem:[%s2422_s22 + $0x10c] sm:$0xf0]  ;;  %v1542_v31 = vor.u32 %v2063_v18, %v1541_v17  ;;  %1123 = vmatpush.bf16.msra.mxu2 %v1814_v20  ;;  %v2060_v54 = vld [vmem:[%s2777_s0 + $0x14] sm:$0xf0] }
  0x3b   : > { %v1797_v23 = vld [vmem:[%s2422_s22 + $0x200] sm:$0xf]  ;;  %v2127_v25 = vld [vmem:[%s2422_s22 + $0x20c] sm:$0xf0]  ;;  %v1670_v35 = vor.u32 %v2095_v22, %v1669_v21  ;;  %1137 = vmatpush.bf16.msra.mxu3 %v1942_v24  ;;  %v1623_v56 = vld [vmem:[%s2422_s22 + $0xb0] sm:$0xf0]  ;;  %v2518_v59 = vor.u32 %v2060_v54, %v1533_v53 }
  0x3c   : > { %v1925_v26 = vld [vmem:[%s2422_s22 + $0x300] sm:$0xf]  ;;  %v2159_v27 = vld [vmem:[%s2422_s22 + $0x30c] sm:$0xf0]  ;;  %v1798_v36 = vor.u32 %v2127_v25, %v1797_v23  ;;  %1096 = vmatpush.bf16.msra.mxu0 %v1542_v31  ;;  %v2113_v57 = vld [vmem:[%s2422_s22 + $0x1a4] sm:$0xf]  ;;  %v1626_v9 = vor.u32 %v2081_v52, %v1623_v56 }
  0x3d   : > { %v1926_v39 = vor.u32 %v2159_v27, %v1925_v26  ;;  %1110 = vmatpush.bf16.msra.mxu1 %v1670_v35  ;;  %v1751_v58 = vld [vmem:[%s2422_s22 + $0x1b0] sm:$0xf0]  ;;  %v2145_v62 = vld [vmem:[%s2422_s22 + $0x2a4] sm:$0xf]  ;;  %v2058_v3 = vld [vmem:[%s2777_s0 + $0xc] sm:$0xf] }
  0x3e   : > { %1124 = vmatpush.bf16.msra.mxu2 %v1798_v36  ;;  %v1879_v63 = vld [vmem:[%s2422_s22 + $0x2b0] sm:$0xf0]  ;;  %v2177_v0 = vld [vmem:[%s2422_s22 + $0x3a4] sm:$0xf]  ;;  %v1535_v4 = vld [vmem:[%s2777_s0 + $0x18] sm:$0xf0]  ;;  %v1754_v12 = vor.u32 %v2113_v57, %v1751_v58 }
  0x3f   : > { %1138 = vmatpush.bf16.msra.mxu3 %v1926_v39  ;;  %v2007_v2 = vld [vmem:[%s2422_s22 + $0x3b0] sm:$0xf0]  ;;  %v2531_v5 = vor.u32 %v2058_v3, %v1535_v4  ;;  %v1525_v6 = vld [vmem:[%s2777_s0] sm:$0xf]  ;;  %v2059_v7 = vld [vmem:[%s2777_s0 + $0xc] sm:$0xf0]  ;;  %v1882_v13 = vor.u32 %v2145_v62, %v1879_v63 }
  0x40   : > { %1145 = vmatpush.bf16.msrb.mxu0 %v1658_v40  ;;  %v2057_v8 = vld [vmem:[%s2777_s0 + $0x4] sm:$0xf]  ;;  %v2542_v10 = vor.u32 %v2059_v7, %v1525_v6  ;;  %v1527_v11 = vld [vmem:[%s2777_s0 + $0x10] sm:$0xf0]  ;;  %v2010_v18 = vor.u32 %v2177_v0, %v2007_v2 }
  0x41   : > { %1159 = vmatpush.bf16.msrb.mxu1 %v1786_v43  ;;  %1125 = vmatmul.bf16.vlgmr.msra.gmra.mxu2 %v2518_v59  ;;  %v2077_v14 = vld [vmem:[%s2422_s22 + $0x84] sm:$0xf]  ;;  %v1607_v15 = vld [vmem:[%s2422_s22 + $0x90] sm:$0xf0]  ;;  %v2550_v17 = vor.u32 %v2057_v8, %v1527_v11  ;;  %v1661_v11 = vld [vmem:[%s2422_s22 + $0xe8] sm:$0xf] }
  0x42   : > { %1173 = vmatpush.bf16.msrb.mxu2 %v1914_v44  ;;  %v2109_v16 = vld [vmem:[%s2422_s22 + $0x184] sm:$0xf]  ;;  %v1735_v19 = vld [vmem:[%s2422_s22 + $0x190] sm:$0xf0]  ;;  %1097 = vmatmul.bf16.vlgmr.msra.gmra.mxu0 %v2542_v10  ;;  %v1610_v24 = vor.u32 %v2077_v14, %v1607_v15  ;;  %v2124_v15 = vld [vmem:[%s2422_s22 + $0x1f4] sm:$0xf0] }
  0x43   : > { %1187 = vmatpush.bf16.msrb.mxu3 %v2042_v48  ;;  %v2141_v20 = vld [vmem:[%s2422_s22 + $0x284] sm:$0xf]  ;;  %v1863_v21 = vld [vmem:[%s2422_s22 + $0x290] sm:$0xf0]  ;;  %1111 = vmatmul.bf16.vlgmr.msra.gmra.mxu1 %v2550_v17  ;;  %v1738_v25 = vor.u32 %v2109_v16, %v1735_v19  ;;  %v1917_v16 = vld [vmem:[%s2422_s22 + $0x2e8] sm:$0xf] }
  0x44   : > { %1146 = vmatpush.bf16.msrb.mxu0 %v1642_v55  ;;  %v2173_v22 = vld [vmem:[%s2422_s22 + $0x384] sm:$0xf]  ;;  %v1991_v23 = vld [vmem:[%s2422_s22 + $0x390] sm:$0xf0]  ;;  %1139 = vmatmul.bf16.vlgmr.msra.gmra.mxu3 %v2531_v5  ;;  %v1866_v26 = vor.u32 %v2141_v20, %v1863_v21  ;;  %v2045_v21 = vld [vmem:[%s2422_s22 + $0x3e8] sm:$0xf] }
  0x45   : > { %1160 = vmatpush.bf16.msrb.mxu1 %v1770_v60  ;;  %v2073_v27 = vld [vmem:[%s2422_s22 + $0x64] sm:$0xf]  ;;  %v1591_v28 = vld [vmem:[%s2422_s22 + $0x70] sm:$0xf0]  ;;  %v1994_v30 = vor.u32 %v2173_v22, %v1991_v23  ;;  %v2188_v22 = vld [vmem:[%s2422_s22 + $0x3f4] sm:$0xf0] }
  0x46   : > { %1174 = vmatpush.bf16.msrb.mxu2 %v1898_v61  ;;  %v2105_v29 = vld [vmem:[%s2422_s22 + $0x164] sm:$0xf]  ;;  %v1719_v31 = vld [vmem:[%s2422_s22 + $0x170] sm:$0xf0]  ;;  %v1594_v36 = vor.u32 %v2073_v27, %v1591_v28  ;;  %v1645_v27 = vld [vmem:[%s2422_s22 + $0xc8] sm:$0xf] }
  0x47   : > { %1188 = vmatpush.bf16.msrb.mxu3 %v2026_v1  ;;  %v2137_v32 = vld [vmem:[%s2422_s22 + $0x264] sm:$0xf]  ;;  %v1847_v33 = vld [vmem:[%s2422_s22 + $0x270] sm:$0xf0]  ;;  %v1722_v37 = vor.u32 %v2105_v29, %v1719_v31  ;;  %v2088_v28 = vld [vmem:[%s2422_s22 + $0xd4] sm:$0xf0] }
  0x48   : > { %1147 = vmatpush.bf16.msrb.mxu0 %v1626_v9  ;;  %v2169_v34 = vld [vmem:[%s2422_s22 + $0x364] sm:$0xf]  ;;  %v1975_v35 = vld [vmem:[%s2422_s22 + $0x370] sm:$0xf0]  ;;  %v1850_v38 = vor.u32 %v2137_v32, %v1847_v33  ;;  %v1773_v29 = vld [vmem:[%s2422_s22 + $0x1c8] sm:$0xf] }
  0x49   : > { %1161 = vmatpush.bf16.msrb.mxu1 %v1754_v12  ;;  %v2069_v39 = vld [vmem:[%s2422_s22 + $0x44] sm:$0xf]  ;;  %v1575_v40 = vld [vmem:[%s2422_s22 + $0x50] sm:$0xf0]  ;;  %v1978_v42 = vor.u32 %v2169_v34, %v1975_v35  ;;  %v2092_v12 = vld [vmem:[%s2422_s22 + $0xf4] sm:$0xf0] }
  0x4a   : > { %1175 = vmatpush.bf16.msrb.mxu2 %v1882_v13  ;;  %v2101_v41 = vld [vmem:[%s2422_s22 + $0x144] sm:$0xf]  ;;  %v1703_v43 = vld [vmem:[%s2422_s22 + $0x150] sm:$0xf0]  ;;  %v1578_v48 = vor.u32 %v2069_v39, %v1575_v40  ;;  %v1789_v13 = vld [vmem:[%s2422_s22 + $0x1e8] sm:$0xf] }
  0x4b   : > { %1189 = vmatpush.bf16.msrb.mxu3 %v2010_v18  ;;  %v2133_v44 = vld [vmem:[%s2422_s22 + $0x244] sm:$0xf]  ;;  %v1831_v45 = vld [vmem:[%s2422_s22 + $0x250] sm:$0xf0]  ;;  %v1706_v49 = vor.u32 %v2101_v41, %v1703_v43  ;;  %v2156_v18 = vld [vmem:[%s2422_s22 + $0x2f4] sm:$0xf0] }
  0x4c   : > { %1148 = vmatpush.bf16.msrb.mxu0 %v1610_v24  ;;  %v2165_v46 = vld [vmem:[%s2422_s22 + $0x344] sm:$0xf]  ;;  %v1959_v47 = vld [vmem:[%s2422_s22 + $0x350] sm:$0xf0]  ;;  %v1834_v50 = vor.u32 %v2133_v44, %v1831_v45  ;;  %v1662_v24 = vor.u32 %v2092_v12, %v1661_v11  ;;  %v2120_v31 = vld [vmem:[%s2422_s22 + $0x1d4] sm:$0xf0] }
  0x4d   : > { %1162 = vmatpush.bf16.msrb.mxu1 %v1738_v25  ;;  %v2065_v51 = vld [vmem:[%s2422_s22 + $0x24] sm:$0xf]  ;;  %v1559_v52 = vld [vmem:[%s2422_s22 + $0x30] sm:$0xf0]  ;;  %v1962_v54 = vor.u32 %v2165_v46, %v1959_v47  ;;  %v1790_v25 = vor.u32 %v2124_v15, %v1789_v13  ;;  %v1901_v32 = vld [vmem:[%s2422_s22 + $0x2c8] sm:$0xf] }
  0x4e   : > { %1176 = vmatpush.bf16.msrb.mxu2 %v1866_v26  ;;  %v2097_v53 = vld [vmem:[%s2422_s22 + $0x124] sm:$0xf]  ;;  %v1687_v55 = vld [vmem:[%s2422_s22 + $0x130] sm:$0xf0]  ;;  %v1562_v61 = vor.u32 %v2065_v51, %v1559_v52  ;;  %v1918_v26 = vor.u32 %v2156_v18, %v1917_v16  ;;  %v2152_v33 = vld [vmem:[%s2422_s22 + $0x2d4] sm:$0xf0] }
  0x4f   : > { %1190 = vmatpush.bf16.msrb.mxu3 %v1994_v30  ;;  %v2129_v56 = vld [vmem:[%s2422_s22 + $0x224] sm:$0xf]  ;;  %v1815_v57 = vld [vmem:[%s2422_s22 + $0x230] sm:$0xf0]  ;;  %v1690_v0 = vor.u32 %v2097_v53, %v1687_v55  ;;  %v2046_v30 = vor.u32 %v2188_v22, %v2045_v21  ;;  %v2029_v34 = vld [vmem:[%s2422_s22 + $0x3c8] sm:$0xf] }
  0x50   : > { %1149 = vmatpush.bf16.msrb.mxu0 %v1594_v36  ;;  %v2161_v58 = vld [vmem:[%s2422_s22 + $0x324] sm:$0xf]  ;;  %v1943_v60 = vld [vmem:[%s2422_s22 + $0x330] sm:$0xf0]  ;;  %v1818_v1 = vor.u32 %v2129_v56, %v1815_v57  ;;  %v2184_v35 = vld [vmem:[%s2422_s22 + $0x3d4] sm:$0xf0]  ;;  %v1646_v36 = vor.u32 %v2088_v28, %v1645_v27 }
  0x51   : > { %1163 = vmatpush.bf16.msrb.mxu1 %v1722_v37  ;;  %v2061_v62 = vld [vmem:[%s2422_s22 + $0x4] sm:$0xf]  ;;  %v1543_v63 = vld [vmem:[%s2422_s22 + $0x10] sm:$0xf0]  ;;  %v1946_v6 = vor.u32 %v2161_v58, %v1943_v60  ;;  %v1774_v37 = vor.u32 %v2120_v31, %v1773_v29  ;;  %v1629_v39 = vld [vmem:[%s2422_s22 + $0xa8] sm:$0xf] }
  0x52   : > { %1177 = vmatpush.bf16.msrb.mxu2 %v1850_v38  ;;  %v2093_v2 = vld [vmem:[%s2422_s22 + $0x104] sm:$0xf]  ;;  %v1671_v3 = vld [vmem:[%s2422_s22 + $0x110] sm:$0xf0]  ;;  %v1546_v14 = vor.u32 %v2061_v62, %v1543_v63  ;;  %v1902_v38 = vor.u32 %v2152_v33, %v1901_v32  ;;  %v2084_v40 = vld [vmem:[%s2422_s22 + $0xb4] sm:$0xf0] }
  0x53   : > { %1191 = vmatpush.bf16.msrb.mxu3 %v1978_v42  ;;  %v2125_v4 = vld [vmem:[%s2422_s22 + $0x204] sm:$0xf]  ;;  %v1799_v7 = vld [vmem:[%s2422_s22 + $0x210] sm:$0xf0]  ;;  %v1674_v19 = vor.u32 %v2093_v2, %v1671_v3  ;;  %v1757_v41 = vld [vmem:[%s2422_s22 + $0x1a8] sm:$0xf]  ;;  %v2030_v42 = vor.u32 %v2184_v35, %v2029_v34 }
  0x54   : > { %1150 = vmatpush.bf16.msrb.mxu0 %v1578_v48  ;;  %v2157_v8 = vld [vmem:[%s2422_s22 + $0x304] sm:$0xf]  ;;  %v1927_v9 = vld [vmem:[%s2422_s22 + $0x310] sm:$0xf0]  ;;  %v1802_v20 = vor.u32 %v2125_v4, %v1799_v7  ;;  %v2116_v43 = vld [vmem:[%s2422_s22 + $0x1b4] sm:$0xf0]  ;;  %v1630_v48 = vor.u32 %v2084_v40, %v1629_v39 }
  0x55   : > { %1164 = vmatpush.bf16.msrb.mxu1 %v1706_v49  ;;  %v1930_v23 = vor.u32 %v2157_v8, %v1927_v9  ;;  %v1885_v44 = vld [vmem:[%s2422_s22 + $0x2a8] sm:$0xf]  ;;  %v2148_v45 = vld [vmem:[%s2422_s22 + $0x2b4] sm:$0xf0]  ;;  %v1758_v49 = vor.u32 %v2116_v43, %v1757_v41 }
  0x56   : > { %1178 = vmatpush.bf16.msrb.mxu2 %v1834_v50  ;;  %v2013_v46 = vld [vmem:[%s2422_s22 + $0x3a8] sm:$0xf]  ;;  %v2180_v47 = vld [vmem:[%s2422_s22 + $0x3b4] sm:$0xf0]  ;;  %v1886_v50 = vor.u32 %v2148_v45, %v1885_v44 }
  0x57   : > { %1192 = vmatpush.bf16.msrb.mxu3 %v1962_v54  ;;  %v1613_v51 = vld [vmem:[%s2422_s22 + $0x88] sm:$0xf]  ;;  %v2080_v52 = vld [vmem:[%s2422_s22 + $0x94] sm:$0xf0]  ;;  %v2014_v54 = vor.u32 %v2180_v47, %v2013_v46 }
  0x58   : > { %1151 = vmatpush.bf16.msrb.mxu0 %v1562_v61  ;;  %v1741_v53 = vld [vmem:[%s2422_s22 + $0x188] sm:$0xf]  ;;  %v2112_v55 = vld [vmem:[%s2422_s22 + $0x194] sm:$0xf0]  ;;  %v1614_v61 = vor.u32 %v2080_v52, %v1613_v51  ;;  %v1791_v52 = vld [vmem:[%s2422_s22 + $0x1f8] sm:$0xf0] }
  0x59   : > { %1165 = vmatpush.bf16.msrb.mxu1 %v1690_v0  ;;  %v1869_v56 = vld [vmem:[%s2422_s22 + $0x288] sm:$0xf]  ;;  %v2144_v57 = vld [vmem:[%s2422_s22 + $0x294] sm:$0xf0]  ;;  %v1742_v62 = vor.u32 %v2112_v55, %v1741_v53  ;;  %v2154_v53 = vld [vmem:[%s2422_s22 + $0x2ec] sm:$0xf] }
  0x5a   : > { %1179 = vmatpush.bf16.msrb.mxu2 %v1818_v1  ;;  %v1997_v58 = vld [vmem:[%s2422_s22 + $0x388] sm:$0xf]  ;;  %v2176_v60 = vld [vmem:[%s2422_s22 + $0x394] sm:$0xf0]  ;;  %v1870_v63 = vor.u32 %v2144_v57, %v1869_v56  ;;  %v2186_v57 = vld [vmem:[%s2422_s22 + $0x3ec] sm:$0xf] }
  0x5b   : > { %1193 = vmatpush.bf16.msrb.mxu3 %v1946_v6  ;;  %v1597_v0 = vld [vmem:[%s2422_s22 + $0x68] sm:$0xf]  ;;  %v2076_v1 = vld [vmem:[%s2422_s22 + $0x74] sm:$0xf0]  ;;  %v1998_v3 = vor.u32 %v2176_v60, %v1997_v58  ;;  %v2047_v58 = vld [vmem:[%s2422_s22 + $0x3f8] sm:$0xf0] }
  0x5c   : > { %1152 = vmatpush.bf16.msrb.mxu0 %v1546_v14  ;;  %v1725_v2 = vld [vmem:[%s2422_s22 + $0x168] sm:$0xf]  ;;  %v2108_v4 = vld [vmem:[%s2422_s22 + $0x174] sm:$0xf0]  ;;  %v1598_v11 = vor.u32 %v2076_v1, %v1597_v0  ;;  %v2086_v0 = vld [vmem:[%s2422_s22 + $0xcc] sm:$0xf] }
  0x5d   : > { %1166 = vmatpush.bf16.msrb.mxu1 %v1674_v19  ;;  %v1853_v6 = vld [vmem:[%s2422_s22 + $0x268] sm:$0xf]  ;;  %v2140_v7 = vld [vmem:[%s2422_s22 + $0x274] sm:$0xf0]  ;;  %v1726_v12 = vor.u32 %v2108_v4, %v1725_v2  ;;  %v1647_v1 = vld [vmem:[%s2422_s22 + $0xd8] sm:$0xf0] }
  0x5e   : > { %1180 = vmatpush.bf16.msrb.mxu2 %v1802_v20  ;;  %v1981_v8 = vld [vmem:[%s2422_s22 + $0x368] sm:$0xf]  ;;  %v2172_v9 = vld [vmem:[%s2422_s22 + $0x374] sm:$0xf0]  ;;  %v1854_v13 = vor.u32 %v2140_v7, %v1853_v6  ;;  %v2118_v2 = vld [vmem:[%s2422_s22 + $0x1cc] sm:$0xf] }
  0x5f   : > { %1194 = vmatpush.bf16.msrb.mxu3 %v1930_v23  ;;  %1153 = vmatmul.bf16.vlgmr.msrb.gmra.mxu0 %v2542_v10  ;;  %v1581_v14 = vld [vmem:[%s2422_s22 + $0x48] sm:$0xf]  ;;  %v2072_v15 = vld [vmem:[%s2422_s22 + $0x54] sm:$0xf0]  ;;  %v1982_v18 = vor.u32 %v2172_v9, %v1981_v8  ;;  %v1775_v4 = vld [vmem:[%s2422_s22 + $0x1d8] sm:$0xf0] }
  0x60   : > { %1201 = vmatpush.bf16.msra.mxu0 %v1662_v24  ;;  %1167 = vmatmul.bf16.vlgmr.msrb.gmra.mxu1 %v2550_v17  ;;  %v1709_v16 = vld [vmem:[%s2422_s22 + $0x148] sm:$0xf]  ;;  %v2104_v19 = vld [vmem:[%s2422_s22 + $0x154] sm:$0xf0]  ;;  %v1582_v24 = vor.u32 %v2072_v15, %v1581_v14  ;;  %v2150_v6 = vld [vmem:[%s2422_s22 + $0x2cc] sm:$0xf] }
  0x61   : > { %1215 = vmatpush.bf16.msra.mxu1 %v1790_v25  ;;  %1181 = vmatmul.bf16.vlgmr.msrb.gmra.mxu2 %v2518_v59  ;;  %v1837_v20 = vld [vmem:[%s2422_s22 + $0x248] sm:$0xf]  ;;  %v2136_v21 = vld [vmem:[%s2422_s22 + $0x254] sm:$0xf0]  ;;  %v1710_v25 = vor.u32 %v2104_v19, %v1709_v16  ;;  %v1903_v7 = vld [vmem:[%s2422_s22 + $0x2d8] sm:$0xf0] }
  0x62   : > { %1229 = vmatpush.bf16.msra.mxu2 %v1918_v26  ;;  %1195 = vmatmul.bf16.vlgmr.msrb.gmra.mxu3 %v2531_v5  ;;  %v1965_v22 = vld [vmem:[%s2422_s22 + $0x348] sm:$0xf]  ;;  %v2168_v23 = vld [vmem:[%s2422_s22 + $0x354] sm:$0xf0]  ;;  %v1838_v26 = vor.u32 %v2136_v21, %v1837_v20  ;;  %v2182_v8 = vld [vmem:[%s2422_s22 + $0x3cc] sm:$0xf] }
  0x63   : > { %1243 = vmatpush.bf16.msra.mxu3 %v2046_v30  ;;  %v1565_v27 = vld [vmem:[%s2422_s22 + $0x28] sm:$0xf]  ;;  %v2068_v28 = vld [vmem:[%s2422_s22 + $0x34] sm:$0xf0]  ;;  %v1966_v30 = vor.u32 %v2168_v23, %v1965_v22  ;;  %v2031_v9 = vld [vmem:[%s2422_s22 + $0x3d8] sm:$0xf0] }
  0x64   : > { %1202 = vmatpush.bf16.msra.mxu0 %v1646_v36  ;;  %v1693_v29 = vld [vmem:[%s2422_s22 + $0x128] sm:$0xf]  ;;  %v2100_v31 = vld [vmem:[%s2422_s22 + $0x134] sm:$0xf0]  ;;  %v1566_v36 = vor.u32 %v2068_v28, %v1565_v27  ;;  %v2082_v14 = vld [vmem:[%s2422_s22 + $0xac] sm:$0xf] }
  0x65   : > { %1216 = vmatpush.bf16.msra.mxu1 %v1774_v37  ;;  %v1821_v32 = vld [vmem:[%s2422_s22 + $0x228] sm:$0xf]  ;;  %v2132_v33 = vld [vmem:[%s2422_s22 + $0x234] sm:$0xf0]  ;;  %v1694_v39 = vor.u32 %v2100_v31, %v1693_v29  ;;  %v1631_v15 = vld [vmem:[%s2422_s22 + $0xb8] sm:$0xf0] }
  0x66   : > { %1230 = vmatpush.bf16.msra.mxu2 %v1902_v38  ;;  %v1949_v34 = vld [vmem:[%s2422_s22 + $0x328] sm:$0xf]  ;;  %v2164_v35 = vld [vmem:[%s2422_s22 + $0x334] sm:$0xf0]  ;;  %v1822_v40 = vor.u32 %v2132_v33, %v1821_v32  ;;  %v2114_v16 = vld [vmem:[%s2422_s22 + $0x1ac] sm:$0xf] }
  0x67   : > { %1244 = vmatpush.bf16.msra.mxu3 %v2030_v42  ;;  %v1549_v37 = vld [vmem:[%s2422_s22 + $0x8] sm:$0xf]  ;;  %v2064_v38 = vld [vmem:[%s2422_s22 + $0x14] sm:$0xf0]  ;;  %v1950_v44 = vor.u32 %v2164_v35, %v1949_v34  ;;  %v1759_v19 = vld [vmem:[%s2422_s22 + $0x1b8] sm:$0xf0] }
  0x68   : > { %1203 = vmatpush.bf16.msra.mxu0 %v1630_v48  ;;  %v1677_v41 = vld [vmem:[%s2422_s22 + $0x108] sm:$0xf]  ;;  %v2096_v42 = vld [vmem:[%s2422_s22 + $0x114] sm:$0xf0]  ;;  %v2090_v48 = vld [vmem:[%s2422_s22 + $0xec] sm:$0xf]  ;;  %v1550_v51 = vor.u32 %v2064_v38, %v1549_v37 }
  0x69   : > { %1217 = vmatpush.bf16.msra.mxu1 %v1758_v49  ;;  %v1805_v43 = vld [vmem:[%s2422_s22 + $0x208] sm:$0xf]  ;;  %v2128_v45 = vld [vmem:[%s2422_s22 + $0x214] sm:$0xf0]  ;;  %v1663_v49 = vld [vmem:[%s2422_s22 + $0xf8] sm:$0xf0]  ;;  %v1678_v55 = vor.u32 %v2096_v42, %v1677_v41 }
  0x6a   : > { %1231 = vmatpush.bf16.msra.mxu2 %v1886_v50  ;;  %v1933_v46 = vld [vmem:[%s2422_s22 + $0x308] sm:$0xf]  ;;  %v2160_v47 = vld [vmem:[%s2422_s22 + $0x314] sm:$0xf0]  ;;  %v2122_v50 = vld [vmem:[%s2422_s22 + $0x1ec] sm:$0xf]  ;;  %v1806_v56 = vor.u32 %v2128_v45, %v1805_v43 }
  0x6b   : > { %1245 = vmatpush.bf16.msra.mxu3 %v2014_v54  ;;  %v1919_v54 = vld [vmem:[%s2422_s22 + $0x2f8] sm:$0xf0]  ;;  %v1934_v60 = vor.u32 %v2160_v47, %v1933_v46  ;;  %v2146_v20 = vld [vmem:[%s2422_s22 + $0x2ac] sm:$0xf] }
  0x6c   : > { %1204 = vmatpush.bf16.msra.mxu0 %v1614_v61  ;;  %v1666_v61 = vor.u32 %v2090_v48, %v1663_v49  ;;  %v1887_v21 = vld [vmem:[%s2422_s22 + $0x2b8] sm:$0xf0]  ;;  %v2178_v22 = vld [vmem:[%s2422_s22 + $0x3ac] sm:$0xf] }
  0x6d   : > { %1218 = vmatpush.bf16.msra.mxu1 %v1742_v62  ;;  %v1794_v62 = vor.u32 %v2122_v50, %v1791_v52  ;;  %v2015_v23 = vld [vmem:[%s2422_s22 + $0x3b8] sm:$0xf0]  ;;  %v2078_v27 = vld [vmem:[%s2422_s22 + $0x8c] sm:$0xf] }
  0x6e   : > { %1232 = vmatpush.bf16.msra.mxu2 %v1870_v63  ;;  %v1922_v63 = vor.u32 %v2154_v53, %v1919_v54  ;;  %v1615_v28 = vld [vmem:[%s2422_s22 + $0x98] sm:$0xf0]  ;;  %v2110_v29 = vld [vmem:[%s2422_s22 + $0x18c] sm:$0xf] }
  0x6f   : > { %1246 = vmatpush.bf16.msra.mxu3 %v1998_v3  ;;  %v2050_v3 = vor.u32 %v2186_v57, %v2047_v58  ;;  %v1743_v31 = vld [vmem:[%s2422_s22 + $0x198] sm:$0xf0]  ;;  %v2142_v32 = vld [vmem:[%s2422_s22 + $0x28c] sm:$0xf] }
  0x70   : > { %1205 = vmatpush.bf16.msra.mxu0 %v1598_v11  ;;  %v1650_v11 = vor.u32 %v2086_v0, %v1647_v1  ;;  %v1871_v33 = vld [vmem:[%s2422_s22 + $0x298] sm:$0xf0]  ;;  %v2174_v34 = vld [vmem:[%s2422_s22 + $0x38c] sm:$0xf]  ;;  %v1746_v37 = vor.u32 %v2110_v29, %v1743_v31 }
  0x71   : > { %1219 = vmatpush.bf16.msra.mxu1 %v1726_v12  ;;  %v1778_v12 = vor.u32 %v2118_v2, %v1775_v4  ;;  %v1999_v35 = vld [vmem:[%s2422_s22 + $0x398] sm:$0xf0]  ;;  %v1874_v38 = vor.u32 %v2142_v32, %v1871_v33  ;;  %v2106_v41 = vld [vmem:[%s2422_s22 + $0x16c] sm:$0xf] }
  0x72   : > { %1233 = vmatpush.bf16.msra.mxu2 %v1854_v13  ;;  %v1906_v13 = vor.u32 %v2150_v6, %v1903_v7  ;;  %v2002_v42 = vor.u32 %v2174_v34, %v1999_v35  ;;  %v1727_v43 = vld [vmem:[%s2422_s22 + $0x178] sm:$0xf0]  ;;  %v2170_v46 = vld [vmem:[%s2422_s22 + $0x36c] sm:$0xf] }
  0x73   : > { %1247 = vmatpush.bf16.msra.mxu3 %v1982_v18  ;;  %v2034_v18 = vor.u32 %v2182_v8, %v2031_v9  ;;  %v1855_v45 = vld [vmem:[%s2422_s22 + $0x278] sm:$0xf0]  ;;  %v1730_v49 = vor.u32 %v2106_v41, %v1727_v43  ;;  %v2102_v53 = vld [vmem:[%s2422_s22 + $0x14c] sm:$0xf] }
  0x74   : > { %1206 = vmatpush.bf16.msra.mxu0 %v1582_v24  ;;  %v1634_v24 = vor.u32 %v2082_v14, %v1631_v15  ;;  %v1983_v47 = vld [vmem:[%s2422_s22 + $0x378] sm:$0xf0]  ;;  %v2166_v58 = vld [vmem:[%s2422_s22 + $0x34c] sm:$0xf] }
  0x75   : > { %1220 = vmatpush.bf16.msra.mxu1 %v1710_v25  ;;  %v1762_v25 = vor.u32 %v2114_v16, %v1759_v19  ;;  %v1583_v52 = vld [vmem:[%s2422_s22 + $0x58] sm:$0xf0]  ;;  %v1986_v54 = vor.u32 %v2170_v46, %v1983_v47  ;;  %v2066_v0 = vld [vmem:[%s2422_s22 + $0x2c] sm:$0xf] }
  0x76   : > { %1234 = vmatpush.bf16.msra.mxu2 %v1838_v26  ;;  %v1890_v26 = vor.u32 %v2146_v20, %v1887_v21  ;;  %v1839_v57 = vld [vmem:[%s2422_s22 + $0x258] sm:$0xf0]  ;;  %v2098_v2 = vld [vmem:[%s2422_s22 + $0x12c] sm:$0xf] }
  0x77   : > { %1248 = vmatpush.bf16.msra.mxu3 %v1966_v30  ;;  %v2018_v30 = vor.u32 %v2178_v22, %v2015_v23  ;;  %v1567_v1 = vld [vmem:[%s2422_s22 + $0x38] sm:$0xf0]  ;;  %v2130_v6 = vld [vmem:[%s2422_s22 + $0x22c] sm:$0xf] }
  0x78   : > { %1207 = vmatpush.bf16.msra.mxu0 %v1566_v36  ;;  %v1618_v36 = vor.u32 %v2078_v27, %v1615_v28  ;;  %v1695_v4 = vld [vmem:[%s2422_s22 + $0x138] sm:$0xf0]  ;;  %v2162_v8 = vld [vmem:[%s2422_s22 + $0x32c] sm:$0xf] }
  0x79   : > { %1221 = vmatpush.bf16.msra.mxu1 %v1694_v39  ;;  %v2074_v39 = vld [vmem:[%s2422_s22 + $0x6c] sm:$0xf]  ;;  %v1823_v7 = vld [vmem:[%s2422_s22 + $0x238] sm:$0xf0] }
  0x7a   : > { %1235 = vmatpush.bf16.msra.mxu2 %v1822_v40  ;;  %v1599_v40 = vld [vmem:[%s2422_s22 + $0x78] sm:$0xf0]  ;;  %v2062_v14 = vld [vmem:[%s2422_s22 + $0xc] sm:$0xf] }
  0x7b   : > { %1249 = vmatpush.bf16.msra.mxu3 %v1950_v44  ;;  %v2138_v44 = vld [vmem:[%s2422_s22 + $0x26c] sm:$0xf]  ;;  %v1602_v48 = vor.u32 %v2074_v39, %v1599_v40  ;;  %v1951_v9 = vld [vmem:[%s2422_s22 + $0x338] sm:$0xf0] }
  0x7c   : > { %1208 = vmatpush.bf16.msra.mxu0 %v1550_v51  ;;  %v1858_v50 = vor.u32 %v2138_v44, %v1855_v45  ;;  %v2070_v51 = vld [vmem:[%s2422_s22 + $0x4c] sm:$0xf]  ;;  %v1551_v15 = vld [vmem:[%s2422_s22 + $0x18] sm:$0xf0] }
  0x7d   : > { %1222 = vmatpush.bf16.msra.mxu1 %v1678_v55  ;;  %v1711_v55 = vld [vmem:[%s2422_s22 + $0x158] sm:$0xf0]  ;;  %v2094_v16 = vld [vmem:[%s2422_s22 + $0x10c] sm:$0xf] }
  0x7e   : > { %1236 = vmatpush.bf16.msra.mxu2 %v1806_v56  ;;  %v2134_v56 = vld [vmem:[%s2422_s22 + $0x24c] sm:$0xf]  ;;  %v1679_v19 = vld [vmem:[%s2422_s22 + $0x118] sm:$0xf0] }
  0x7f   : > { %1250 = vmatpush.bf16.msra.mxu3 %v1934_v60  ;;  %1209 = vmatmul.bf16.vlgmr.msra.gmra.mxu0 %v2542_v10  ;;  %v1967_v60 = vld [vmem:[%s2422_s22 + $0x358] sm:$0xf0]  ;;  %v2126_v20 = vld [vmem:[%s2422_s22 + $0x20c] sm:$0xf] }
  0x80   : > { %1257 = vmatpush.bf16.msrb.mxu0 %v1666_v61  ;;  %1223 = vmatmul.bf16.vlgmr.msra.gmra.mxu1 %v2550_v17  ;;  %v1586_v61 = vor.u32 %v2070_v51, %v1583_v52  ;;  %v1807_v21 = vld [vmem:[%s2422_s22 + $0x218] sm:$0xf0]  ;;  %v2158_v22 = vld [vmem:[%s2422_s22 + $0x30c] sm:$0xf] }
  0x81   : > { %1271 = vmatpush.bf16.msrb.mxu1 %v1794_v62  ;;  %1237 = vmatmul.bf16.vlgmr.msra.gmra.mxu2 %v2518_v59  ;;  %v1714_v62 = vor.u32 %v2102_v53, %v1711_v55  ;;  %v1935_v23 = vld [vmem:[%s2422_s22 + $0x318] sm:$0xf0] }
  0x82   : > { %1285 = vmatpush.bf16.msrb.mxu2 %v1922_v63  ;;  %1251 = vmatmul.bf16.vlgmr.msra.gmra.mxu3 %v2531_v5  ;;  %v1842_v63 = vor.u32 %v2134_v56, %v1839_v57  ;;  %v1938_v27 = vor.u32 %v2158_v22, %v1935_v23 }
  0x83   : > { %1299 = vmatpush.bf16.msrb.mxu3 %v2050_v3  ;;  %v1970_v3 = vor.u32 %v2166_v58, %v1967_v60 }
  0x84   : > { %1258 = vmatpush.bf16.msrb.mxu0 %v1650_v11  ;;  %v1570_v11 = vor.u32 %v2066_v0, %v1567_v1 }
  0x85   : > { %1272 = vmatpush.bf16.msrb.mxu1 %v1778_v12  ;;  %v1698_v12 = vor.u32 %v2098_v2, %v1695_v4 }
  0x86   : > { %1286 = vmatpush.bf16.msrb.mxu2 %v1906_v13  ;;  %v1826_v13 = vor.u32 %v2130_v6, %v1823_v7 }
  0x87   : > { %1300 = vmatpush.bf16.msrb.mxu3 %v2034_v18  ;;  %v1954_v18 = vor.u32 %v2162_v8, %v1951_v9 }
  0x88   : > { %1259 = vmatpush.bf16.msrb.mxu0 %v1634_v24  ;;  %v1554_v24 = vor.u32 %v2062_v14, %v1551_v15 }
  0x89   : > { %1273 = vmatpush.bf16.msrb.mxu1 %v1762_v25  ;;  %v1682_v25 = vor.u32 %v2094_v16, %v1679_v19 }
  0x8a   : > { %1287 = vmatpush.bf16.msrb.mxu2 %v1890_v26  ;;  %v1810_v26 = vor.u32 %v2126_v20, %v1807_v21 }
  0x8b   : > { %1301 = vmatpush.bf16.msrb.mxu3 %v2018_v30 }
  0x8c   : > { %1260 = vmatpush.bf16.msrb.mxu0 %v1618_v36 }
  0x8d   : > { %1274 = vmatpush.bf16.msrb.mxu1 %v1746_v37 }
  0x8e   : > { %1288 = vmatpush.bf16.msrb.mxu2 %v1874_v38 }
  0x8f   : > { %1302 = vmatpush.bf16.msrb.mxu3 %v2002_v42 }
  0x90   : > { %1261 = vmatpush.bf16.msrb.mxu0 %v1602_v48 }
  0x91   : > { %1275 = vmatpush.bf16.msrb.mxu1 %v1730_v49 }
  0x92   : > { %1289 = vmatpush.bf16.msrb.mxu2 %v1858_v50 }
  0x93   : > { %1303 = vmatpush.bf16.msrb.mxu3 %v1986_v54 }
  0x94   : > { %1262 = vmatpush.bf16.msrb.mxu0 %v1586_v61 }
  0x95   : > { %1276 = vmatpush.bf16.msrb.mxu1 %v1714_v62 }
  0x96   : > { %1290 = vmatpush.bf16.msrb.mxu2 %v1842_v63 }
  0x97   : > { %1304 = vmatpush.bf16.msrb.mxu3 %v1970_v3 }
  0x98   : > { %1263 = vmatpush.bf16.msrb.mxu0 %v1570_v11 }
  0x99   : > { %1277 = vmatpush.bf16.msrb.mxu1 %v1698_v12 }
  0x9a   : > { %1291 = vmatpush.bf16.msrb.mxu2 %v1826_v13 }
  0x9b   : > { %1305 = vmatpush.bf16.msrb.mxu3 %v1954_v18 }
  0x9c   : > { %1264 = vmatpush.bf16.msrb.mxu0 %v1554_v24 }
  0x9d   : > { %1278 = vmatpush.bf16.msrb.mxu1 %v1682_v25 }
  0x9e   : > { %1292 = vmatpush.bf16.msrb.mxu2 %v1810_v26 }
  0x9f   : > { %1306 = vmatpush.bf16.msrb.mxu3 %v1938_v27  ;;  %1265 = vmatmul.bf16.vlgmr.msrb.gmra.mxu0 %v2542_v10 }
  0xa0   : > { %1279 = vmatmul.bf16.vlgmr.msrb.gmra.mxu1 %v2550_v17  ;;  %v2736_v17 = vld [vmem:[%s273_s23] sm:$0xf] }
  0xa1   : > { %1293 = vmatmul.bf16.vlgmr.msrb.gmra.mxu2 %v2518_v59  ;;  %v1342_v38 = vperm.slane %v2736_v17, 0  ;;  %v1343_v44 = vperm.slane %v2736_v17, 1  ;;  %v1344_v13 = vperm.slane %v2736_v17, 2  ;;  %v1345_v20 = vperm.slane %v2736_v17, 3 }
  0xa2   : > { %1307 = vmatmul.bf16.vlgmr.msrb.gmra.mxu3 %v2531_v5 }
  0xbf   : > { %v1098_v28 = vpop.f32.mrf.mxu0 }
  0xc0   : > { %v1112_v29 = vpop.f32.mrf.mxu1 }
  0xc1   : > { %v1113_v36 = vadd.f32 %v1112_v29, %v1098_v28 }
  0xc4   : > { %v1126_v30 = vpop.f32.mrf.mxu2 }
  0xc5   : > { %v1127_v5 = vadd.f32 %v1126_v30, %v1113_v36 }
  0xc7   : > { %v1140_v31 = vpop.f32.mrf.mxu3  ;;  %v1100_v32 = vpop.f32.mrf.mxu0 }
  0xc8   : > { %v1114_v33 = vpop.f32.mrf.mxu1  ;;  %v1141_v40 = vadd.f32 %v1140_v31, %v1127_v5 }
  0xc9   : > { %v1115_v41 = vadd.f32 %v1114_v33, %v1100_v32 }
  0xca   : > { %v1350_v48 = vadd.f32 %v1342_v38, %v1141_v40 }
  0xcc   : > { %v1128_v34 = vpop.f32.mrf.mxu2 }
  0xcd   : > { %v1129_v49 = vadd.f32 %v1128_v34, %v1115_v41 }
  0xcf   : > { %v1142_v35 = vpop.f32.mrf.mxu3 }
  0xd0   : > { %v1143_v54 = vadd.f32 %v1142_v35, %v1129_v49 }
  0xd2   : > { %v1354_v58 = vadd.f32 %v1342_v38, %v1143_v54 }
  0xdc   : > { %v1154_v59 = vpop.f32.mrf.mxu0 }
  0xdd   : > { %v1168_v10 = vpop.f32.mrf.mxu1 }
  0xde   : > { %v1169_v37 = vadd.f32 %v1168_v10, %v1154_v59 }
  0xe4   : > { %v1182_v39 = vpop.f32.mrf.mxu2  ;;  %v1156_v46 = vpop.f32.mrf.mxu0 }
  0xe5   : > { %v1183_v42 = vadd.f32 %v1182_v39, %v1169_v37  ;;  %v1196_v43 = vpop.f32.mrf.mxu3  ;;  %v1170_v47 = vpop.f32.mrf.mxu1 }
  0xe6   : > { %v1171_v51 = vadd.f32 %v1170_v47, %v1156_v46 }
  0xe7   : > { %v1197_v45 = vadd.f32 %v1196_v43, %v1183_v42 }
  0xe9   : > { %v1351_v50 = vadd.f32 %v1343_v44, %v1197_v45 }
  0xeb   : > { %v1358_v52 = vpack.c.bf16 %v1351_v50, %v1350_v48 }
  0xec   : > { %v1184_v53 = vpop.f32.mrf.mxu2 }
  0xed   : > { %1362 = vst [vmem:[%s2741_s27] sm:$0xff] %v1358_v52  ;;  %v1185_v55 = vadd.f32 %v1184_v53, %v1171_v51  ;;  %v1198_v56 = vpop.f32.mrf.mxu3 }
  0xef   : > { %v1199_v57 = vadd.f32 %v1198_v56, %v1185_v55 }
  0xf1   : > { %v1355_v60 = vadd.f32 %v1343_v44, %v1199_v57 }
  0xf3   : > { %v1360_v61 = vpack.c.bf16 %v1355_v60, %v1354_v58 }
  0xf4   : > { %v1391_v59 = vld [vmem:[%s2741_s27] sm:$0xff] (%p2403_p9) }
  0xf5   : > { %1364 = vst [vmem:[%s2741_s27 + $0x10] sm:$0xff] %v1360_v61 }
  0xf6   : > { %1392 = vst [vmem:[%s1378_s30] sm:$0xff] (%p2403_p9), %v1391_v59 }
  0xfc   : > { %v1210_v62 = vpop.f32.mrf.mxu0  ;;  %v1395_v5 = vld [vmem:[%s2741_s27 + $0x10] sm:$0xff] (%p2403_p9) }
  0xfd   : > { %v1224_v63 = vpop.f32.mrf.mxu1  ;;  %1396 = vst [vmem:[%s1378_s30 + $0x20] sm:$0xff] (%p2403_p9), %v1395_v5 }
  0xfe   : > { %v1225_v6 = vadd.f32 %v1224_v63, %v1210_v62 }
 0x104   : > { %v1238_v0 = vpop.f32.mrf.mxu2  ;;  %v1212_v2 = vpop.f32.mrf.mxu0 }
 0x105   : > { %v1252_v1 = vpop.f32.mrf.mxu3  ;;  %v1226_v3 = vpop.f32.mrf.mxu1  ;;  %v1239_v11 = vadd.f32 %v1238_v0, %v1225_v6 }
 0x106   : > { %v1227_v16 = vadd.f32 %v1226_v3, %v1212_v2 }
 0x107   : > { %v1253_v15 = vadd.f32 %v1252_v1, %v1239_v11 }
 0x109   : > { %v1352_v24 = vadd.f32 %v1344_v13, %v1253_v15 }
 0x10c   : > { %v1240_v4 = vpop.f32.mrf.mxu2 }
 0x10d   : > { %v1254_v7 = vpop.f32.mrf.mxu3  ;;  %v1241_v25 = vadd.f32 %v1240_v4, %v1227_v16 }
 0x10f   : > { %v1255_v30 = vadd.f32 %v1254_v7, %v1241_v25 }
 0x111   : > { %v1356_v34 = vadd.f32 %v1344_v13, %v1255_v30 }
 0x11c   : > { %v1266_v8 = vpop.f32.mrf.mxu0 }
 0x11d   : > { %v1280_v9 = vpop.f32.mrf.mxu1 }
 0x11e   : > { %v1281_v12 = vadd.f32 %v1280_v9, %v1266_v8 }
 0x124   : > { %v1294_v14 = vpop.f32.mrf.mxu2  ;;  %v1268_v22 = vpop.f32.mrf.mxu0 }
 0x125   : > { %v1295_v18 = vadd.f32 %v1294_v14, %v1281_v12  ;;  %v1308_v19 = vpop.f32.mrf.mxu3  ;;  %v1282_v23 = vpop.f32.mrf.mxu1 }
 0x126   : > { %v1283_v28 = vadd.f32 %v1282_v23, %v1268_v22 }
 0x127   : > { %v1309_v21 = vadd.f32 %v1308_v19, %v1295_v18 }
 0x129   : > { %v1353_v26 = vadd.f32 %v1345_v20, %v1309_v21 }
 0x12b   : > { %v1359_v27 = vpack.c.bf16 %v1353_v26, %v1352_v24 }
 0x12c   : > { %v1296_v29 = vpop.f32.mrf.mxu2 }
 0x12d   : > { %1363 = vst [vmem:[%s2741_s27 + $0x8] sm:$0xff] %v1359_v27  ;;  %v1297_v31 = vadd.f32 %v1296_v29, %v1283_v28  ;;  %v1310_v32 = vpop.f32.mrf.mxu3 }
 0x12f   : > { %v1311_v33 = vadd.f32 %v1310_v32, %v1297_v31 }
 0x131   : > { %v1357_v35 = vadd.f32 %v1345_v20, %v1311_v33  ;;  %1372 = sbr.rel (!%p2403_p9) target bundleno = 318 (0x13e), region = 48 }
 0x133   : > { %v1361_v36 = vpack.c.bf16 %v1357_v35, %v1356_v34 }
 0x134   : > { %v1393_v10 = vld [vmem:[%s2741_s27 + $0x8] sm:$0xff] (%p2403_p9) }
 0x135   : > { %1365 = vst [vmem:[%s2741_s27 + $0x18] sm:$0xff] %v1361_v36 }
 0x136   : > { %1394 = vst [vmem:[%s1378_s30 + $0x8] sm:$0xff] %v1393_v10 }
 0x13c   : > { %v1397_v17 = vld [vmem:[%s2741_s27 + $0x18] sm:$0xff] }
 0x13d   : > { %1398 = vst [vmem:[%s1378_s30 + $0x28] sm:$0xff] %v1397_v17 }
 0x13e PF: > { %s16_s17 = sadd.s32 1, %s2328_s17   ;;  %s2784_s12 = smov %s2312_s13 }
 0x13f   : > { %p13_p2 = scmp.ge.s32.totalorder %s16_s17, 4   ;;  %s2785_s13 = smov %s2316_s14 }
 0x140   : > { %s2786_s14 = smov %s2401_s24  ;;  %s2787_s15 = smov %s2324_s16 }
 0x141   : > { %s2788_s16 = smov %s2790_s19  ;;  %15 = sbr.rel (!%p13_p2) target bundleno = 4 (0x4), region = 109 }
 0x146   :  { %1414 = vsyncpa [#allocation4], 1 }
 0x147   :  { %1416 = vsyncpa [#allocation4 + $0x1], 1 }

// kernel: clip_caption_forward.22
= control target key start
LH: loop header
LB: loop body
LE: loop exit
PB: predicated region body
PF: predicated region fallthrough
CT: control target
= control target key end

     0   :  { %s632_s6 = smov 0   ;;  %s754_s0 = inlined_call_operand.vmem [shape: bf16[2,16,384], index: 0, kind: input, shape index: {}]   ;;  %s755_s1 = inlined_call_operand.vmem [shape: bf16[2,16,128], index: 1, kind: output, shape index: {}]  }
   0x1 LB: > { %s513_s7 = sadd.s32 4294967295, %s617_s6   ;;  %p517_p0 = scmp.ge.s32.totalorder %s617_s6, 1  ;;  %s617_s6 = sphi %s632_s6, %s11_s6  }
   0x2   : > { %p87_p1 = scmp.lt.s32.totalorder %s617_s6, 3 }
   0x4   : > { %p88_p2 = pnand %p517_p0, %p87_p1 }
   0x5   : > { %p107_p3 = scmp.lt.s32.totalorder (!%p88_p2), %s513_s7, 1  ;;  %s619_s12 = smov (!%p88_p2), 96  }
   0x6   : > { %91 = sbr.rel (%p88_p2) target bundleno = 1083 (0x43b), region = 24  ;;  %s620_s13 = smov (!%p88_p2), 32  }
   0x7   : > { %s621_s14 = smov (!%p88_p2), 64  }
   0xb   : > { %s757_s7 = smov (!%p107_p3, %s513_s7), 1  ;;  %vm137_vm0 = vcmask 261120   ;;  %v122_v10 = vlaneseq  ;;  %vm162_vm2 = vcmask 130048   ;;  %vm448_vm4 = vcmask 523264  }
   0xc   : > { %s552_s8 = smul.u32 24, %s757_s7  ;;  %s543_s15 = sshll.u32 %s757_s7, 3  ;;  %vm451_vm5 = vcmask 785408  }
   0xd   : > { %v659_v11 = vshrl.u32 %v122_v10, 7  ;;  %v661_v12 = vand.u32 127, %v122_v10  ;;  %s116_s18 = scalar_lea.vmem %s755_s1, %s543_s15 }
   0xe   : > { %s646_s11 = scalar_lea.vmem %s754_s0, %s552_s8 }
   0xf   : > { %v544_v0 = vld [vmem:[%s646_s11 + $0x4] sm:$0xf]  ;;  %v525_v1 = vld [vmem:[%s646_s11 + $0xc] sm:$0xf0]  ;;  %v523_v2 = vld [vmem:[%s646_s11] sm:$0xf]  ;;  %vm127_vm1 = vcmp.le.s32.totalorder %v661_v12, %v659_v11 }
  0x10   : > { %v528_v3 = vor.u32 %v544_v0, %v525_v1  ;;  %v545_v4 = vld [vmem:[%s646_s11 + $0x8] sm:$0xf0]  ;;  %v670_v17 = vadd.s32 8, %v659_v11  ;;  %v532_v42 = vld [vmem:[%s646_s11 + $0x8] sm:$0xf] }
  0x11   : > { %v524_v5 = vor.u32 %v545_v4, %v523_v2  ;;  %v546_v43 = vld [vmem:[%s646_s11 + $0x10] sm:$0xf0] }
  0x12   : > { %v142_v6 = vsel %vm137_vm0, %v528_v3, 0  ;;  %211 = vrot.lane.b32.xlu1 %v528_v3, %s619_s12  ;;  %vm128_vm3 = vcmp.le.s32.totalorder %v661_v12, %v670_v17  ;;  %v694_v44 = vor.u32 %v546_v43, %v532_v42 }
  0x13   : > { %151 = vmatpush.bf16.xpose.msra.mxu0 %v142_v6  ;;  %209 = vrot.lane.b32.xlu2 %v524_v5, %s619_s12 }
  0x14   : > { %202 = vmatpush.bf16.msra.mxu1 %v694_v44 }
  0x1a   : > { %529 = vmatmul.msk.bf16.vlgmr.msra.gmra.mxu0 %vm137_vm0, %v524_v5 }
  0x1b   : > { %353 = vrot.lane.b32.xlu2 %v528_v3, %s620_s13 }
  0x6d   : > { %v210_v9 = vpop.permute.xlu2 %209 }
  0x75   : > { %v354_v30 = vpop.permute.xlu2 %353 }
  0x76   : > { %v359_v32 = vsel %vm137_vm0, %v354_v30, 0 }
  0x77   : > { %368 = vmatpush.bf16.xpose.msrb.mxu0 %v359_v32 }
  0x84   : > { %v212_v7 = vpop.permute.xlu1 %211 }
  0x85   : > { %v217_v8 = vsel %vm137_vm0, %v212_v7, 0 }
  0x86   : > { %226 = vmatpush.bf16.xpose.msra.mxu2 %v217_v8 }
  0x8d   : > { %535 = vmatmul.msk.bf16.vlgmr.msra.gmra.mxu2 %vm137_vm0, %v210_v9 }
  0x97   : > { %v153_v13 = vpop.f32.mrf.mxu0 }
  0x98   : > { %v158_v14 = vmul.f32 0.17677669, %v153_v13 }
  0x9a   : > { %v160_v15 = vsel %vm127_vm1, %v158_v14, -1e+30 }
  0x9b   : > { %v163_v16 = vsel %vm162_vm2, %v160_v15, -inf }
  0x9c   : > { %164 = vmax.xlane.f32.xlu0 %v163_v16 }
  0x9f   : > { %v155_v18 = vpop.f32.mrf.mxu0 }
  0xa0   : > { %v159_v19 = vmul.f32 0.17677669, %v155_v18 }
  0xa2   : > { %v161_v20 = vsel %vm128_vm3, %v159_v19, -1e+30 }
  0xa3   : > { %v166_v21 = vsel %vm162_vm2, %v161_v20, -inf }
  0xa4   : > { %167 = vmax.xlane.f32.xlu0 %v166_v21 }
  0xb8   : > { %282 = vrot.lane.b32.xlu0 %v528_v3, %s621_s14 }
  0xc0   : > { %280 = vrot.lane.b32.xlu0 %v524_v5, %s621_s14 }
 0x10f   : > { %v165_v22 = vpop.xlane.xlu0 %164 }
 0x110   : > { %v169_v23 = vsub.f32 %v160_v15, %v165_v22  ;;  %v228_v31 = vpop.f32.mrf.mxu2 }
 0x111   : > { %v233_v33 = vmul.f32 0.17677669, %v228_v31 }
 0x112   : > { %v171_v24 = vmul.f32 1.442695, %v169_v23 }
 0x113   : > { %v235_v34 = vsel %vm127_vm1, %v233_v33, -1e+30 }
 0x114   : > { %579 = vpow2.f32 %v171_v24  ;;  %v237_v35 = vsel %vm162_vm2, %v235_v34, -inf }
 0x115   : > { %238 = vmax.xlane.f32.xlu0 %v237_v35 }
 0x117   : > { %v168_v25 = vpop.xlane.xlu0 %167 }
 0x118   : > { %v170_v26 = vsub.f32 %v161_v20, %v168_v25  ;;  %v230_v38 = vpop.f32.mrf.mxu2 }
 0x119   : > { %v234_v39 = vmul.f32 0.17677669, %v230_v38 }
 0x11a   : > { %v580_v27 = vpop.eup %579  ;;  %v173_v28 = vmul.f32 1.442695, %v170_v26 }
 0x11b   : > { %v175_v29 = vsel %vm162_vm2, %v580_v27, 0.0  ;;  %v236_v40 = vsel %vm128_vm3, %v234_v39, -1e+30 }
 0x11c   : > { %581 = vpow2.f32 %v173_v28  ;;  %176 = vadd.xlane.f32.xlu1 %v175_v29  ;;  %v240_v41 = vsel %vm162_vm2, %v236_v40, -inf }
 0x122   : > { %v582_v36 = vpop.eup %581 }
 0x123   : > { %v178_v37 = vsel %vm162_vm2, %v582_v36, 0.0 }
 0x124   : > { %179 = vadd.xlane.f32.xlu2 %v178_v37 }
 0x12a   : > { %v283_v45 = vpop.permute.xlu0 %282 }
 0x12b   : > { %v288_v46 = vsel %vm137_vm0, %v283_v45, 0 }
 0x12c   : > { %297 = vmatpush.bf16.xpose.msrb.mxu1 %v288_v46 }
 0x132   : > { %v281_v55 = vpop.permute.xlu0 %280 }
 0x13c   : > { %351 = vrot.lane.b32.xlu2 %v524_v5, %s620_s13 }
 0x165   : > { %241 = vmax.xlane.f32.xlu2 %v240_v41 }
 0x17d   : > { %260 = vrot.lane.b32.xlu2 %v694_v44, %s619_s12 }
 0x188   : > { %v239_v7 = vpop.xlane.xlu0 %238 }
 0x189   : > { %v243_v10 = vsub.f32 %v235_v34, %v239_v7 }
 0x18b   : > { %v245_v15 = vmul.f32 1.442695, %v243_v10 }
 0x18f   : > { %v177_v47 = vpop.xlane.xlu1 %176 }
 0x190   : > { %583 = vrcp.f32 %v177_v47 }
 0x196   : > { %v584_v49 = vpop.eup %583 }
 0x197   : > { %v180_v48 = vpop.xlane.xlu2 %179  ;;  %v183_v52 = vmul.f32 %v584_v49, %v580_v27 }
 0x198   : > { %585 = vrcp.f32 %v180_v48 }
 0x19e   : > { %v586_v50 = vpop.eup %585 }
 0x19f   : > { %v352_v51 = vpop.permute.xlu2 %351  ;;  %v184_v53 = vmul.f32 %v586_v50, %v582_v36 }
 0x1a0   : > { %539 = vmatmul.msk.bf16.vlgmr.msrb.gmra.mxu0 %vm137_vm0, %v352_v51 }
 0x1a1   : > { %v185_v54 = vpack.c.bf16 %v184_v53, %v183_v52 }
 0x1a3   : > { %534 = vmatmul.msk.bf16.vlgmr.msra.gmra.mxu1 %vm162_vm2, %v185_v54 }
 0x1b3   : > { %537 = vmatmul.msk.bf16.vlgmr.msrb.gmra.mxu1 %vm137_vm0, %v281_v55 }
 0x1d8   : > { %v242_v56 = vpop.xlane.xlu2 %241 }
 0x1d9   : > { %v244_v57 = vsub.f32 %v236_v40, %v242_v56 }
 0x1db   : > { %v247_v58 = vmul.f32 1.442695, %v244_v57 }
 0x1dd   : > { %587 = vpow2.f32 %v247_v58 }
 0x1de   : > { %589 = vpow2.f32 %v245_v15 }
 0x1e0   : > { %v261_v26 = vpop.permute.xlu2 %260 }
 0x1e1   : > { %273 = vmatpush.bf16.msra.mxu3 %v261_v26 }
 0x1e3   : > { %v703_v59 = vpop.eup %587 }
 0x1e4   : > { %v252_v60 = vsel %vm162_vm2, %v703_v59, 0.0  ;;  %v590_v21 = vpop.eup %589 }
 0x1e5   : > { %253 = vadd.xlane.f32.xlu0 %v252_v60  ;;  %v249_v22 = vsel %vm162_vm2, %v590_v21, 0.0 }
 0x21d   : > { %v370_v61 = vpop.f32.mrf.mxu0 }
 0x21e   : > { %v375_v62 = vmul.f32 0.17677669, %v370_v61 }
 0x220   : > { %v707_v63 = vpop.f32.mrf.mxu1  ;;  %v377_v0 = vsel %vm127_vm1, %v375_v62, -1e+30 }
 0x221   : > { %v379_v1 = vsel %vm162_vm2, %v377_v0, -inf }
 0x222   : > { %380 = vmax.xlane.f32.xlu1 %v379_v1 }
 0x225   : > { %v372_v2 = vpop.f32.mrf.mxu0 }
 0x226   : > { %v376_v3 = vmul.f32 0.17677669, %v372_v2 }
 0x228   : > { %v713_v4 = vpop.f32.mrf.mxu1  ;;  %v378_v5 = vsel %vm128_vm3, %v376_v3, -1e+30 }
 0x229   : > { %v382_v6 = vsel %vm162_vm2, %v378_v5, -inf }
 0x22a   : > { %383 = vmax.xlane.f32.xlu1 %v382_v6 }
 0x230   : > { %v299_v8 = vpop.f32.mrf.mxu1 }
 0x231   : > { %v304_v9 = vmul.f32 0.17677669, %v299_v8 }
 0x233   : > { %v306_v13 = vsel %vm127_vm1, %v304_v9, -1e+30 }
 0x234   : > { %v308_v14 = vsel %vm162_vm2, %v306_v13, -inf }
 0x235   : > { %309 = vmax.xlane.f32.xlu1 %v308_v14 }
 0x238   : > { %v301_v16 = vpop.f32.mrf.mxu1 }
 0x239   : > { %v305_v18 = vmul.f32 0.17677669, %v301_v16 }
 0x23b   : > { %v307_v19 = vsel %vm128_vm3, %v305_v18, -1e+30 }
 0x23c   : > { %v311_v20 = vsel %vm162_vm2, %v307_v19, -inf }
 0x23d   : > { %312 = vmax.xlane.f32.xlu1 %v311_v20 }
 0x245   : > { %250 = vadd.xlane.f32.xlu1 %v249_v22 }
 0x258   : > { %v254_v38 = vpop.xlane.xlu0 %253 }
 0x295   : > { %v381_v11 = vpop.xlane.xlu1 %380 }
 0x296   : > { %v385_v23 = vsub.f32 %v377_v0, %v381_v11 }
 0x298   : > { %v387_v24 = vmul.f32 1.442695, %v385_v23 }
 0x29a   : > { %591 = vpow2.f32 %v387_v24 }
 0x29d   : > { %v384_v25 = vpop.xlane.xlu1 %383 }
 0x29e   : > { %v386_v27 = vsub.f32 %v378_v5, %v384_v25 }
 0x2a0   : > { %v592_v28 = vpop.eup %591  ;;  %v389_v29 = vmul.f32 1.442695, %v386_v27 }
 0x2a1   : > { %v391_v12 = vsel %vm162_vm2, %v592_v28, 0.0 }
 0x2a2   : > { %593 = vpow2.f32 %v389_v29  ;;  %392 = vadd.xlane.f32.xlu1 %v391_v12 }
 0x2a8   : > { %v594_v17 = vpop.eup %593  ;;  %v310_v30 = vpop.xlane.xlu1 %309 }
 0x2a9   : > { %v314_v31 = vsub.f32 %v306_v13, %v310_v30  ;;  %v394_v32 = vsel %vm162_vm2, %v594_v17, 0.0 }
 0x2aa   : > { %395 = vadd.xlane.f32.xlu0 %v394_v32 }
 0x2ab   : > { %v316_v33 = vmul.f32 1.442695, %v314_v31 }
 0x2ad   : > { %595 = vpow2.f32 %v316_v33 }
 0x2b0   : > { %v313_v34 = vpop.xlane.xlu1 %312 }
 0x2b1   : > { %v315_v35 = vsub.f32 %v307_v19, %v313_v34 }
 0x2b3   : > { %v596_v36 = vpop.eup %595  ;;  %v318_v37 = vmul.f32 1.442695, %v315_v35 }
 0x2b4   : > { %v320_v39 = vsel %vm162_vm2, %v596_v36, 0.0 }
 0x2b5   : > { %597 = vpow2.f32 %v318_v37  ;;  %321 = vadd.xlane.f32.xlu1 %v320_v39 }
 0x2b6   : > { %599 = vrcp.f32 %v254_v38 }
 0x2b8   : > { %v251_v40 = vpop.xlane.xlu1 %250 }
 0x2b9   : > { %601 = vrcp.f32 %v251_v40 }
 0x2bb   : > { %v598_v41 = vpop.eup %597 }
 0x2bc   : > { %v323_v42 = vsel %vm162_vm2, %v598_v41, 0.0  ;;  %v600_v43 = vpop.eup %599 }
 0x2bd   : > { %324 = vadd.xlane.f32.xlu0 %v323_v42  ;;  %v258_v47 = vmul.f32 %v600_v43, %v703_v59 }
 0x2bf   : > { %v602_v45 = vpop.eup %601 }
 0x2c0   : > { %v257_v46 = vmul.f32 %v602_v45, %v590_v21 }
 0x2c2   : > { %v259_v48 = vpack.c.bf16 %v258_v47, %v257_v46 }
 0x2c4   : > { %536 = vmatmul.msk.bf16.vlgmr.msra.gmra.mxu3 %vm162_vm2, %v259_v48 }
 0x2ce   : > { %331 = vrot.lane.b32.xlu1 %v694_v44, %s621_s14 }
 0x2d1   : > { %402 = vrot.lane.b32.xlu0 %v694_v44, %s620_s13 }
 0x315   : > { %v393_v50 = vpop.xlane.xlu1 %392 }
 0x31d   : > { %v396_v49 = vpop.xlane.xlu0 %395 }
 0x328   : > { %v322_v52 = vpop.xlane.xlu1 %321 }
 0x330   : > { %v325_v51 = vpop.xlane.xlu0 %324 }
 0x331   : > { %603 = vrcp.f32 %v325_v51 }
 0x332   : > { %605 = vrcp.f32 %v322_v52 }
 0x333   : > { %607 = vrcp.f32 %v396_v49 }
 0x334   : > { %609 = vrcp.f32 %v393_v50 }
 0x337   : > { %v604_v53 = vpop.eup %603 }
 0x338   : > { %v606_v54 = vpop.eup %605  ;;  %v329_v56 = vmul.f32 %v604_v53, %v598_v41 }
 0x339   : > { %v608_v55 = vpop.eup %607  ;;  %v328_v58 = vmul.f32 %v606_v54, %v596_v36 }
 0x33a   : > { %v610_v57 = vpop.eup %609  ;;  %v400_v60 = vmul.f32 %v608_v55, %v594_v17 }
 0x33b   : > { %v330_v61 = vpack.c.bf16 %v329_v56, %v328_v58  ;;  %v399_v62 = vmul.f32 %v610_v57, %v592_v28 }
 0x33d   : > { %v401_v0 = vpack.c.bf16 %v400_v60, %v399_v62 }
 0x340   : > { %v332_v59 = vpop.permute.xlu1 %331 }
 0x341   : > { %344 = vmatpush.bf16.msrb.mxu3 %v332_v59 }
 0x343   : > { %v403_v44 = vpop.permute.xlu0 %402 }
 0x344   : > { %538 = vmatmul.msk.bf16.vlgmr.msrb.gmra.mxu3 %vm162_vm2, %v330_v61  ;;  %415 = vmatpush.bf16.msrb.mxu2 %v403_v44 }
 0x347   : > { %v275_v1 = vpop.f32.mrf.mxu3  ;;  %540 = vmatmul.msk.bf16.vlgmr.msrb.gmra.mxu2 %vm162_vm2, %v401_v0 }
 0x34f   : > { %v277_v2 = vpop.f32.mrf.mxu3 }
 0x350   : > { %v564_v3 = vpack.i.bf16 %v277_v2, %v275_v1 }
 0x352   : > { %565 = vrot.lane.b32.xlu2 %v564_v3, %s620_s13 }
 0x3ac   : > { %v566_v13 = vpop.permute.xlu2 %565 }
 0x3ad   : > { %v568_v15 = vunpack.i.h.bf16 %v566_v13  ;;  %v567_v16 = vunpack.i.l.bf16 %v566_v13 }
 0x3af   : > { %v447_v21 = vsel %vm137_vm0, %v713_v4, %v568_v15  ;;  %v446_v22 = vsel %vm137_vm0, %v707_v63, %v567_v16 }
 0x3c7   : > { %v346_v5 = vpop.f32.mrf.mxu3 }
 0x3ca   : > { %v417_v6 = vpop.f32.mrf.mxu2 }
 0x3cf   : > { %v348_v7 = vpop.f32.mrf.mxu3 }
 0x3d0   : > { %v569_v8 = vpack.i.bf16 %v348_v7, %v346_v5 }
 0x3d2   : > { %570 = vrot.lane.b32.xlu2 %v569_v8, %s621_s14  ;;  %v419_v9 = vpop.f32.mrf.mxu2 }
 0x3d3   : > { %v574_v10 = vpack.i.bf16 %v419_v9, %v417_v6 }
 0x3da   : > { %575 = vrot.lane.b32.xlu2 %v574_v10, %s619_s12 }
 0x42c   : > { %v571_v14 = vpop.permute.xlu2 %570 }
 0x42d   : > { %v573_v18 = vunpack.i.h.bf16 %v571_v14  ;;  %v572_v19 = vunpack.i.l.bf16 %v571_v14 }
 0x42f   : > { %v450_v24 = vsel %vm448_vm4, %v447_v21, %v573_v18  ;;  %v449_v25 = vsel %vm448_vm4, %v446_v22, %v572_v19 }
 0x434   : > { %v576_v20 = vpop.permute.xlu2 %575 }
 0x435   : > { %v578_v11 = vunpack.i.h.bf16 %v576_v20  ;;  %v577_v23 = vunpack.i.l.bf16 %v576_v20 }
 0x437   : > { %v453_v26 = vsel %vm451_vm5, %v450_v24, %v578_v11  ;;  %v452_v27 = vsel %vm451_vm5, %v449_v25, %v577_v23 }
 0x438   : > { %v550_v28 = vpack.c.bf16 %v453_v26, %v452_v27 }
 0x43a   : > { %551 = vst [vmem:[%s116_s18] sm:$0xff] %v550_v28  }
 0x43b PF: > { %s11_s6 = sadd.s32 1, %s617_s6  }
 0x43c   : > { %p8_p4 = scmp.ge.s32.totalorder %s11_s6, 4  }
 0x43e   :  { %10 = sbr.rel (!%p8_p4) target bundleno = 1 (0x1), region = 54 }

// kernel: clip_caption_forward.23
= control target key start
LH: loop header
LB: loop body
LE: loop exit
PB: predicated region body
PF: predicated region fallthrough
CT: control target
= control target key end

     0   :  { %s289_s1 = inlined_call_operand.vmem [shape: bf16[128,128], index: 1, kind: input, shape index: {}]   ;;  %s290_s2 = inlined_call_operand.vmem [shape: f32[1,128], index: 2, kind: input, shape index: {}]   ;;  %s291_s0 = inlined_call_operand.vmem [shape: bf16[32,128], index: 0, kind: input, shape index: {}]   ;;  %s292_s3 = inlined_call_operand.vmem [shape: bf16[32,128], index: 3, kind: output, shape index: {}]  }
   0x1   :  { %v209_v0 = vld [vmem:[%s289_s1 + $0x38] sm:$0xff]  ;;  %v208_v1 = vld [vmem:[%s289_s1 + $0x30] sm:$0xff]  ;;  %v207_v2 = vld [vmem:[%s289_s1 + $0x28] sm:$0xff] }
   0x2   :  { %106 = vmatpush.bf16.msra.mxu0 %v209_v0  ;;  %221 = vmatpush.bf16.msra.mxu1 %v209_v0  ;;  %v206_v3 = vld [vmem:[%s289_s1 + $0x20] sm:$0xff]  ;;  %v205_v4 = vld [vmem:[%s289_s1 + $0x18] sm:$0xff]  ;;  %v204_v5 = vld [vmem:[%s289_s1 + $0x10] sm:$0xff] }
   0x3   :  { %v203_v6 = vld [vmem:[%s289_s1 + $0x8] sm:$0xff]  ;;  %v202_v7 = vld [vmem:[%s289_s1] sm:$0xff] }
   0x4   :  { %v200_v8 = vld [vmem:[%s291_s0] sm:$0xff]  ;;  %v201_v9 = vld [vmem:[%s291_s0 + $0x8] sm:$0xff] }
   0x5   :  { %v229_v12 = vld [vmem:[%s290_s2] ss:$0 sm:$0xff] }
   0x6   :  { %107 = vmatpush.bf16.msra.mxu0 %v208_v1  ;;  %222 = vmatpush.bf16.msra.mxu1 %v208_v1 }
   0xa   :  { %108 = vmatpush.bf16.msra.mxu0 %v207_v2  ;;  %223 = vmatpush.bf16.msra.mxu1 %v207_v2 }
   0xe   :  { %109 = vmatpush.bf16.msra.mxu0 %v206_v3  ;;  %224 = vmatpush.bf16.msra.mxu1 %v206_v3 }
  0x12   :  { %110 = vmatpush.bf16.msra.mxu0 %v205_v4  ;;  %225 = vmatpush.bf16.msra.mxu1 %v205_v4 }
  0x16   :  { %111 = vmatpush.bf16.msra.mxu0 %v204_v5  ;;  %226 = vmatpush.bf16.msra.mxu1 %v204_v5 }
  0x1a   :  { %112 = vmatpush.bf16.msra.mxu0 %v203_v6  ;;  %227 = vmatpush.bf16.msra.mxu1 %v203_v6 }
  0x1e   :  { %113 = vmatpush.bf16.msra.mxu0 %v202_v7  ;;  %228 = vmatpush.bf16.msra.mxu1 %v202_v7 }
  0x21   :  { %114 = vmatmul.bf16.vlgmr.msra.gmra.mxu0 %v200_v8  ;;  %119 = vmatmul.bf16.vlgmr.msra.gmra.mxu1 %v201_v9 }
  0x9e   :  { %v115_v10 = vpop.f32.mrf.mxu0  ;;  %v120_v11 = vpop.f32.mrf.mxu1 }
  0x9f   :  { %v144_v15 = vadd.f32 %v229_v12, %v115_v10  ;;  %v146_v16 = vadd.f32 %v229_v12, %v120_v11 }
  0xa6   :  { %v117_v13 = vpop.f32.mrf.mxu0  ;;  %v122_v14 = vpop.f32.mrf.mxu1 }
  0xa7   :  { %v145_v17 = vadd.f32 %v229_v12, %v117_v13  ;;  %v147_v18 = vadd.f32 %v229_v12, %v122_v14 }
  0xa9   :  { %v213_v19 = vpack.c.bf16 %v145_v17, %v144_v15  ;;  %v218_v20 = vpack.c.bf16 %v147_v18, %v146_v16 }
  0xab   :  { %214 = vst [vmem:[%s292_s3] sm:$0xff] %v213_v19  }
  0xac   :  { %220 = vst [vmem:[%s292_s3 + $0x8] sm:$0xff] %v218_v20  }

// kernel: clip_caption_forward.24
= control target key start
LH: loop header
LB: loop body
LE: loop exit
PB: predicated region body
PF: predicated region fallthrough
CT: control target
= control target key end

     0   :  { %v219_v18 = vmov 128.0   ;;  %s300_s0 = inlined_call_operand.vmem [shape: bf16[32,128], index: 0, kind: input, shape index: {}]   ;;  %s301_s1 = inlined_call_operand.vmem [shape: bf16[32,128], index: 1, kind: input, shape index: {}]   ;;  %s302_s4 = inlined_call_operand.vmem [shape: bf16[32,128], index: 4, kind: output, shape index: {0}]   ;;  %s303_s2 = inlined_call_operand.vmem [shape: f32[1,128], index: 2, kind: input, shape index: {}]   ;;  %s304_s3 = inlined_call_operand.vmem [shape: f32[1,128], index: 3, kind: input, shape index: {}]   ;;  %s305_s5 = inlined_call_operand.vmem [shape: bf16[32,128], index: 5, kind: output, shape index: {1}]  }
   0x1   :  { %v202_v0 = vld [vmem:[%s300_s0 + $0x8] sm:$0xff]   ;;  %v167_v2 = vld [vmem:[%s300_s0] sm:$0xff]   ;;  %209 = vrcp.f32 %v219_v18 }
   0x2   :  { %v203_v1 = vld [vmem:[%s301_s1 + $0x8] sm:$0xff]   ;;  %v172_v3 = vunpack.c.l.bf16 %v202_v0  ;;  %v168_v5 = vunpack.c.l.bf16 %v167_v2  ;;  %v175_v6 = vld [vmem:[%s301_s1] sm:$0xff]   ;;  %v173_v7 = vunpack.c.h.bf16 %v202_v0  ;;  %v169_v10 = vunpack.c.h.bf16 %v167_v2 }
   0x3   :  { %v180_v4 = vunpack.c.l.bf16 %v203_v1  ;;  %v176_v8 = vunpack.c.l.bf16 %v175_v6  ;;  %v181_v9 = vunpack.c.h.bf16 %v203_v1  ;;  %v177_v11 = vunpack.c.h.bf16 %v175_v6 }
   0x5   :  { %v37_v12 = vadd.f32 %v180_v4, %v172_v3  ;;  %v35_v13 = vadd.f32 %v176_v8, %v168_v5  ;;  %v38_v14 = vadd.f32 %v181_v9, %v173_v7  ;;  %v36_v15 = vadd.f32 %v177_v11, %v169_v10 }
   0x7   :  { %51 = vadd.xlane.f32.xlu1 %v37_v12  ;;  %47 = vadd.xlane.f32.xlu0 %v35_v13  ;;  %v190_v16 = vpack.c.bf16 %v38_v14, %v37_v12  ;;  %v185_v17 = vpack.c.bf16 %v36_v15, %v35_v13  ;;  %v210_v19 = vpop.eup %209 }
   0x8   :  { %v56_v20 = vmul.f32 128.0, %v210_v19  ;;  %vm60_vm0 = vweird.f32 %v210_v19 }
   0x9   :  { %204 = vst [vmem:[%s302_s4 + $0x8] sm:$0xff] %v190_v16  }
   0xa   :  { %186 = vst [vmem:[%s302_s4] sm:$0xff] %v185_v17   ;;  %v57_v21 = vsub.f32 1.0, %v56_v20 }
   0xc   :  { %v58_v22 = vmul.f32 %v210_v19, %v57_v21 }
   0xe   :  { %v59_v23 = vadd.f32 %v210_v19, %v58_v22 }
   0xf   :  { %53 = vadd.xlane.f32.xlu1 %v38_v14  ;;  %49 = vadd.xlane.f32.xlu0 %v36_v15 }
  0x10   :  { %v61_v24 = vsel %vm60_vm0, %v210_v19, %v59_v23  ;;  %v208_v19 = vld [vmem:[%s304_s3] ss:$0 sm:$0xff] }
  0x7a   :  { %v52_v25 = vpop.xlane.xlu1 %51  ;;  %v48_v27 = vpop.xlane.xlu0 %47 }
  0x7b   :  { %v64_v26 = vmul.f32 %v61_v24, %v52_v25  ;;  %v62_v28 = vmul.f32 %v61_v24, %v48_v27 }
  0x7d   :  { %v268_v29 = vsub.f32 %v37_v12, %v64_v26  ;;  %v270_v30 = vsub.f32 %v35_v13, %v62_v28  ;;  %v207_v12 = vld [vmem:[%s303_s2] ss:$0 sm:$0xff] }
  0x7f   :  { %v72_v31 = vmul.f32 %v268_v29, %v268_v29  ;;  %v70_v32 = vmul.f32 %v270_v30, %v270_v30 }
  0x81   :  { %78 = vadd.xlane.f32.xlu0 %v72_v31  ;;  %74 = vadd.xlane.f32.xlu2 %v70_v32 }
  0x82   :  { %v54_v33 = vpop.xlane.xlu1 %53  ;;  %v50_v35 = vpop.xlane.xlu0 %49 }
  0x83   :  { %v65_v34 = vmul.f32 %v61_v24, %v54_v33  ;;  %v63_v36 = vmul.f32 %v61_v24, %v50_v35 }
  0x85   :  { %v276_v37 = vsub.f32 %v38_v14, %v65_v34  ;;  %v278_v38 = vsub.f32 %v36_v15, %v63_v36 }
  0x87   :  { %v73_v39 = vmul.f32 %v276_v37, %v276_v37  ;;  %v71_v40 = vmul.f32 %v278_v38, %v278_v38 }
  0x89   :  { %80 = vadd.xlane.f32.xlu1 %v73_v39  ;;  %76 = vadd.xlane.f32.xlu2 %v71_v40 }
  0xf4   :  { %v79_v41 = vpop.xlane.xlu0 %78  ;;  %v75_v42 = vpop.xlane.xlu2 %74 }
  0xf5   :  { %v84_v43 = vmul.f32 %v79_v41, %v61_v24  ;;  %v82_v44 = vmul.f32 %v75_v42, %v61_v24 }
  0xf7   :  { %v88_v45 = vadd.f32 1e-05, %v84_v43  ;;  %v86_v46 = vadd.f32 1e-05, %v82_v44 }
  0xf9   :  { %211 = vrsqrt.f32 %v88_v45  ;;  %vm116_vm3 = vweird.f32 %v88_v45  ;;  %vm96_vm4 = vweird.f32 %v86_v46 }
  0xfa   :  { %213 = vrsqrt.f32 %v86_v46 }
  0xfc   :  { %v81_v47 = vpop.xlane.xlu1 %80  ;;  %v77_v49 = vpop.xlane.xlu2 %76 }
  0xfd   :  { %v85_v48 = vmul.f32 %v81_v47, %v61_v24  ;;  %v83_v50 = vmul.f32 %v77_v49, %v61_v24 }
  0xff   :  { %v212_v51 = vpop.eup %211  ;;  %v89_v52 = vadd.f32 1e-05, %v85_v48  ;;  %v87_v55 = vadd.f32 1e-05, %v83_v50 }
 0x100   :  { %v214_v53 = vpop.eup %213  ;;  %v111_v54 = vmul.f32 %v212_v51, %v88_v45  ;;  %vm117_vm1 = vweird.f32 %v212_v51 }
 0x101   :  { %v91_v56 = vmul.f32 %v214_v53, %v86_v46  ;;  %215 = vrsqrt.f32 %v89_v52  ;;  %vm97_vm2 = vweird.f32 %v214_v53  ;;  %vm118_vm5 = vmor %vm116_vm3, %vm117_vm1  ;;  %vm126_vm9 = vweird.f32 %v89_v52 }
 0x102   :  { %v112_v57 = vmul.f32 %v212_v51, %v111_v54  ;;  %217 = vrsqrt.f32 %v87_v55  ;;  %vm98_vm6 = vmor %vm96_vm4, %vm97_vm2  ;;  %vm106_vm11 = vweird.f32 %v87_v55 }
 0x103   :  { %v92_v58 = vmul.f32 %v214_v53, %v91_v56 }
 0x104   :  { %v113_v59 = vmul.f32 0.5, %v112_v57 }
 0x105   :  { %v93_v60 = vmul.f32 0.5, %v92_v58 }
 0x106   :  { %v114_v61 = vsub.f32 1.5, %v113_v59 }
 0x107   :  { %v216_v62 = vpop.eup %215  ;;  %v94_v63 = vsub.f32 1.5, %v93_v60 }
 0x108   :  { %v218_v0 = vpop.eup %217  ;;  %v115_v1 = vmul.f32 %v212_v51, %v114_v61  ;;  %v121_v2 = vmul.f32 %v216_v62, %v89_v52  ;;  %vm127_vm7 = vweird.f32 %v216_v62 }
 0x109   :  { %v95_v3 = vmul.f32 %v214_v53, %v94_v63  ;;  %v101_v4 = vmul.f32 %v218_v0, %v87_v55  ;;  %vm107_vm8 = vweird.f32 %v218_v0  ;;  %vm128_vm10 = vmor %vm126_vm9, %vm127_vm7 }
 0x10a   :  { %v122_v5 = vmul.f32 %v216_v62, %v121_v2  ;;  %v119_v7 = vsel %vm118_vm5, %v212_v51, %v115_v1  ;;  %vm108_vm12 = vmor %vm106_vm11, %vm107_vm8 }
 0x10b   :  { %v102_v6 = vmul.f32 %v218_v0, %v101_v4  ;;  %v99_v9 = vsel %vm98_vm6, %v214_v53, %v95_v3  ;;  %v132_v13 = vmul.f32 %v119_v7, %v268_v29 }
 0x10c   :  { %v123_v8 = vmul.f32 0.5, %v122_v5  ;;  %v130_v15 = vmul.f32 %v99_v9, %v270_v30 }
 0x10d   :  { %v103_v10 = vmul.f32 0.5, %v102_v6  ;;  %v140_v20 = vmul.f32 %v207_v12, %v132_v13 }
 0x10e   :  { %v124_v11 = vsub.f32 1.5, %v123_v8  ;;  %v138_v23 = vmul.f32 %v207_v12, %v130_v15 }
 0x10f   :  { %v104_v14 = vsub.f32 1.5, %v103_v10  ;;  %v148_v27 = vadd.f32 %v208_v19, %v140_v20 }
 0x110   :  { %v125_v16 = vmul.f32 %v216_v62, %v124_v11  ;;  %v146_v29 = vadd.f32 %v208_v19, %v138_v23 }
 0x111   :  { %v105_v17 = vmul.f32 %v218_v0, %v104_v14 }
 0x112   :  { %v129_v18 = vsel %vm128_vm10, %v216_v62, %v125_v16 }
 0x113   :  { %v133_v21 = vmul.f32 %v129_v18, %v276_v37  ;;  %v109_v22 = vsel %vm108_vm12, %v218_v0, %v105_v17 }
 0x114   :  { %v131_v24 = vmul.f32 %v109_v22, %v278_v38 }
 0x115   :  { %v141_v25 = vmul.f32 %v207_v12, %v133_v21 }
 0x116   :  { %v139_v26 = vmul.f32 %v207_v12, %v131_v24 }
 0x117   :  { %v149_v28 = vadd.f32 %v208_v19, %v141_v25 }
 0x118   :  { %v147_v30 = vadd.f32 %v208_v19, %v139_v26 }
 0x119   :  { %v200_v31 = vpack.c.bf16 %v149_v28, %v148_v27 }
 0x11a   :  { %v195_v32 = vpack.c.bf16 %v147_v30, %v146_v29 }
 0x11b   :  { %205 = vst [vmem:[%s305_s5 + $0x8] sm:$0xff] %v200_v31  }
 0x11c   :  { %196 = vst [vmem:[%s305_s5] sm:$0xff] %v195_v32  }

// kernel: clip_caption_forward.34
= control target key start
LH: loop header
LB: loop body
LE: loop exit
PB: predicated region body
PF: predicated region fallthrough
CT: control target
= control target key end

     0   :  { %s344_s0 = inlined_call_operand.vmem [shape: bf16[32,128], index: 0, kind: input, shape index: {}]   ;;  %s345_s1 = inlined_call_operand.vmem [shape: bf16[32,128], index: 1, kind: input, shape index: {}]   ;;  %s346_s2 = inlined_call_operand.vmem [shape: f32[1,128], index: 2, kind: input, shape index: {}]   ;;  %s347_s3 = inlined_call_operand.vmem [shape: f32[1,128], index: 3, kind: input, shape index: {}]   ;;  %s348_s4 = inlined_call_operand.hbm [shape: bf16[32,128], index: 4, kind: output, shape index: {0}]   ;;  %s349_s5 = inlined_call_operand.vmem [shape: bf16[32,128], index: 5, kind: output, shape index: {1}]  }
   0x1   :  { %v217_v0 = vld [vmem:[%s344_s0 + $0x8] sm:$0xff]   ;;  %v182_v2 = vld [vmem:[%s344_s0] sm:$0xff]  }
   0x2   :  { %v218_v1 = vld [vmem:[%s345_s1 + $0x8] sm:$0xff]   ;;  %v187_v3 = vunpack.c.l.bf16 %v217_v0  ;;  %v183_v5 = vunpack.c.l.bf16 %v182_v2  ;;  %v190_v6 = vld [vmem:[%s345_s1] sm:$0xff]   ;;  %v188_v7 = vunpack.c.h.bf16 %v217_v0  ;;  %v184_v10 = vunpack.c.h.bf16 %v182_v2 }
   0x3   :  { %v195_v4 = vunpack.c.l.bf16 %v218_v1  ;;  %v191_v8 = vunpack.c.l.bf16 %v190_v6  ;;  %v196_v9 = vunpack.c.h.bf16 %v218_v1  ;;  %v192_v11 = vunpack.c.h.bf16 %v190_v6 }
   0x4   :  { %11 = vsyncpa [#allocation3], 0  ;;  %v263_v18 = vmov 128.0   ;;  %s264_s0 = smov [#allocation2]   ;;  %s165_s28 = sshll.u32 %s348_s4, 4  ;;  %s166_s28 = int_to_ptr.hbm [resolvable:$true] %s165_s28 }
   0x5   :  { %v38_v12 = vadd.f32 %v195_v4, %v187_v3  ;;  %v36_v13 = vadd.f32 %v191_v8, %v183_v5  ;;  %v39_v14 = vadd.f32 %v196_v9, %v188_v7  ;;  %v37_v15 = vadd.f32 %v192_v11, %v184_v10  ;;  %s163_s1 = sshll.u32 %s264_s0, 4  ;;  %s265_s29 = smov 64   ;;  %s164_s1 = int_to_ptr.vmem [resolvable:$true] %s163_s1 }
   0x6   :  { %227 = vrcp.f32 %v263_v18  ;;  %s266_s30 = smov 4  }
   0x7   :  { %52 = vadd.xlane.f32.xlu1 %v38_v12  ;;  %48 = vadd.xlane.f32.xlu0 %v36_v13  ;;  %v205_v16 = vpack.c.bf16 %v39_v14, %v38_v12  ;;  %v200_v17 = vpack.c.bf16 %v37_v15, %v36_v13 }
   0x9   :  { %219 = vst [vmem:[#allocation2 + $0x8] sm:$0xff] %v205_v16  }
   0xa   :  { %201 = vst [vmem:[#allocation2] sm:$0xff] %v200_v17  }
   0xb   :  { %171 = dma.vmem_to_hbm [thread:$0]  %s164_s1, 256, %s166_s28, [#allocation3], %s265_s29, %s265_s29, %s266_s30  }
   0xc   :  { %v228_v19 = vpop.eup %227 }
   0xd   :  { %v57_v20 = vmul.f32 128.0, %v228_v19  ;;  %vm61_vm0 = vweird.f32 %v228_v19 }
   0xf   :  { %54 = vadd.xlane.f32.xlu1 %v39_v14  ;;  %50 = vadd.xlane.f32.xlu0 %v37_v15  ;;  %v58_v21 = vsub.f32 1.0, %v57_v20 }
  0x11   :  { %v59_v22 = vmul.f32 %v228_v19, %v58_v21 }
  0x13   :  { %v60_v23 = vadd.f32 %v228_v19, %v59_v22 }
  0x15   :  { %v62_v24 = vsel %vm61_vm0, %v228_v19, %v60_v23  ;;  %v226_v19 = vld [vmem:[%s347_s3] ss:$0 sm:$0xff] }
  0x7a   :  { %v53_v25 = vpop.xlane.xlu1 %52  ;;  %v49_v27 = vpop.xlane.xlu0 %48 }
  0x7b   :  { %v65_v26 = vmul.f32 %v62_v24, %v53_v25  ;;  %v63_v28 = vmul.f32 %v62_v24, %v49_v27 }
  0x7d   :  { %v309_v29 = vsub.f32 %v38_v12, %v65_v26  ;;  %v311_v30 = vsub.f32 %v36_v13, %v63_v28  ;;  %v225_v12 = vld [vmem:[%s346_s2] ss:$0 sm:$0xff] }
  0x7f   :  { %v73_v31 = vmul.f32 %v309_v29, %v309_v29  ;;  %v71_v32 = vmul.f32 %v311_v30, %v311_v30 }
  0x81   :  { %79 = vadd.xlane.f32.xlu0 %v73_v31  ;;  %75 = vadd.xlane.f32.xlu2 %v71_v32 }
  0x82   :  { %v55_v33 = vpop.xlane.xlu1 %54  ;;  %v51_v35 = vpop.xlane.xlu0 %50 }
  0x83   :  { %v66_v34 = vmul.f32 %v62_v24, %v55_v33  ;;  %v64_v36 = vmul.f32 %v62_v24, %v51_v35 }
  0x85   :  { %v317_v37 = vsub.f32 %v39_v14, %v66_v34  ;;  %v319_v38 = vsub.f32 %v37_v15, %v64_v36 }
  0x87   :  { %v74_v39 = vmul.f32 %v317_v37, %v317_v37  ;;  %v72_v40 = vmul.f32 %v319_v38, %v319_v38 }
  0x89   :  { %81 = vadd.xlane.f32.xlu1 %v74_v39  ;;  %77 = vadd.xlane.f32.xlu2 %v72_v40 }
  0xf4   :  { %v80_v41 = vpop.xlane.xlu0 %79  ;;  %v76_v42 = vpop.xlane.xlu2 %75 }
  0xf5   :  { %v85_v43 = vmul.f32 %v80_v41, %v62_v24  ;;  %v83_v44 = vmul.f32 %v76_v42, %v62_v24 }
  0xf7   :  { %v89_v45 = vadd.f32 1e-05, %v85_v43  ;;  %v87_v46 = vadd.f32 1e-05, %v83_v44 }
  0xf9   :  { %229 = vrsqrt.f32 %v89_v45  ;;  %vm117_vm3 = vweird.f32 %v89_v45  ;;  %vm97_vm4 = vweird.f32 %v87_v46 }
  0xfa   :  { %231 = vrsqrt.f32 %v87_v46 }
  0xfc   :  { %v82_v47 = vpop.xlane.xlu1 %81  ;;  %v78_v49 = vpop.xlane.xlu2 %77 }
  0xfd   :  { %v86_v48 = vmul.f32 %v82_v47, %v62_v24  ;;  %v84_v50 = vmul.f32 %v78_v49, %v62_v24 }
  0xff   :  { %v230_v51 = vpop.eup %229  ;;  %v90_v52 = vadd.f32 1e-05, %v86_v48  ;;  %v88_v55 = vadd.f32 1e-05, %v84_v50 }
 0x100   :  { %v232_v53 = vpop.eup %231  ;;  %v112_v54 = vmul.f32 %v230_v51, %v89_v45  ;;  %vm118_vm1 = vweird.f32 %v230_v51 }
 0x101   :  { %v92_v56 = vmul.f32 %v232_v53, %v87_v46  ;;  %233 = vrsqrt.f32 %v90_v52  ;;  %vm98_vm2 = vweird.f32 %v232_v53  ;;  %vm119_vm5 = vmor %vm117_vm3, %vm118_vm1  ;;  %vm127_vm9 = vweird.f32 %v90_v52 }
 0x102   :  { %v113_v57 = vmul.f32 %v230_v51, %v112_v54  ;;  %235 = vrsqrt.f32 %v88_v55  ;;  %vm99_vm6 = vmor %vm97_vm4, %vm98_vm2  ;;  %vm107_vm11 = vweird.f32 %v88_v55 }
 0x103   :  { %v93_v58 = vmul.f32 %v232_v53, %v92_v56 }
 0x104   :  { %v114_v59 = vmul.f32 0.5, %v113_v57 }
 0x105   :  { %v94_v60 = vmul.f32 0.5, %v93_v58 }
 0x106   :  { %v115_v61 = vsub.f32 1.5, %v114_v59 }
 0x107   :  { %v234_v62 = vpop.eup %233  ;;  %v95_v63 = vsub.f32 1.5, %v94_v60 }
 0x108   :  { %v236_v0 = vpop.eup %235  ;;  %v116_v1 = vmul.f32 %v230_v51, %v115_v61  ;;  %v122_v2 = vmul.f32 %v234_v62, %v90_v52  ;;  %vm128_vm7 = vweird.f32 %v234_v62 }
 0x109   :  { %v96_v3 = vmul.f32 %v232_v53, %v95_v63  ;;  %v102_v4 = vmul.f32 %v236_v0, %v88_v55  ;;  %vm108_vm8 = vweird.f32 %v236_v0  ;;  %vm129_vm10 = vmor %vm127_vm9, %vm128_vm7 }
 0x10a   :  { %v123_v5 = vmul.f32 %v234_v62, %v122_v2  ;;  %v120_v7 = vsel %vm119_vm5, %v230_v51, %v116_v1  ;;  %vm109_vm12 = vmor %vm107_vm11, %vm108_vm8 }
 0x10b   :  { %v103_v6 = vmul.f32 %v236_v0, %v102_v4  ;;  %v100_v9 = vsel %vm99_vm6, %v232_v53, %v96_v3  ;;  %v133_v13 = vmul.f32 %v120_v7, %v309_v29 }
 0x10c   :  { %v124_v8 = vmul.f32 0.5, %v123_v5  ;;  %v131_v15 = vmul.f32 %v100_v9, %v311_v30 }
 0x10d   :  { %v104_v10 = vmul.f32 0.5, %v103_v6  ;;  %v141_v20 = vmul.f32 %v225_v12, %v133_v13 }
 0x10e   :  { %v125_v11 = vsub.f32 1.5, %v124_v8  ;;  %v139_v23 = vmul.f32 %v225_v12, %v131_v15 }
 0x10f   :  { %v105_v14 = vsub.f32 1.5, %v104_v10  ;;  %v149_v27 = vadd.f32 %v226_v19, %v141_v20 }
 0x110   :  { %v126_v16 = vmul.f32 %v234_v62, %v125_v11  ;;  %v147_v29 = vadd.f32 %v226_v19, %v139_v23 }
 0x111   :  { %v106_v17 = vmul.f32 %v236_v0, %v105_v14 }
 0x112   :  { %v130_v18 = vsel %vm129_vm10, %v234_v62, %v126_v16 }
 0x113   :  { %v134_v21 = vmul.f32 %v130_v18, %v317_v37  ;;  %v110_v22 = vsel %vm109_vm12, %v236_v0, %v106_v17 }
 0x114   :  { %v132_v24 = vmul.f32 %v110_v22, %v319_v38 }
 0x115   :  { %v142_v25 = vmul.f32 %v225_v12, %v134_v21 }
 0x116   :  { %v140_v26 = vmul.f32 %v225_v12, %v132_v24 }
 0x117   :  { %v150_v28 = vadd.f32 %v226_v19, %v142_v25 }
 0x118   :  { %v148_v30 = vadd.f32 %v226_v19, %v140_v26 }
 0x119   :  { %v215_v31 = vpack.c.bf16 %v150_v28, %v149_v27 }
 0x11a   :  { %v210_v32 = vpack.c.bf16 %v148_v30, %v147_v29 }
 0x11b   :  { %220 = vst [vmem:[%s349_s5 + $0x8] sm:$0xff] %v215_v31  }
 0x11c   :  { %211 = vst [vmem:[%s349_s5] sm:$0xff] %v210_v32  }
 0x11d   :  { %261 = dma.done.wait [#allocation3], 256  }
 0x11e   :  { %262 = vsyncadd [#allocation3], 4294967040 }
 0x11f   :  { %180 = vsyncpa [#allocation3], 1 }

// kernel: clip_caption_forward.26
= control target key start
LH: loop header
LB: loop body
LE: loop exit
PB: predicated region body
PF: predicated region fallthrough
CT: control target
= control target key end

     0   :  { %s826_s1 = inlined_call_operand.vmem [shape: bf16[512,128], index: 1, kind: input, shape index: {}]   ;;  %s827_s0 = inlined_call_operand.vmem [shape: bf16[32,512], index: 0, kind: input, shape index: {}]   ;;  %s828_s2 = inlined_call_operand.vmem [shape: f32[1,128], index: 2, kind: input, shape index: {}]   ;;  %s829_s3 = inlined_call_operand.vmem [shape: bf16[32,128], index: 3, kind: output, shape index: {}]  }
   0x1   :  { %v616_v0 = vld [vmem:[%s826_s1 + $0x38] sm:$0xff]  ;;  %v615_v4 = vld [vmem:[%s826_s1 + $0x30] sm:$0xff]  ;;  %v614_v8 = vld [vmem:[%s826_s1 + $0x28] sm:$0xff] }
   0x2   :  { %v624_v1 = vld [vmem:[%s826_s1 + $0x78] sm:$0xff]  ;;  %330 = vmatpush.bf16.msra.mxu0 %v616_v0  ;;  %v623_v5 = vld [vmem:[%s826_s1 + $0x70] sm:$0xff]  ;;  %v622_v9 = vld [vmem:[%s826_s1 + $0x68] sm:$0xff] }
   0x3   :  { %v632_v2 = vld [vmem:[%s826_s1 + $0xb8] sm:$0xff]  ;;  %349 = vmatpush.bf16.msra.mxu1 %v624_v1  ;;  %v631_v6 = vld [vmem:[%s826_s1 + $0xb0] sm:$0xff]  ;;  %v630_v10 = vld [vmem:[%s826_s1 + $0xa8] sm:$0xff] }
   0x4   :  { %v640_v3 = vld [vmem:[%s826_s1 + $0xf8] sm:$0xff]  ;;  %368 = vmatpush.bf16.msra.mxu2 %v632_v2  ;;  %v639_v7 = vld [vmem:[%s826_s1 + $0xf0] sm:$0xff]  ;;  %v638_v11 = vld [vmem:[%s826_s1 + $0xe8] sm:$0xff] }
   0x5   :  { %387 = vmatpush.bf16.msra.mxu3 %v640_v3  ;;  %v613_v12 = vld [vmem:[%s826_s1 + $0x20] sm:$0xff]  ;;  %v612_v16 = vld [vmem:[%s826_s1 + $0x18] sm:$0xff]  ;;  %v611_v20 = vld [vmem:[%s826_s1 + $0x10] sm:$0xff] }
   0x6   :  { %331 = vmatpush.bf16.msra.mxu0 %v615_v4  ;;  %v621_v13 = vld [vmem:[%s826_s1 + $0x60] sm:$0xff]  ;;  %v620_v17 = vld [vmem:[%s826_s1 + $0x58] sm:$0xff]  ;;  %v619_v21 = vld [vmem:[%s826_s1 + $0x50] sm:$0xff] }
   0x7   :  { %350 = vmatpush.bf16.msra.mxu1 %v623_v5  ;;  %v629_v14 = vld [vmem:[%s826_s1 + $0xa0] sm:$0xff]  ;;  %v628_v18 = vld [vmem:[%s826_s1 + $0x98] sm:$0xff]  ;;  %v627_v22 = vld [vmem:[%s826_s1 + $0x90] sm:$0xff] }
   0x8   :  { %369 = vmatpush.bf16.msra.mxu2 %v631_v6  ;;  %v637_v15 = vld [vmem:[%s826_s1 + $0xe0] sm:$0xff]  ;;  %v636_v19 = vld [vmem:[%s826_s1 + $0xd8] sm:$0xff]  ;;  %v635_v23 = vld [vmem:[%s826_s1 + $0xd0] sm:$0xff] }
   0x9   :  { %388 = vmatpush.bf16.msra.mxu3 %v639_v7  ;;  %v610_v24 = vld [vmem:[%s826_s1 + $0x8] sm:$0xff]  ;;  %v609_v28 = vld [vmem:[%s826_s1] sm:$0xff]  ;;  %v603_v33 = vld [vmem:[%s827_s0 + $0xc] sm:$0xf0] }
   0xa   :  { %332 = vmatpush.bf16.msra.mxu0 %v614_v8  ;;  %v618_v25 = vld [vmem:[%s826_s1 + $0x48] sm:$0xff]  ;;  %v617_v29 = vld [vmem:[%s826_s1 + $0x40] sm:$0xff]  ;;  %v445_v35 = vld [vmem:[%s827_s0 + $0x10] sm:$0xf0] }
   0xb   :  { %351 = vmatpush.bf16.msra.mxu1 %v622_v9  ;;  %v626_v26 = vld [vmem:[%s826_s1 + $0x88] sm:$0xff]  ;;  %v625_v30 = vld [vmem:[%s826_s1 + $0x80] sm:$0xff]  ;;  %v604_v37 = vld [vmem:[%s827_s0 + $0x14] sm:$0xf0] }
   0xc   :  { %370 = vmatpush.bf16.msra.mxu2 %v630_v10  ;;  %v634_v27 = vld [vmem:[%s826_s1 + $0xc8] sm:$0xff]  ;;  %v633_v31 = vld [vmem:[%s826_s1 + $0xc0] sm:$0xff]  ;;  %v453_v39 = vld [vmem:[%s827_s0 + $0x18] sm:$0xf0] }
   0xd   :  { %389 = vmatpush.bf16.msra.mxu3 %v638_v11  ;;  %v443_v32 = vld [vmem:[%s827_s0] sm:$0xf]  ;;  %v601_v34 = vld [vmem:[%s827_s0 + $0x4] sm:$0xf]  ;;  %v451_v36 = vld [vmem:[%s827_s0 + $0x8] sm:$0xf] }
   0xe   :  { %333 = vmatpush.bf16.msra.mxu0 %v613_v12  ;;  %v602_v38 = vld [vmem:[%s827_s0 + $0xc] sm:$0xf]  ;;  %v444_v40 = vor.u32 %v603_v33, %v443_v32  ;;  %v448_v41 = vor.u32 %v601_v34, %v445_v35  ;;  %v452_v42 = vor.u32 %v604_v37, %v451_v36  ;;  %v459_v44 = vld [vmem:[%s827_s0 + $0x20] sm:$0xf]  ;;  %v607_v45 = vld [vmem:[%s827_s0 + $0x2c] sm:$0xf0] }
   0xf   :  { %352 = vmatpush.bf16.msra.mxu1 %v621_v13  ;;  %v456_v43 = vor.u32 %v602_v38, %v453_v39  ;;  %v605_v46 = vld [vmem:[%s827_s0 + $0x24] sm:$0xf]  ;;  %v461_v47 = vld [vmem:[%s827_s0 + $0x30] sm:$0xf0]  ;;  %v467_v48 = vld [vmem:[%s827_s0 + $0x28] sm:$0xf]  ;;  %v460_v52 = vor.u32 %v607_v45, %v459_v44 }
  0x10   :  { %371 = vmatpush.bf16.msra.mxu2 %v629_v14  ;;  %v608_v49 = vld [vmem:[%s827_s0 + $0x34] sm:$0xf0]  ;;  %v606_v50 = vld [vmem:[%s827_s0 + $0x2c] sm:$0xf]  ;;  %v469_v51 = vld [vmem:[%s827_s0 + $0x38] sm:$0xf0]  ;;  %v464_v53 = vor.u32 %v605_v46, %v461_v47 }
  0x11   :  { %390 = vmatpush.bf16.msra.mxu3 %v637_v15  ;;  %v468_v54 = vor.u32 %v608_v49, %v467_v48  ;;  %v472_v55 = vor.u32 %v606_v50, %v469_v51  ;;  %v652_v4 = vld [vmem:[%s828_s2] ss:$0 sm:$0xff] }
  0x12   :  { %334 = vmatpush.bf16.msra.mxu0 %v612_v16 }
  0x13   :  { %353 = vmatpush.bf16.msra.mxu1 %v620_v17 }
  0x14   :  { %372 = vmatpush.bf16.msra.mxu2 %v628_v18 }
  0x15   :  { %391 = vmatpush.bf16.msra.mxu3 %v636_v19 }
  0x16   :  { %335 = vmatpush.bf16.msra.mxu0 %v611_v20 }
  0x17   :  { %354 = vmatpush.bf16.msra.mxu1 %v619_v21 }
  0x18   :  { %373 = vmatpush.bf16.msra.mxu2 %v627_v22 }
  0x19   :  { %392 = vmatpush.bf16.msra.mxu3 %v635_v23 }
  0x1a   :  { %336 = vmatpush.bf16.msra.mxu0 %v610_v24 }
  0x1b   :  { %355 = vmatpush.bf16.msra.mxu1 %v618_v25 }
  0x1c   :  { %374 = vmatpush.bf16.msra.mxu2 %v626_v26 }
  0x1d   :  { %393 = vmatpush.bf16.msra.mxu3 %v634_v27 }
  0x1e   :  { %337 = vmatpush.bf16.msra.mxu0 %v609_v28 }
  0x1f   :  { %356 = vmatpush.bf16.msra.mxu1 %v617_v29 }
  0x20   :  { %375 = vmatpush.bf16.msra.mxu2 %v625_v30 }
  0x21   :  { %394 = vmatpush.bf16.msra.mxu3 %v633_v31  ;;  %338 = vmatmul.bf16.vlgmr.msra.gmra.mxu0 %v444_v40 }
  0x22   :  { %357 = vmatmul.bf16.vlgmr.msra.gmra.mxu1 %v448_v41 }
  0x23   :  { %376 = vmatmul.bf16.vlgmr.msra.gmra.mxu2 %v452_v42 }
  0x24   :  { %395 = vmatmul.bf16.vlgmr.msra.gmra.mxu3 %v456_v43 }
  0x31   :  { %343 = vmatmul.bf16.gmra.mxu0 %v460_v52 }
  0x32   :  { %362 = vmatmul.bf16.gmra.mxu1 %v464_v53 }
  0x33   :  { %381 = vmatmul.bf16.gmra.mxu2 %v468_v54 }
  0x34   :  { %400 = vmatmul.bf16.gmra.mxu3 %v472_v55 }
  0x9e   :  { %v339_v56 = vpop.f32.mrf.mxu0 }
  0x9f   :  { %v358_v57 = vpop.f32.mrf.mxu1 }
  0xa0   :  { %v359_v60 = vadd.f32 %v358_v57, %v339_v56 }
  0xa6   :  { %v377_v58 = vpop.f32.mrf.mxu2  ;;  %v341_v61 = vpop.f32.mrf.mxu0 }
  0xa7   :  { %v396_v59 = vpop.f32.mrf.mxu3  ;;  %v360_v62 = vpop.f32.mrf.mxu1  ;;  %v378_v63 = vadd.f32 %v377_v58, %v359_v60 }
  0xa8   :  { %v361_v0 = vadd.f32 %v360_v62, %v341_v61 }
  0xa9   :  { %v397_v3 = vadd.f32 %v396_v59, %v378_v63 }
  0xab   :  { %v425_v9 = vadd.f32 %v652_v4, %v397_v3 }
  0xae   :  { %v379_v1 = vpop.f32.mrf.mxu2  ;;  %v344_v6 = vpop.f32.mrf.mxu0 }
  0xaf   :  { %v398_v2 = vpop.f32.mrf.mxu3  ;;  %v380_v5 = vadd.f32 %v379_v1, %v361_v0  ;;  %v363_v7 = vpop.f32.mrf.mxu1 }
  0xb0   :  { %v364_v14 = vadd.f32 %v363_v7, %v344_v6 }
  0xb1   :  { %v399_v8 = vadd.f32 %v398_v2, %v380_v5 }
  0xb3   :  { %v426_v10 = vadd.f32 %v652_v4, %v399_v8 }
  0xb5   :  { %v644_v11 = vpack.c.bf16 %v426_v10, %v425_v9 }
  0xb6   :  { %v382_v12 = vpop.f32.mrf.mxu2  ;;  %v346_v15 = vpop.f32.mrf.mxu0 }
  0xb7   :  { %v401_v13 = vpop.f32.mrf.mxu3  ;;  %645 = vst [vmem:[%s829_s3] sm:$0xff] %v644_v11   ;;  %v365_v16 = vpop.f32.mrf.mxu1  ;;  %v383_v17 = vadd.f32 %v382_v12, %v364_v14 }
  0xb8   :  { %v366_v18 = vadd.f32 %v365_v16, %v346_v15 }
  0xb9   :  { %v402_v20 = vadd.f32 %v401_v13, %v383_v17 }
  0xbb   :  { %v427_v24 = vadd.f32 %v652_v4, %v402_v20 }
  0xbe   :  { %v384_v19 = vpop.f32.mrf.mxu2 }
  0xbf   :  { %v385_v21 = vadd.f32 %v384_v19, %v366_v18  ;;  %v403_v22 = vpop.f32.mrf.mxu3 }
  0xc1   :  { %v404_v23 = vadd.f32 %v403_v22, %v385_v21 }
  0xc3   :  { %v428_v25 = vadd.f32 %v652_v4, %v404_v23 }
  0xc5   :  { %v649_v26 = vpack.c.bf16 %v428_v25, %v427_v24 }
  0xc7   :  { %651 = vst [vmem:[%s829_s3 + $0x8] sm:$0xff] %v649_v26  }

// kernel: clip_caption_forward.25
= control target key start
LH: loop header
LB: loop body
LE: loop exit
PB: predicated region body
PF: predicated region fallthrough
CT: control target
= control target key end

     0   :  { %s1151_s1 = inlined_call_operand.vmem [shape: bf16[128,512], index: 1, kind: input, shape index: {}]   ;;  %s1152_s0 = inlined_call_operand.vmem [shape: bf16[32,128], index: 0, kind: input, shape index: {}]   ;;  %s1153_s2 = inlined_call_operand.vmem [shape: f32[1,512], index: 2, kind: input, shape index: {}]   ;;  %s1154_s3 = inlined_call_operand.vmem [shape: bf16[32,512], index: 3, kind: output, shape index: {}]  }
   0x1   :  { %v697_v0 = vld [vmem:[%s1151_s1 + $0xe0] sm:$0xf]  ;;  %v743_v1 = vld [vmem:[%s1151_s1 + $0xec] sm:$0xf0]  ;;  %v741_v2 = vld [vmem:[%s1151_s1 + $0xe4] sm:$0xf] }
   0x2   :  { %v698_v3 = vor.u32 %v743_v1, %v697_v0  ;;  %v699_v4 = vld [vmem:[%s1151_s1 + $0xf0] sm:$0xf0]  ;;  %v705_v5 = vld [vmem:[%s1151_s1 + $0xe8] sm:$0xf]  ;;  %v744_v6 = vld [vmem:[%s1151_s1 + $0xf4] sm:$0xf0] }
   0x3   :  { %v702_v7 = vor.u32 %v741_v2, %v699_v4  ;;  %v706_v8 = vor.u32 %v744_v6, %v705_v5  ;;  %v742_v9 = vld [vmem:[%s1151_s1 + $0xec] sm:$0xf]  ;;  %v707_v10 = vld [vmem:[%s1151_s1 + $0xf8] sm:$0xf0]  ;;  %v681_v11 = vld [vmem:[%s1151_s1 + $0xc0] sm:$0xf] }
   0x4   :  { %258 = vmatpush.bf16.msra.mxu0 %v698_v3  ;;  %v710_v12 = vor.u32 %v742_v9, %v707_v10  ;;  %v739_v13 = vld [vmem:[%s1151_s1 + $0xcc] sm:$0xf0]  ;;  %v737_v14 = vld [vmem:[%s1151_s1 + $0xc4] sm:$0xf]  ;;  %v683_v15 = vld [vmem:[%s1151_s1 + $0xd0] sm:$0xf0] }
   0x5   :  { %277 = vmatpush.bf16.msra.mxu1 %v702_v7  ;;  %296 = vmatpush.bf16.msra.mxu2 %v706_v8  ;;  %v682_v16 = vor.u32 %v739_v13, %v681_v11  ;;  %v686_v17 = vor.u32 %v737_v14, %v683_v15  ;;  %v689_v18 = vld [vmem:[%s1151_s1 + $0xc8] sm:$0xf]  ;;  %v740_v19 = vld [vmem:[%s1151_s1 + $0xd4] sm:$0xf0]  ;;  %v738_v20 = vld [vmem:[%s1151_s1 + $0xcc] sm:$0xf] }
   0x6   :  { %315 = vmatpush.bf16.msra.mxu3 %v710_v12  ;;  %v690_v21 = vor.u32 %v740_v19, %v689_v18  ;;  %v691_v22 = vld [vmem:[%s1151_s1 + $0xd8] sm:$0xf0]  ;;  %v665_v23 = vld [vmem:[%s1151_s1 + $0xa0] sm:$0xf]  ;;  %v735_v24 = vld [vmem:[%s1151_s1 + $0xac] sm:$0xf0] }
   0x7   :  { %v694_v25 = vor.u32 %v738_v20, %v691_v22  ;;  %v733_v26 = vld [vmem:[%s1151_s1 + $0xa4] sm:$0xf]  ;;  %v667_v27 = vld [vmem:[%s1151_s1 + $0xb0] sm:$0xf0]  ;;  %v673_v28 = vld [vmem:[%s1151_s1 + $0xa8] sm:$0xf]  ;;  %v666_v29 = vor.u32 %v735_v24, %v665_v23 }
   0x8   :  { %259 = vmatpush.bf16.msra.mxu0 %v682_v16  ;;  %v736_v30 = vld [vmem:[%s1151_s1 + $0xb4] sm:$0xf0]  ;;  %v734_v31 = vld [vmem:[%s1151_s1 + $0xac] sm:$0xf]  ;;  %v675_v32 = vld [vmem:[%s1151_s1 + $0xb8] sm:$0xf0]  ;;  %v670_v33 = vor.u32 %v733_v26, %v667_v27 }
   0x9   :  { %278 = vmatpush.bf16.msra.mxu1 %v686_v17  ;;  %297 = vmatpush.bf16.msra.mxu2 %v690_v21  ;;  %v674_v34 = vor.u32 %v736_v30, %v673_v28  ;;  %v649_v35 = vld [vmem:[%s1151_s1 + $0x80] sm:$0xf]  ;;  %v731_v36 = vld [vmem:[%s1151_s1 + $0x8c] sm:$0xf0]  ;;  %v729_v37 = vld [vmem:[%s1151_s1 + $0x84] sm:$0xf]  ;;  %v678_v38 = vor.u32 %v734_v31, %v675_v32 }
   0xa   :  { %316 = vmatpush.bf16.msra.mxu3 %v694_v25  ;;  %v651_v39 = vld [vmem:[%s1151_s1 + $0x90] sm:$0xf0]  ;;  %v657_v40 = vld [vmem:[%s1151_s1 + $0x88] sm:$0xf]  ;;  %v732_v41 = vld [vmem:[%s1151_s1 + $0x94] sm:$0xf0]  ;;  %v650_v44 = vor.u32 %v731_v36, %v649_v35 }
   0xb   :  { %v730_v42 = vld [vmem:[%s1151_s1 + $0x8c] sm:$0xf]  ;;  %v659_v43 = vld [vmem:[%s1151_s1 + $0x98] sm:$0xf0]  ;;  %v654_v45 = vor.u32 %v729_v37, %v651_v39  ;;  %v658_v46 = vor.u32 %v732_v41, %v657_v40  ;;  %v633_v47 = vld [vmem:[%s1151_s1 + $0x60] sm:$0xf] }
   0xc   :  { %260 = vmatpush.bf16.msra.mxu0 %v666_v29  ;;  %v727_v48 = vld [vmem:[%s1151_s1 + $0x6c] sm:$0xf0]  ;;  %v725_v49 = vld [vmem:[%s1151_s1 + $0x64] sm:$0xf]  ;;  %v662_v50 = vor.u32 %v730_v42, %v659_v43  ;;  %v635_v51 = vld [vmem:[%s1151_s1 + $0x70] sm:$0xf0] }
   0xd   :  { %279 = vmatpush.bf16.msra.mxu1 %v670_v33  ;;  %298 = vmatpush.bf16.msra.mxu2 %v674_v34  ;;  %v641_v52 = vld [vmem:[%s1151_s1 + $0x68] sm:$0xf]  ;;  %v728_v53 = vld [vmem:[%s1151_s1 + $0x74] sm:$0xf0]  ;;  %v726_v54 = vld [vmem:[%s1151_s1 + $0x6c] sm:$0xf]  ;;  %v634_v56 = vor.u32 %v727_v48, %v633_v47  ;;  %v638_v57 = vor.u32 %v725_v49, %v635_v51 }
   0xe   :  { %317 = vmatpush.bf16.msra.mxu3 %v678_v38  ;;  %v643_v55 = vld [vmem:[%s1151_s1 + $0x78] sm:$0xf0]  ;;  %v642_v58 = vor.u32 %v728_v53, %v641_v52  ;;  %v617_v59 = vld [vmem:[%s1151_s1 + $0x40] sm:$0xf]  ;;  %v723_v60 = vld [vmem:[%s1151_s1 + $0x4c] sm:$0xf0] }
   0xf   :  { %v721_v61 = vld [vmem:[%s1151_s1 + $0x44] sm:$0xf]  ;;  %v646_v62 = vor.u32 %v726_v54, %v643_v55  ;;  %v619_v63 = vld [vmem:[%s1151_s1 + $0x50] sm:$0xf0]  ;;  %v625_v0 = vld [vmem:[%s1151_s1 + $0x48] sm:$0xf]  ;;  %v618_v4 = vor.u32 %v723_v60, %v617_v59 }
  0x10   :  { %261 = vmatpush.bf16.msra.mxu0 %v650_v44  ;;  %v724_v1 = vld [vmem:[%s1151_s1 + $0x54] sm:$0xf0]  ;;  %v722_v2 = vld [vmem:[%s1151_s1 + $0x4c] sm:$0xf]  ;;  %v627_v3 = vld [vmem:[%s1151_s1 + $0x58] sm:$0xf0]  ;;  %v622_v5 = vor.u32 %v721_v61, %v619_v63 }
  0x11   :  { %280 = vmatpush.bf16.msra.mxu1 %v654_v45  ;;  %299 = vmatpush.bf16.msra.mxu2 %v658_v46  ;;  %v626_v6 = vor.u32 %v724_v1, %v625_v0  ;;  %v601_v7 = vld [vmem:[%s1151_s1 + $0x20] sm:$0xf]  ;;  %v719_v8 = vld [vmem:[%s1151_s1 + $0x2c] sm:$0xf0]  ;;  %v717_v9 = vld [vmem:[%s1151_s1 + $0x24] sm:$0xf]  ;;  %v630_v10 = vor.u32 %v722_v2, %v627_v3 }
  0x12   :  { %318 = vmatpush.bf16.msra.mxu3 %v662_v50  ;;  %v603_v11 = vld [vmem:[%s1151_s1 + $0x30] sm:$0xf0]  ;;  %v609_v12 = vld [vmem:[%s1151_s1 + $0x28] sm:$0xf]  ;;  %v720_v13 = vld [vmem:[%s1151_s1 + $0x34] sm:$0xf0]  ;;  %v602_v16 = vor.u32 %v719_v8, %v601_v7 }
  0x13   :  { %v718_v14 = vld [vmem:[%s1151_s1 + $0x2c] sm:$0xf]  ;;  %v611_v15 = vld [vmem:[%s1151_s1 + $0x38] sm:$0xf0]  ;;  %v606_v17 = vor.u32 %v717_v9, %v603_v11  ;;  %v610_v18 = vor.u32 %v720_v13, %v609_v12  ;;  %v585_v19 = vld [vmem:[%s1151_s1] sm:$0xf] }
  0x14   :  { %262 = vmatpush.bf16.msra.mxu0 %v634_v56  ;;  %v715_v20 = vld [vmem:[%s1151_s1 + $0xc] sm:$0xf0]  ;;  %v713_v21 = vld [vmem:[%s1151_s1 + $0x4] sm:$0xf]  ;;  %v614_v22 = vor.u32 %v718_v14, %v611_v15  ;;  %v587_v23 = vld [vmem:[%s1151_s1 + $0x10] sm:$0xf0] }
  0x15   :  { %281 = vmatpush.bf16.msra.mxu1 %v638_v57  ;;  %300 = vmatpush.bf16.msra.mxu2 %v642_v58  ;;  %v593_v24 = vld [vmem:[%s1151_s1 + $0x8] sm:$0xf]  ;;  %v716_v25 = vld [vmem:[%s1151_s1 + $0x14] sm:$0xf0]  ;;  %v714_v26 = vld [vmem:[%s1151_s1 + $0xc] sm:$0xf]  ;;  %v586_v28 = vor.u32 %v715_v20, %v585_v19  ;;  %v590_v29 = vor.u32 %v713_v21, %v587_v23 }
  0x16   :  { %319 = vmatpush.bf16.msra.mxu3 %v646_v62  ;;  %v595_v27 = vld [vmem:[%s1151_s1 + $0x18] sm:$0xf0]  ;;  %v594_v30 = vor.u32 %v716_v25, %v593_v24  ;;  %v711_v32 = vld [vmem:[%s1152_s0] sm:$0xff]  ;;  %v712_v33 = vld [vmem:[%s1152_s0 + $0x8] sm:$0xff] }
  0x17   :  { %v598_v31 = vor.u32 %v714_v26, %v595_v27  ;;  %v385_v34 = vld [vmem:[%s1153_s2] sm:$0xf] }
  0x18   :  { %263 = vmatpush.bf16.msra.mxu0 %v618_v4  ;;  %v998_v35 = vperm.slane %v385_v34, 0  ;;  %v1000_v36 = vperm.slane %v385_v34, 1  ;;  %v1012_v43 = vperm.slane %v385_v34, 2  ;;  %v1015_v45 = vperm.slane %v385_v34, 3 }
  0x19   :  { %282 = vmatpush.bf16.msra.mxu1 %v622_v5  ;;  %301 = vmatpush.bf16.msra.mxu2 %v626_v6 }
  0x1a   :  { %320 = vmatpush.bf16.msra.mxu3 %v630_v10 }
  0x1c   :  { %264 = vmatpush.bf16.msra.mxu0 %v602_v16 }
  0x1d   :  { %283 = vmatpush.bf16.msra.mxu1 %v606_v17  ;;  %302 = vmatpush.bf16.msra.mxu2 %v610_v18 }
  0x1e   :  { %321 = vmatpush.bf16.msra.mxu3 %v614_v22 }
  0x20   :  { %265 = vmatpush.bf16.msra.mxu0 %v586_v28 }
  0x21   :  { %284 = vmatpush.bf16.msra.mxu1 %v590_v29  ;;  %303 = vmatpush.bf16.msra.mxu2 %v594_v30 }
  0x22   :  { %322 = vmatpush.bf16.msra.mxu3 %v598_v31 }
  0x23   :  { %266 = vmatmul.bf16.vlgmr.msra.gmra.mxu0 %v711_v32 }
  0x24   :  { %285 = vmatmul.bf16.vlgmr.msra.gmra.mxu1 %v711_v32  ;;  %304 = vmatmul.bf16.vlgmr.msra.gmra.mxu2 %v711_v32 }
  0x25   :  { %323 = vmatmul.bf16.vlgmr.msra.gmra.mxu3 %v711_v32 }
  0x33   :  { %271 = vmatmul.bf16.gmra.mxu0 %v712_v33 }
  0x34   :  { %290 = vmatmul.bf16.gmra.mxu1 %v712_v33  ;;  %309 = vmatmul.bf16.gmra.mxu2 %v712_v33 }
  0x35   :  { %328 = vmatmul.bf16.gmra.mxu3 %v712_v33 }
  0xa0   :  { %v267_v37 = vpop.f32.mrf.mxu0 }
  0xa1   :  { %v1003_v38 = vadd.f32 %v998_v35, %v267_v37  ;;  %v286_v39 = vpop.f32.mrf.mxu1 }
  0xa2   :  { %v1006_v40 = vadd.f32 %v1000_v36, %v286_v39 }
  0xa3   :  { %v411_v41 = vmul.f32 %v1003_v38, %v1003_v38 }
  0xa4   :  { %v412_v42 = vmul.f32 %v1006_v40, %v1006_v40 }
  0xa5   :  { %v427_v44 = vmul.f32 %v411_v41, %v1003_v38 }
  0xa6   :  { %v428_v46 = vmul.f32 %v412_v42, %v1006_v40 }
  0xa7   :  { %v443_v47 = vmul.f32 0.044715, %v427_v44  ;;  %v305_v48 = vpop.f32.mrf.mxu2 }
  0xa8   :  { %v444_v49 = vmul.f32 0.044715, %v428_v46  ;;  %v1019_v50 = vadd.f32 %v1012_v43, %v305_v48  ;;  %v324_v51 = vpop.f32.mrf.mxu3  ;;  %v269_v52 = vpop.f32.mrf.mxu0 }
  0xa9   :  { %v459_v53 = vadd.f32 %v443_v47, %v1003_v38  ;;  %v1023_v54 = vadd.f32 %v1015_v45, %v324_v51  ;;  %v1026_v55 = vadd.f32 %v998_v35, %v269_v52  ;;  %v288_v56 = vpop.f32.mrf.mxu1 }
  0xaa   :  { %v460_v57 = vadd.f32 %v444_v49, %v1006_v40  ;;  %v413_v58 = vmul.f32 %v1019_v50, %v1019_v50  ;;  %v1032_v59 = vadd.f32 %v1000_v36, %v288_v56 }
  0xab   :  { %v475_v60 = vmul.f32 0.7978846, %v459_v53  ;;  %v414_v61 = vmul.f32 %v1023_v54, %v1023_v54  ;;  %v415_v62 = vmul.f32 %v1026_v55, %v1026_v55 }
  0xac   :  { %v476_v63 = vmul.f32 0.7978846, %v460_v57  ;;  %v429_v0 = vmul.f32 %v413_v58, %v1019_v50  ;;  %v416_v1 = vmul.f32 %v1032_v59, %v1032_v59 }
  0xad   :  { %745 = vtanh.f32 %v475_v60  ;;  %v430_v2 = vmul.f32 %v414_v61, %v1023_v54  ;;  %v431_v3 = vmul.f32 %v415_v62, %v1026_v55 }
  0xae   :  { %747 = vtanh.f32 %v476_v63  ;;  %v445_v4 = vmul.f32 0.044715, %v429_v0  ;;  %v432_v5 = vmul.f32 %v416_v1, %v1032_v59 }
  0xaf   :  { %v446_v6 = vmul.f32 0.044715, %v430_v2  ;;  %v447_v7 = vmul.f32 0.044715, %v431_v3  ;;  %v307_v8 = vpop.f32.mrf.mxu2 }
  0xb0   :  { %v461_v9 = vadd.f32 %v445_v4, %v1019_v50  ;;  %v448_v10 = vmul.f32 0.044715, %v432_v5  ;;  %v1046_v11 = vadd.f32 %v1012_v43, %v307_v8  ;;  %v326_v12 = vpop.f32.mrf.mxu3  ;;  %v272_v13 = vpop.f32.mrf.mxu0 }
  0xb1   :  { %v462_v14 = vadd.f32 %v446_v6, %v1023_v54  ;;  %v463_v15 = vadd.f32 %v447_v7, %v1026_v55  ;;  %v1051_v16 = vadd.f32 %v1015_v45, %v326_v12  ;;  %v1054_v17 = vadd.f32 %v998_v35, %v272_v13  ;;  %v291_v18 = vpop.f32.mrf.mxu1 }
  0xb2   :  { %v477_v19 = vmul.f32 0.7978846, %v461_v9  ;;  %v464_v20 = vadd.f32 %v448_v10, %v1032_v59  ;;  %v417_v21 = vmul.f32 %v1046_v11, %v1046_v11  ;;  %v1060_v22 = vadd.f32 %v1000_v36, %v291_v18 }
  0xb3   :  { %v746_v23 = vpop.eup %745  ;;  %v478_v24 = vmul.f32 0.7978846, %v462_v14  ;;  %v479_v25 = vmul.f32 0.7978846, %v463_v15  ;;  %v418_v26 = vmul.f32 %v1051_v16, %v1051_v16  ;;  %v419_v27 = vmul.f32 %v1054_v17, %v1054_v17 }
  0xb4   :  { %v748_v28 = vpop.eup %747  ;;  %v507_v29 = vadd.f32 1.0, %v746_v23  ;;  %749 = vtanh.f32 %v477_v19  ;;  %v480_v30 = vmul.f32 0.7978846, %v464_v20  ;;  %v433_v31 = vmul.f32 %v417_v21, %v1046_v11 }
  0xb5   :  { %v508_v32 = vadd.f32 1.0, %v748_v28  ;;  %751 = vtanh.f32 %v478_v24  ;;  %v434_v33 = vmul.f32 %v418_v26, %v1051_v16  ;;  %v435_v34 = vmul.f32 %v419_v27, %v1054_v17 }
  0xb6   :  { %v523_v37 = vmul.f32 0.5, %v507_v29  ;;  %753 = vtanh.f32 %v479_v25  ;;  %v449_v39 = vmul.f32 0.044715, %v433_v31  ;;  %v420_v41 = vmul.f32 %v1060_v22, %v1060_v22 }
  0xb7   :  { %v524_v42 = vmul.f32 0.5, %v508_v32  ;;  %755 = vtanh.f32 %v480_v30  ;;  %v450_v44 = vmul.f32 0.044715, %v434_v33  ;;  %v451_v46 = vmul.f32 0.044715, %v435_v34  ;;  %v310_v47 = vpop.f32.mrf.mxu2 }
  0xb8   :  { %v539_v48 = vmul.f32 %v523_v37, %v1003_v38  ;;  %v465_v49 = vadd.f32 %v449_v39, %v1046_v11  ;;  %v436_v51 = vmul.f32 %v420_v41, %v1060_v22  ;;  %v1075_v52 = vadd.f32 %v1012_v43, %v310_v47  ;;  %v329_v53 = vpop.f32.mrf.mxu3  ;;  %v274_v56 = vpop.f32.mrf.mxu0 }
  0xb9   :  { %v540_v57 = vmul.f32 %v524_v42, %v1006_v40  ;;  %v466_v58 = vadd.f32 %v450_v44, %v1051_v16  ;;  %v467_v60 = vadd.f32 %v451_v46, %v1054_v17  ;;  %v1081_v61 = vadd.f32 %v1015_v45, %v329_v53  ;;  %v293_v19 = vpop.f32.mrf.mxu1 }
  0xba   :  { %v750_v62 = vpop.eup %749  ;;  %v481_v38 = vmul.f32 0.7978846, %v465_v49  ;;  %v452_v63 = vmul.f32 0.044715, %v436_v51  ;;  %v421_v0 = vmul.f32 %v1075_v52, %v1075_v52  ;;  %v1086_v1 = vadd.f32 %v998_v35, %v274_v56 }
  0xbb   :  { %v752_v2 = vpop.eup %751  ;;  %v555_v3 = vpack.c.bf16 %v540_v57, %v539_v48  ;;  %v509_v4 = vadd.f32 1.0, %v750_v62  ;;  %v482_v40 = vmul.f32 0.7978846, %v466_v58  ;;  %v483_v5 = vmul.f32 0.7978846, %v467_v60 }
  0xbc   :  { %v754_v6 = vpop.eup %753  ;;  %v510_v7 = vadd.f32 1.0, %v752_v2  ;;  %757 = vtanh.f32 %v481_v38  ;;  %v468_v8 = vadd.f32 %v452_v63, %v1060_v22  ;;  %v437_v9 = vmul.f32 %v421_v0, %v1075_v52 }
  0xbd   :  { %v756_v10 = vpop.eup %755  ;;  %563 = vst [vmem:[%s1154_s3] sm:$0xff] %v555_v3  ;;  %v525_v12 = vmul.f32 0.5, %v509_v4  ;;  %v511_v35 = vadd.f32 1.0, %v754_v6  ;;  %759 = vtanh.f32 %v482_v40  ;;  %v422_v13 = vmul.f32 %v1081_v61, %v1081_v61 }
  0xbe   :  { %v526_v14 = vmul.f32 0.5, %v510_v7  ;;  %v512_v15 = vadd.f32 1.0, %v756_v10  ;;  %761 = vtanh.f32 %v483_v5  ;;  %v484_v18 = vmul.f32 0.7978846, %v468_v8 }
  0xbf   :  { %v541_v20 = vmul.f32 %v525_v12, %v1019_v50  ;;  %v527_v21 = vmul.f32 0.5, %v511_v35  ;;  %v453_v23 = vmul.f32 0.044715, %v437_v9  ;;  %v438_v24 = vmul.f32 %v422_v13, %v1081_v61  ;;  %v312_v25 = vpop.f32.mrf.mxu2 }
  0xc0   :  { %v542_v26 = vmul.f32 %v526_v14, %v1023_v54  ;;  %v528_v27 = vmul.f32 0.5, %v512_v15  ;;  %763 = vtanh.f32 %v484_v18  ;;  %v423_v28 = vmul.f32 %v1086_v1, %v1086_v1  ;;  %v331_v62 = vpop.f32.mrf.mxu3 }
  0xc1   :  { %v543_v29 = vmul.f32 %v527_v21, %v1026_v55  ;;  %v469_v30 = vadd.f32 %v453_v23, %v1075_v52  ;;  %v454_v31 = vmul.f32 0.044715, %v438_v24  ;;  %v1103_v32 = vadd.f32 %v1000_v36, %v293_v19 }
  0xc2   :  { %v758_v50 = vpop.eup %757  ;;  %v556_v33 = vpack.c.bf16 %v542_v26, %v541_v20  ;;  %v544_v34 = vmul.f32 %v528_v27, %v1032_v59  ;;  %v439_v37 = vmul.f32 %v423_v28, %v1086_v1  ;;  %v1108_v54 = vadd.f32 %v1012_v43, %v312_v25 }
  0xc3   :  { %v760_v39 = vpop.eup %759  ;;  %v513_v41 = vadd.f32 1.0, %v758_v50  ;;  %v485_v42 = vmul.f32 0.7978846, %v469_v30  ;;  %v470_v55 = vadd.f32 %v454_v31, %v1081_v61  ;;  %v424_v44 = vmul.f32 %v1103_v32, %v1103_v32 }
  0xc4   :  { %v762_v46 = vpop.eup %761  ;;  %564 = vst [vmem:[%s1154_s3 + $0x8] sm:$0xff] %v556_v33  ;;  %v557_v36 = vpack.c.bf16 %v544_v34, %v543_v29  ;;  %v514_v59 = vadd.f32 1.0, %v760_v39  ;;  %v455_v47 = vmul.f32 0.044715, %v439_v37  ;;  %v425_v43 = vmul.f32 %v1108_v54, %v1108_v54 }
  0xc5   :  { %v529_v48 = vmul.f32 0.5, %v513_v41  ;;  %v515_v49 = vadd.f32 1.0, %v762_v46  ;;  %765 = vtanh.f32 %v485_v42  ;;  %v486_v51 = vmul.f32 0.7978846, %v470_v55 }
  0xc6   :  { %v764_v53 = vpop.eup %763  ;;  %565 = vst [vmem:[%s1154_s3 + $0x10] sm:$0xff] %v557_v36  ;;  %v530_v56 = vmul.f32 0.5, %v514_v59  ;;  %v471_v57 = vadd.f32 %v455_v47, %v1086_v1  ;;  %v440_v58 = vmul.f32 %v424_v44, %v1103_v32  ;;  %v441_v60 = vmul.f32 %v425_v43, %v1108_v54 }
  0xc7   :  { %v545_v38 = vmul.f32 %v529_v48, %v1046_v11  ;;  %v531_v63 = vmul.f32 0.5, %v515_v49  ;;  %v516_v0 = vadd.f32 1.0, %v764_v53  ;;  %767 = vtanh.f32 %v486_v51 }
  0xc8   :  { %v546_v2 = vmul.f32 %v530_v56, %v1051_v16  ;;  %v487_v3 = vmul.f32 0.7978846, %v471_v57  ;;  %v456_v4 = vmul.f32 0.044715, %v440_v58  ;;  %v457_v40 = vmul.f32 0.044715, %v441_v60 }
  0xc9   :  { %v547_v5 = vmul.f32 %v531_v63, %v1054_v17  ;;  %v532_v6 = vmul.f32 0.5, %v516_v0  ;;  %v410_v7 = vadd.f32 %v1015_v45, %v331_v62 }
  0xca   :  { %v558_v8 = vpack.c.bf16 %v546_v2, %v545_v38  ;;  %769 = vtanh.f32 %v487_v3  ;;  %v472_v9 = vadd.f32 %v456_v4, %v1103_v32  ;;  %v473_v10 = vadd.f32 %v457_v40, %v1108_v54 }
  0xcb   :  { %v766_v11 = vpop.eup %765  ;;  %v548_v12 = vmul.f32 %v532_v6, %v1060_v22  ;;  %v426_v35 = vmul.f32 %v410_v7, %v410_v7 }
  0xcc   :  { %566 = vst [vmem:[%s1154_s3 + $0x18] sm:$0xff] %v558_v8  ;;  %v517_v16 = vadd.f32 1.0, %v766_v11  ;;  %v488_v13 = vmul.f32 0.7978846, %v472_v9  ;;  %v489_v17 = vmul.f32 0.7978846, %v473_v10 }
  0xcd   :  { %v768_v14 = vpop.eup %767  ;;  %v559_v15 = vpack.c.bf16 %v548_v12, %v547_v5  ;;  %v442_v45 = vmul.f32 %v426_v35, %v410_v7 }
  0xce   :  { %v533_v18 = vmul.f32 0.5, %v517_v16  ;;  %v518_v19 = vadd.f32 1.0, %v768_v14  ;;  %771 = vtanh.f32 %v488_v13 }
  0xcf   :  { %567 = vst [vmem:[%s1154_s3 + $0x20] sm:$0xff] %v559_v15  ;;  %773 = vtanh.f32 %v489_v17  ;;  %v458_v22 = vmul.f32 0.044715, %v442_v45 }
  0xd0   :  { %v770_v20 = vpop.eup %769  ;;  %v549_v21 = vmul.f32 %v533_v18, %v1075_v52  ;;  %v534_v23 = vmul.f32 0.5, %v518_v19 }
  0xd1   :  { %v519_v24 = vadd.f32 1.0, %v770_v20  ;;  %v474_v25 = vadd.f32 %v458_v22, %v410_v7 }
  0xd2   :  { %v550_v26 = vmul.f32 %v534_v23, %v1081_v61 }
  0xd3   :  { %v535_v27 = vmul.f32 0.5, %v519_v24  ;;  %v490_v28 = vmul.f32 0.7978846, %v474_v25 }
  0xd4   :  { %v772_v29 = vpop.eup %771  ;;  %v560_v30 = vpack.c.bf16 %v550_v26, %v549_v21 }
  0xd5   :  { %v774_v31 = vpop.eup %773  ;;  %v520_v50 = vadd.f32 1.0, %v772_v29  ;;  %775 = vtanh.f32 %v490_v28  ;;  %v551_v34 = vmul.f32 %v535_v27, %v1086_v1 }
  0xd6   :  { %568 = vst [vmem:[%s1154_s3 + $0x28] sm:$0xff] %v560_v30  ;;  %v521_v33 = vadd.f32 1.0, %v774_v31 }
  0xd7   :  { %v536_v52 = vmul.f32 0.5, %v520_v50 }
  0xd8   :  { %v537_v39 = vmul.f32 0.5, %v521_v33 }
  0xd9   :  { %v552_v37 = vmul.f32 %v536_v52, %v1103_v32 }
  0xda   :  { %v553_v55 = vmul.f32 %v537_v39, %v1108_v54 }
  0xdb   :  { %v776_v41 = vpop.eup %775  ;;  %v561_v61 = vpack.c.bf16 %v552_v37, %v551_v34 }
  0xdc   :  { %v522_v42 = vadd.f32 1.0, %v776_v41 }
  0xdd   :  { %569 = vst [vmem:[%s1154_s3 + $0x30] sm:$0xff] %v561_v61 }
  0xde   :  { %v538_v44 = vmul.f32 0.5, %v522_v42 }
  0xe0   :  { %v554_v46 = vmul.f32 %v538_v44, %v410_v7 }
  0xe2   :  { %v562_v36 = vpack.c.bf16 %v554_v46, %v553_v55 }
  0xe4   :  { %570 = vst [vmem:[%s1154_s3 + $0x38] sm:$0xff] %v562_v36 }

// kernel: clip_caption_forward.35
= control target key start
LH: loop header
LB: loop body
LE: loop exit
PB: predicated region body
PF: predicated region fallthrough
CT: control target
= control target key end

     0   :  { %s493_s0 = inlined_call_operand.vmem [shape: bf16[32,128], index: 0, kind: input, shape index: {}]   ;;  %s494_s1 = inlined_call_operand.vmem [shape: bf16[128,256], index: 1, kind: input, shape index: {}]   ;;  %s495_s2 = inlined_call_operand.hbm [shape: f32[32,256], index: 2, kind: output, shape index: {}]  }
   0x1   :  { %v301_v0 = vld [vmem:[%s494_s1 + $0x70] sm:$0xf]  ;;  %v324_v1 = vld [vmem:[%s494_s1 + $0x74] sm:$0xf0]  ;;  %v323_v2 = vld [vmem:[%s494_s1 + $0x74] sm:$0xf] }
   0x2   :  { %v302_v3 = vor.u32 %v324_v1, %v301_v0  ;;  %v303_v4 = vld [vmem:[%s494_s1 + $0x78] sm:$0xf0]  ;;  %v293_v5 = vld [vmem:[%s494_s1 + $0x60] sm:$0xf]  ;;  %v322_v6 = vld [vmem:[%s494_s1 + $0x64] sm:$0xf0] }
   0x3   :  { %v306_v7 = vor.u32 %v323_v2, %v303_v4  ;;  %v321_v8 = vld [vmem:[%s494_s1 + $0x64] sm:$0xf]  ;;  %v295_v9 = vld [vmem:[%s494_s1 + $0x68] sm:$0xf0]  ;;  %v294_v10 = vor.u32 %v322_v6, %v293_v5  ;;  %v285_v12 = vld [vmem:[%s494_s1 + $0x50] sm:$0xf] }
   0x4   :  { %144 = vmatpush.bf16.msra.mxu0 %v302_v3  ;;  %325 = vmatpush.bf16.msra.mxu2 %v302_v3  ;;  %v298_v11 = vor.u32 %v321_v8, %v295_v9  ;;  %v320_v13 = vld [vmem:[%s494_s1 + $0x54] sm:$0xf0]  ;;  %v319_v14 = vld [vmem:[%s494_s1 + $0x54] sm:$0xf]  ;;  %v287_v15 = vld [vmem:[%s494_s1 + $0x58] sm:$0xf0] }
   0x5   :  { %163 = vmatpush.bf16.msra.mxu1 %v306_v7  ;;  %333 = vmatpush.bf16.msra.mxu3 %v306_v7  ;;  %v286_v16 = vor.u32 %v320_v13, %v285_v12  ;;  %v290_v17 = vor.u32 %v319_v14, %v287_v15  ;;  %v277_v18 = vld [vmem:[%s494_s1 + $0x40] sm:$0xf]  ;;  %v318_v19 = vld [vmem:[%s494_s1 + $0x44] sm:$0xf0]  ;;  %v317_v20 = vld [vmem:[%s494_s1 + $0x44] sm:$0xf] }
   0x6   :  { %v279_v21 = vld [vmem:[%s494_s1 + $0x48] sm:$0xf0]  ;;  %v278_v22 = vor.u32 %v318_v19, %v277_v18 }
   0x8   :  { %145 = vmatpush.bf16.msra.mxu0 %v294_v10  ;;  %326 = vmatpush.bf16.msra.mxu2 %v294_v10 }
   0x9   :  { %164 = vmatpush.bf16.msra.mxu1 %v298_v11  ;;  %334 = vmatpush.bf16.msra.mxu3 %v298_v11 }
   0xc   :  { %146 = vmatpush.bf16.msra.mxu0 %v286_v16  ;;  %327 = vmatpush.bf16.msra.mxu2 %v286_v16 }
   0xd   :  { %7 = vsyncpa [#allocation4], 0  ;;  %165 = vmatpush.bf16.msra.mxu1 %v290_v17  ;;  %335 = vmatpush.bf16.msra.mxu3 %v290_v17  ;;  %v282_v23 = vor.u32 %v317_v20, %v279_v21  ;;  %v269_v24 = vld [vmem:[%s494_s1 + $0x30] sm:$0xf]  ;;  %v316_v25 = vld [vmem:[%s494_s1 + $0x34] sm:$0xf0] }
   0xe   :  { %v315_v26 = vld [vmem:[%s494_s1 + $0x34] sm:$0xf]  ;;  %v271_v27 = vld [vmem:[%s494_s1 + $0x38] sm:$0xf0]  ;;  %v270_v28 = vor.u32 %v316_v25, %v269_v24  ;;  %v261_v30 = vld [vmem:[%s494_s1 + $0x20] sm:$0xf] }
   0xf   :  { %v274_v29 = vor.u32 %v315_v26, %v271_v27  ;;  %v314_v31 = vld [vmem:[%s494_s1 + $0x24] sm:$0xf0]  ;;  %v313_v32 = vld [vmem:[%s494_s1 + $0x24] sm:$0xf]  ;;  %v263_v33 = vld [vmem:[%s494_s1 + $0x28] sm:$0xf0] }
  0x10   :  { %147 = vmatpush.bf16.msra.mxu0 %v278_v22  ;;  %328 = vmatpush.bf16.msra.mxu2 %v278_v22  ;;  %v262_v34 = vor.u32 %v314_v31, %v261_v30  ;;  %v266_v35 = vor.u32 %v313_v32, %v263_v33  ;;  %v253_v36 = vld [vmem:[%s494_s1 + $0x10] sm:$0xf]  ;;  %v312_v37 = vld [vmem:[%s494_s1 + $0x14] sm:$0xf0]  ;;  %v311_v38 = vld [vmem:[%s494_s1 + $0x14] sm:$0xf] }
  0x11   :  { %166 = vmatpush.bf16.msra.mxu1 %v282_v23  ;;  %336 = vmatpush.bf16.msra.mxu3 %v282_v23  ;;  %v255_v39 = vld [vmem:[%s494_s1 + $0x18] sm:$0xf0]  ;;  %v254_v40 = vor.u32 %v312_v37, %v253_v36  ;;  %v245_v42 = vld [vmem:[%s494_s1] sm:$0xf]  ;;  %v310_v43 = vld [vmem:[%s494_s1 + $0x4] sm:$0xf0] }
  0x12   :  { %v258_v41 = vor.u32 %v311_v38, %v255_v39  ;;  %v309_v44 = vld [vmem:[%s494_s1 + $0x4] sm:$0xf]  ;;  %v247_v45 = vld [vmem:[%s494_s1 + $0x8] sm:$0xf0]  ;;  %v246_v46 = vor.u32 %v310_v43, %v245_v42  ;;  %s223_s23 = sshll.u32 %s495_s2, 4  ;;  %s371_s24 = smov 256   ;;  %s224_s23 = int_to_ptr.hbm [resolvable:$true] %s223_s23 }
  0x13   :  { %v250_v47 = vor.u32 %v309_v44, %v247_v45  ;;  %v307_v48 = vld [vmem:[%s493_s0] sm:$0xff]  ;;  %v308_v49 = vld [vmem:[%s493_s0 + $0x8] sm:$0xff]  ;;  %s370_s0 = smov [#allocation3]   ;;  %s372_s25 = smov 16  }
  0x14   :  { %148 = vmatpush.bf16.msra.mxu0 %v270_v28  ;;  %329 = vmatpush.bf16.msra.mxu2 %v270_v28  ;;  %s221_s1 = sshll.u32 %s370_s0, 4  ;;  %s222_s1 = int_to_ptr.vmem [resolvable:$true] %s221_s1 }
  0x15   :  { %167 = vmatpush.bf16.msra.mxu1 %v274_v29  ;;  %337 = vmatpush.bf16.msra.mxu3 %v274_v29 }
  0x18   :  { %149 = vmatpush.bf16.msra.mxu0 %v262_v34  ;;  %330 = vmatpush.bf16.msra.mxu2 %v262_v34 }
  0x19   :  { %168 = vmatpush.bf16.msra.mxu1 %v266_v35  ;;  %338 = vmatpush.bf16.msra.mxu3 %v266_v35 }
  0x1c   :  { %150 = vmatpush.bf16.msra.mxu0 %v254_v40  ;;  %331 = vmatpush.bf16.msra.mxu2 %v254_v40 }
  0x1d   :  { %169 = vmatpush.bf16.msra.mxu1 %v258_v41  ;;  %339 = vmatpush.bf16.msra.mxu3 %v258_v41 }
  0x20   :  { %151 = vmatpush.bf16.msra.mxu0 %v246_v46  ;;  %332 = vmatpush.bf16.msra.mxu2 %v246_v46 }
  0x21   :  { %170 = vmatpush.bf16.msra.mxu1 %v250_v47  ;;  %340 = vmatpush.bf16.msra.mxu3 %v250_v47 }
  0x23   :  { %152 = vmatmul.bf16.vlgmr.msra.gmra.mxu0 %v307_v48  ;;  %157 = vmatmul.bf16.vlgmr.msra.gmra.mxu2 %v308_v49 }
  0x24   :  { %171 = vmatmul.bf16.vlgmr.msra.gmra.mxu1 %v307_v48  ;;  %176 = vmatmul.bf16.vlgmr.msra.gmra.mxu3 %v308_v49 }
  0xa0   :  { %v153_v50 = vpop.f32.mrf.mxu0 }
  0xa1   :  { %209 = vst [vmem:[#allocation3] sm:$0xff] %v153_v50  ;;  %v172_v51 = vpop.f32.mrf.mxu1 }
  0xa2   :  { %210 = vst [vmem:[#allocation3 + $0x8] sm:$0xff] %v172_v51 }
  0xa6   :  { %v158_v52 = vpop.f32.mrf.mxu2 }
  0xa7   :  { %213 = vst [vmem:[#allocation3 + $0x20] sm:$0xff] %v158_v52  ;;  %v177_v53 = vpop.f32.mrf.mxu3 }
  0xa8   :  { %214 = vst [vmem:[#allocation3 + $0x28] sm:$0xff] %v177_v53  ;;  %v155_v54 = vpop.f32.mrf.mxu0 }
  0xa9   :  { %211 = vst [vmem:[#allocation3 + $0x10] sm:$0xff] %v155_v54  ;;  %v174_v55 = vpop.f32.mrf.mxu1 }
  0xaa   :  { %212 = vst [vmem:[#allocation3 + $0x18] sm:$0xff] %v174_v55 }
  0xae   :  { %v160_v56 = vpop.f32.mrf.mxu2 }
  0xaf   :  { %215 = vst [vmem:[#allocation3 + $0x30] sm:$0xff] %v160_v56  ;;  %v179_v57 = vpop.f32.mrf.mxu3 }
  0xb0   :  { %216 = vst [vmem:[#allocation3 + $0x38] sm:$0xff] %v179_v57 }
  0xb1   :  { %229 = dma.vmem_to_hbm [thread:$0]  %s222_s1, 1024, %s224_s23, [#allocation4], %s371_s24, %s371_s24, %s372_s25  }
  0xb2   :  { %368 = dma.done.wait [#allocation4], 1024  }
  0xb3   :  { %369 = vsyncadd [#allocation4], 4294966272 }
  0xb4   :  { %234 = vsyncpa [#allocation4], 1 }

</bundles_post_ra>
